<compile_context>
chip_gen: v7x
topology: tpu7x:2x2x1
jax: 0.10.0
libtpu: 0.0.40
codegen_flags: <defaults>
</compile_context>

<pallas_src>
import math

import jax
import jax.numpy as jnp
from jax import lax
from jax.experimental import pallas as pl
from jax.experimental.pallas import tpu as pltpu

EPS = 1e-07

_VMEM = pl.BlockSpec(memory_space=pltpu.MemorySpace.VMEM)


# ----------------------------------------------------------------------------
# In-kernel building blocks (all values stay in VMEM / vregs)
# ----------------------------------------------------------------------------
def _masked_gat(x16, w16, a_src, a_dst, mask):
    """GATConv, 1 head, concat=False, no bias, add_self_loops=False (dense)."""
    h = jnp.dot(x16, w16, preferred_element_type=jnp.float32)          # [N, Dout] f32
    h16 = h.astype(jnp.bfloat16)
    # e[i, j] = <h_i, a_dst> + <h_j, a_src>
    a_d = jnp.sum(h * a_dst, axis=-1, keepdims=True)                   # [N, 1]  (VPU + XLU)
    a_s = lax.dot_general(a_src, h, (((1,), (1,)), ((), ())),
                          preferred_element_type=jnp.float32)          # [1, N]  lane layout, no transpose
    e = a_d + a_s                                                      # [N, N]
    e = jnp.where(e > 0, e, 0.2 * e)                                   # LeakyReLU(0.2)
    e = jnp.where(mask, e, jnp.float32(-1e30))                         # mask fill in f32
    e = e - jnp.max(e, axis=-1, keepdims=True)
    p = jnp.where(mask, jnp.exp(e), 0.0)
    denom = jnp.sum(p, axis=-1, keepdims=True) + 1e-16                 # PyG softmax (+1e-16)
    alpha = p * pl.reciprocal(denom, approx=True)
    return jnp.dot(alpha.astype(jnp.bfloat16), h16,
                   preferred_element_type=jnp.float32)                 # [N, Dout]


def _attn_block(x16, w16, b, wq16, wk16, wv16):
    """AttnBlock: Linear(in->out) + single-head dense self-attention + residual."""
    h = jnp.dot(x16, w16, preferred_element_type=jnp.float32) + b      # [N, Dout] f32
    h16 = h.astype(jnp.bfloat16)
    q = jnp.dot(h16, wq16, preferred_element_type=jnp.float32)
    k = jnp.dot(h16, wk16, preferred_element_type=jnp.float32)
    v = jnp.dot(h16, wv16, preferred_element_type=jnp.float32)
    scale = jnp.float32(1.0 / math.sqrt(h.shape[-1]))
    # q @ k^T without materializing a transpose: contract the last dims.
    s = lax.dot_general(q.astype(jnp.bfloat16), k.astype(jnp.bfloat16),
                        (((1,), (1,)), ((), ())),
                        preferred_element_type=jnp.float32) * scale    # [N, N]
    s = s - jnp.max(s, axis=-1, keepdims=True)
    p = jnp.exp(s)
    attn = p * pl.reciprocal(jnp.sum(p, axis=-1, keepdims=True), approx=True)
    return h + jnp.dot(attn.astype(jnp.bfloat16), v.astype(jnp.bfloat16),
                       preferred_element_type=jnp.float32)


# ----------------------------------------------------------------------------
# Fused forward kernel
# ----------------------------------------------------------------------------
def _spa_vae_kernel(x_ref, adj_ref, eps_ref,
                    gin_w, gin_as, gin_ad,
                    enc_w, enc_b, enc_wq, enc_wk, enc_wv,
                    mu_w, mu_b, lv_w, lv_b,
                    dec_w, dec_b, dec_wq, dec_wk, dec_wv,
                    gout_w, gout_as, gout_ad,
                    small_ref, recon_ref):
    # Decode the int8 adjacency into an edge mask once; reused by both GATs.
    mask = adj_ref[...].astype(jnp.float32) > 0.0                      # [N, N] bool

    # ---- in_gat (no bias, no activation) ----
    h0 = _masked_gat(x_ref[...].astype(jnp.bfloat16),
                     gin_w[...], gin_as[...], gin_ad[...], mask)       # [N, Dgat]

    # ---- EncoderAttnBlock (no activation) ----
    h = _attn_block(h0.astype(jnp.bfloat16), enc_w[...], enc_b[...],
                    enc_wq[...], enc_wk[...], enc_wv[...])             # [N, enc_out]
    h16 = h.astype(jnp.bfloat16)

    # ---- VAE head (kept in f32: tiny matmuls feeding exp/reparam) ----
    mu = jnp.dot(h, mu_w[...], preferred_element_type=jnp.float32) + mu_b[...]
    lv = jnp.dot(h, lv_w[...], preferred_element_type=jnp.float32) + lv_b[...] + EPS
    std = jnp.exp(lv * 0.5) + EPS
    z = mu + eps_ref[...] * std

    # ---- DecoderAttnBlock consumes the post-encoder hidden state (not z) ----
    d = _attn_block(h16, dec_w[...], dec_b[...],
                    dec_wq[...], dec_wk[...], dec_wv[...])             # [N, Dgat]

    # ---- out_gat ----
    recon_ref[...] = _masked_gat(d.astype(jnp.bfloat16), gout_w[...],
                                 gout_as[...], gout_ad[...], mask)     # [N, Din]

    # ---- lane-dense packed slab: [hidden | mu | log_var | z | 0-pad] ----
    pieces = [h, mu, lv, z]
    pad = small_ref.shape[-1] - sum(p.shape[-1] for p in pieces)
    if pad:
        pieces.append(jnp.zeros((h.shape[0], pad), jnp.float32))
    small_ref[...] = jnp.concatenate(pieces, axis=-1)


# ----------------------------------------------------------------------------
# Wrapper
# ----------------------------------------------------------------------------
def _round_up(x, m):
    return ((x + m - 1) // m) * m


def spa_vae_forward(params, features, adj, eps_noise):
    n = features.shape[0]
    din = params["out_gat"]["w"].shape[1]
    enc_out = params["enc"]["w"].shape[1]
    hid = params["mu"]["w"].shape[1]
    slab = _round_up(enc_out + 3 * hid, 128)

    p = params
    args = (
        features, adj, eps_noise,
        p["in_gat"]["w"], p["in_gat"]["att_src"], p["in_gat"]["att_dst"],
        p["enc"]["w"], p["enc"]["b"], p["enc"]["wq"], p["enc"]["wk"], p["enc"]["wv"],
        p["mu"]["w"], p["mu"]["b"], p["log_var"]["w"], p["log_var"]["b"],
        p["dec"]["w"], p["dec"]["b"], p["dec"]["wq"], p["dec"]["wk"], p["dec"]["wv"],
        p["out_gat"]["w"], p["out_gat"]["att_src"], p["out_gat"]["att_dst"],
    )

    small, recon = pl.pallas_call(
        _spa_vae_kernel,
        out_shape=(jax.ShapeDtypeStruct((n, slab), jnp.float32),
                   jax.ShapeDtypeStruct((n, din), jnp.float32)),
        in_specs=[_VMEM] * len(args),
        out_specs=(_VMEM, _VMEM),
        compiler_params=pltpu.CompilerParams(
            vmem_limit_bytes=32 * 1024 * 1024),
    )(*args)

    hidden_state = small[:, :enc_out]
    mu = small[:, enc_out:enc_out + hid]
    log_var = small[:, enc_out + hid:enc_out + 2 * hid]
    z = small[:, enc_out + 2 * hid:enc_out + 3 * hid]
    return hidden_state, recon, mu, log_var, z


# ----------------------------------------------------------------------------
# Parameter construction (deterministic, synthetic) + graph densification
# ----------------------------------------------------------------------------
def _dense_init(key, din, dout, dtype=jnp.float32):
    w = jax.random.normal(key, (din, dout), jnp.float32) / math.sqrt(din)
    return w.astype(dtype)


def init_spa_vae_params(key, input_dim, gat_dim, block_out_dims, hidden_dim):
    keys = jax.random.split(key, 6)

    def gat(k, din, dout):
        k1, k2, k3 = jax.random.split(k, 3)
        return {
            "w": _dense_init(k1, din, dout, jnp.bfloat16),     # bf16 MXU operand
            "att_src": jax.random.normal(k2, (1, dout), jnp.float32) / math.sqrt(dout),
            "att_dst": jax.random.normal(k3, (1, dout), jnp.float32) / math.sqrt(dout),
        }

    def block(k, din, dout):
        k1, k2, k3, k4 = jax.random.split(k, 4)
        return {
            "w": _dense_init(k1, din, dout, jnp.bfloat16),
            "b": jnp.zeros((1, dout), jnp.float32),
            "wq": _dense_init(k2, dout, dout, jnp.bfloat16),
            "wk": _dense_init(k3, dout, dout, jnp.bfloat16),
            "wv": _dense_init(k4, dout, dout, jnp.bfloat16),
        }

    def linear(k, din, dout):
        return {"w": _dense_init(k, din, dout), "b": jnp.zeros((1, dout), jnp.float32)}

    enc_in, enc_out = block_out_dims[0], block_out_dims[-1]
    return {
        "in_gat": gat(keys[0], input_dim, gat_dim),
        "enc": block(keys[1], enc_in, enc_out),          # EncoderAttnBlock
        "dec": block(keys[2], enc_out, enc_in),          # DecoderAttnBlock
        "out_gat": gat(keys[3], gat_dim, input_dim),
        "mu": linear(keys[4], enc_out, hidden_dim),
        "log_var": linear(keys[5], enc_out, hidden_dim),
    }


def edge_index_to_adj(edge_index, num_nodes):
    src, dst = edge_index[0], edge_index[1]
    adj = jnp.zeros((num_nodes, num_nodes), jnp.int8)
    return adj.at[dst, src].set(1)     # adj[i, j] = 1 iff edge j -> i


# ----------------------------------------------------------------------------
# Demo / smoke test
# ----------------------------------------------------------------------------
if __name__ == "__main__":
    # Small shapes consistent with the module (scaled down from 3000/512/32).
    N = 64            # number of graph nodes
    INPUT_DIM = 128   # gene/feature dim
    GAT_DIM = 128     # gat_dim
    BLOCK_OUT_DIMS = [128, 32]
    HIDDEN_DIM = 32

    key = jax.random.PRNGKey(0)
    k_feat, k_param, k_eps = jax.random.split(key, 3)

    features = jax.random.normal(k_feat, (N, INPUT_DIM), jnp.float32)

    # Synthetic graph: bidirectional ring + skip-2 edges (no self loops).
    idx = jnp.arange(N)
    src = jnp.concatenate([idx, (idx + 1) % N, idx, (idx + 2) % N])
    dst = jnp.concatenate([(idx + 1) % N, idx, (idx + 2) % N, idx])
    edge_index = jnp.stack([src, dst], axis=0)            # [2, E], PyG convention
    adj = edge_index_to_adj(edge_index, N)                # int8 [N, N]

    params = init_spa_vae_params(k_param, INPUT_DIM, GAT_DIM, BLOCK_OUT_DIMS, HIDDEN_DIM)
    eps_noise = jax.random.normal(k_eps, (N, HIDDEN_DIM), jnp.float32)  # reparam eps

    hidden_state, recon, mu, log_var, z = jax.jit(spa_vae_forward)(
        params, features, adj, eps_noise)
    jax.block_until_ready((hidden_state, recon, mu, log_var, z))

    assert hidden_state.shape == (N, BLOCK_OUT_DIMS[-1])
    assert recon.shape == (N, INPUT_DIM)
    assert mu.shape == (N, HIDDEN_DIM)
    assert log_var.shape == (N, HIDDEN_DIM)
    assert z.shape == (N, HIDDEN_DIM)
    assert bool(jnp.all(jnp.isfinite(recon)))
    assert bool(jnp.all(jnp.isfinite(z)))

    print("KERNEL_OK")
</pallas_src>

<mosaic_0001>
module attributes {stable_mosaic.version = 11 : i64} {
  func.func @_spa_vae_kernel(%arg0: memref<64x128xf32, #tpu.memory_space<vmem>>, %arg1: memref<64x64xi8, #tpu.memory_space<vmem>>, %arg2: memref<64x32xf32, #tpu.memory_space<vmem>>, %arg3: memref<128x128xbf16, #tpu.memory_space<vmem>>, %arg4: memref<1x128xf32, #tpu.memory_space<vmem>>, %arg5: memref<1x128xf32, #tpu.memory_space<vmem>>, %arg6: memref<128x32xbf16, #tpu.memory_space<vmem>>, %arg7: memref<1x32xf32, #tpu.memory_space<vmem>>, %arg8: memref<32x32xbf16, #tpu.memory_space<vmem>>, %arg9: memref<32x32xbf16, #tpu.memory_space<vmem>>, %arg10: memref<32x32xbf16, #tpu.memory_space<vmem>>, %arg11: memref<32x32xf32, #tpu.memory_space<vmem>>, %arg12: memref<1x32xf32, #tpu.memory_space<vmem>>, %arg13: memref<32x32xf32, #tpu.memory_space<vmem>>, %arg14: memref<1x32xf32, #tpu.memory_space<vmem>>, %arg15: memref<32x128xbf16, #tpu.memory_space<vmem>>, %arg16: memref<1x128xf32, #tpu.memory_space<vmem>>, %arg17: memref<128x128xbf16, #tpu.memory_space<vmem>>, %arg18: memref<128x128xbf16, #tpu.memory_space<vmem>>, %arg19: memref<128x128xbf16, #tpu.memory_space<vmem>>, %arg20: memref<128x128xbf16, #tpu.memory_space<vmem>>, %arg21: memref<1x128xf32, #tpu.memory_space<vmem>>, %arg22: memref<1x128xf32, #tpu.memory_space<vmem>>, %arg23: memref<64x128xf32, #tpu.memory_space<vmem>>, %arg24: memref<64x128xf32, #tpu.memory_space<vmem>>) attributes {dimension_semantics = [], scalar_prefetch = 0 : i64, scratch_operands = 0 : i64, tpu.core_type = #tpu.core_type<tc>} {
    %c0 = arith.constant 0 : index
    %c0_0 = arith.constant 0 : index
    %0 = vector.load %arg1[%c0, %c0_0] : memref<64x64xi8, #tpu.memory_space<vmem>>, vector<64x64xi8>
    %1 = arith.sitofp %0 : vector<64x64xi8> to vector<64x64xf32>
    %cst = arith.constant 0.000000e+00 : f32
    %2 = vector.broadcast %cst : f32 to vector<64x64xf32>
    %3 = arith.cmpf ogt, %1, %2 : vector<64x64xf32>
    %c0_1 = arith.constant 0 : index
    %c0_2 = arith.constant 0 : index
    %4 = vector.load %arg0[%c0_1, %c0_2] : memref<64x128xf32, #tpu.memory_space<vmem>>, vector<64x128xf32>
    %5 = arith.truncf %4 : vector<64x128xf32> to vector<64x128xbf16>
    %c0_3 = arith.constant 0 : index
    %c0_4 = arith.constant 0 : index
    %6 = vector.load %arg3[%c0_3, %c0_4] : memref<128x128xbf16, #tpu.memory_space<vmem>>, vector<128x128xbf16>
    %c0_5 = arith.constant 0 : index
    %c0_6 = arith.constant 0 : index
    %7 = vector.load %arg4[%c0_5, %c0_6] : memref<1x128xf32, #tpu.memory_space<vmem>>, vector<1x128xf32>
    %c0_7 = arith.constant 0 : index
    %c0_8 = arith.constant 0 : index
    %8 = vector.load %arg5[%c0_7, %c0_8] : memref<1x128xf32, #tpu.memory_space<vmem>>, vector<1x128xf32>
    %cst_9 = arith.constant dense<0.000000e+00> : vector<64x128xf32>
    %9 = tpu.matmul %5, %6, %cst_9 {dimension_numbers = #tpu.dot_dimension_numbers<[1], [0], [0], [1], [0, 0, 1, 1], [], []>} : vector<64x128xbf16>, vector<128x128xbf16>, vector<64x128xf32> -> vector<64x128xf32>
    %10 = arith.truncf %9 : vector<64x128xf32> to vector<64x128xbf16>
    %11 = vector.broadcast %8 : vector<1x128xf32> to vector<64x128xf32>
    %12 = arith.mulf %9, %11 : vector<64x128xf32>
    %cst_10 = arith.constant dense<0.000000e+00> : vector<64xf32>
    %13 = vector.multi_reduction <add>, %12, %cst_10 [1] : vector<64x128xf32> to vector<64xf32>
    %14 = vector.shape_cast %13 : vector<64xf32> to vector<64x1xf32>
    %cst_11 = arith.constant dense<0.000000e+00> : vector<1x64xf32>
    %15 = tpu.matmul %7, %9, %cst_11 {dimension_numbers = #tpu.dot_dimension_numbers<[1], [1], [0], [0], [0, 0, 1, 0], [], []>} : vector<1x128xf32>, vector<64x128xf32>, vector<1x64xf32> -> vector<1x64xf32>
    %16 = vector.broadcast %14 : vector<64x1xf32> to vector<64x64xf32>
    %17 = vector.broadcast %15 : vector<1x64xf32> to vector<64x64xf32>
    %18 = arith.addf %16, %17 : vector<64x64xf32>
    %cst_12 = arith.constant 0.000000e+00 : f32
    %19 = vector.broadcast %cst_12 : f32 to vector<64x64xf32>
    %20 = arith.cmpf ogt, %18, %19 : vector<64x64xf32>
    %cst_13 = arith.constant 2.000000e-01 : f32
    %21 = vector.broadcast %cst_13 : f32 to vector<64x64xf32>
    %22 = arith.mulf %21, %18 : vector<64x64xf32>
    %23 = arith.select %20, %18, %22 : vector<64x64xi1>, vector<64x64xf32>
    %cst_14 = arith.constant -1.000000e+30 : f32
    %24 = vector.broadcast %cst_14 : f32 to vector<64x64xf32>
    %25 = arith.select %3, %23, %24 : vector<64x64xi1>, vector<64x64xf32>
    %cst_15 = arith.constant dense<0xFF800000> : vector<64xf32>
    %26 = vector.multi_reduction <maximumf>, %25, %cst_15 [1] : vector<64x64xf32> to vector<64xf32>
    %27 = vector.shape_cast %26 : vector<64xf32> to vector<64x1xf32>
    %28 = vector.broadcast %27 : vector<64x1xf32> to vector<64x64xf32>
    %29 = arith.subf %25, %28 : vector<64x64xf32>
    %30 = math.exp %29 : vector<64x64xf32>
    %cst_16 = arith.constant 0.000000e+00 : f32
    %31 = vector.broadcast %cst_16 : f32 to vector<64x64xf32>
    %32 = arith.select %3, %30, %31 : vector<64x64xi1>, vector<64x64xf32>
    %cst_17 = arith.constant dense<0.000000e+00> : vector<64xf32>
    %33 = vector.multi_reduction <add>, %32, %cst_17 [1] : vector<64x64xf32> to vector<64xf32>
    %34 = vector.shape_cast %33 : vector<64xf32> to vector<64x1xf32>
    %cst_18 = arith.constant 1.000000e-16 : f32
    %35 = vector.broadcast %cst_18 : f32 to vector<64x1xf32>
    %36 = arith.addf %34, %35 : vector<64x1xf32>
    %37 = tpu.reciprocal %36 {approx = true} : vector<64x1xf32> -> vector<64x1xf32>
    %38 = vector.broadcast %37 : vector<64x1xf32> to vector<64x64xf32>
    %39 = arith.mulf %32, %38 : vector<64x64xf32>
    %40 = arith.truncf %39 : vector<64x64xf32> to vector<64x64xbf16>
    %cst_19 = arith.constant dense<0.000000e+00> : vector<64x128xf32>
    %41 = tpu.matmul %40, %10, %cst_19 {dimension_numbers = #tpu.dot_dimension_numbers<[1], [0], [0], [1], [0, 0, 1, 1], [], []>} : vector<64x64xbf16>, vector<64x128xbf16>, vector<64x128xf32> -> vector<64x128xf32>
    %42 = arith.truncf %41 : vector<64x128xf32> to vector<64x128xbf16>
    %c0_20 = arith.constant 0 : index
    %c0_21 = arith.constant 0 : index
    %43 = vector.load %arg6[%c0_20, %c0_21] : memref<128x32xbf16, #tpu.memory_space<vmem>>, vector<128x32xbf16>
    %c0_22 = arith.constant 0 : index
    %c0_23 = arith.constant 0 : index
    %44 = vector.load %arg7[%c0_22, %c0_23] : memref<1x32xf32, #tpu.memory_space<vmem>>, vector<1x32xf32>
    %c0_24 = arith.constant 0 : index
    %c0_25 = arith.constant 0 : index
    %45 = vector.load %arg8[%c0_24, %c0_25] : memref<32x32xbf16, #tpu.memory_space<vmem>>, vector<32x32xbf16>
    %c0_26 = arith.constant 0 : index
    %c0_27 = arith.constant 0 : index
    %46 = vector.load %arg9[%c0_26, %c0_27] : memref<32x32xbf16, #tpu.memory_space<vmem>>, vector<32x32xbf16>
    %c0_28 = arith.constant 0 : index
    %c0_29 = arith.constant 0 : index
    %47 = vector.load %arg10[%c0_28, %c0_29] : memref<32x32xbf16, #tpu.memory_space<vmem>>, vector<32x32xbf16>
    %cst_30 = arith.constant dense<0.000000e+00> : vector<64x32xf32>
    %48 = tpu.matmul %42, %43, %cst_30 {dimension_numbers = #tpu.dot_dimension_numbers<[1], [0], [0], [1], [0, 0, 1, 1], [], []>} : vector<64x128xbf16>, vector<128x32xbf16>, vector<64x32xf32> -> vector<64x32xf32>
    %49 = vector.broadcast %44 : vector<1x32xf32> to vector<64x32xf32>
    %50 = arith.addf %48, %49 : vector<64x32xf32>
    %51 = arith.truncf %50 : vector<64x32xf32> to vector<64x32xbf16>
    %cst_31 = arith.constant dense<0.000000e+00> : vector<64x32xf32>
    %52 = tpu.matmul %51, %45, %cst_31 {dimension_numbers = #tpu.dot_dimension_numbers<[1], [0], [0], [1], [0, 0, 1, 1], [], []>} : vector<64x32xbf16>, vector<32x32xbf16>, vector<64x32xf32> -> vector<64x32xf32>
    %cst_32 = arith.constant dense<0.000000e+00> : vector<64x32xf32>
    %53 = tpu.matmul %51, %46, %cst_32 {dimension_numbers = #tpu.dot_dimension_numbers<[1], [0], [0], [1], [0, 0, 1, 1], [], []>} : vector<64x32xbf16>, vector<32x32xbf16>, vector<64x32xf32> -> vector<64x32xf32>
    %cst_33 = arith.constant dense<0.000000e+00> : vector<64x32xf32>
    %54 = tpu.matmul %51, %47, %cst_33 {dimension_numbers = #tpu.dot_dimension_numbers<[1], [0], [0], [1], [0, 0, 1, 1], [], []>} : vector<64x32xbf16>, vector<32x32xbf16>, vector<64x32xf32> -> vector<64x32xf32>
    %55 = arith.truncf %52 : vector<64x32xf32> to vector<64x32xbf16>
    %56 = arith.truncf %53 : vector<64x32xf32> to vector<64x32xbf16>
    %cst_34 = arith.constant dense<0.000000e+00> : vector<64x64xf32>
    %57 = tpu.matmul %55, %56, %cst_34 {dimension_numbers = #tpu.dot_dimension_numbers<[1], [1], [0], [0], [0, 0, 1, 0], [], []>} : vector<64x32xbf16>, vector<64x32xbf16>, vector<64x64xf32> -> vector<64x64xf32>
    %cst_35 = arith.constant 0.176776692 : f32
    %58 = vector.broadcast %cst_35 : f32 to vector<64x64xf32>
    %59 = arith.mulf %57, %58 : vector<64x64xf32>
    %cst_36 = arith.constant dense<0xFF800000> : vector<64xf32>
    %60 = vector.multi_reduction <maximumf>, %59, %cst_36 [1] : vector<64x64xf32> to vector<64xf32>
    %61 = vector.shape_cast %60 : vector<64xf32> to vector<64x1xf32>
    %62 = vector.broadcast %61 : vector<64x1xf32> to vector<64x64xf32>
    %63 = arith.subf %59, %62 : vector<64x64xf32>
    %64 = math.exp %63 : vector<64x64xf32>
    %cst_37 = arith.constant dense<0.000000e+00> : vector<64xf32>
    %65 = vector.multi_reduction <add>, %64, %cst_37 [1] : vector<64x64xf32> to vector<64xf32>
    %66 = vector.shape_cast %65 : vector<64xf32> to vector<64x1xf32>
    %67 = tpu.reciprocal %66 {approx = true} : vector<64x1xf32> -> vector<64x1xf32>
    %68 = vector.broadcast %67 : vector<64x1xf32> to vector<64x64xf32>
    %69 = arith.mulf %64, %68 : vector<64x64xf32>
    %70 = arith.truncf %69 : vector<64x64xf32> to vector<64x64xbf16>
    %71 = arith.truncf %54 : vector<64x32xf32> to vector<64x32xbf16>
    %cst_38 = arith.constant dense<0.000000e+00> : vector<64x32xf32>
    %72 = tpu.matmul %70, %71, %cst_38 {dimension_numbers = #tpu.dot_dimension_numbers<[1], [0], [0], [1], [0, 0, 1, 1], [], []>} : vector<64x64xbf16>, vector<64x32xbf16>, vector<64x32xf32> -> vector<64x32xf32>
    %73 = arith.addf %50, %72 : vector<64x32xf32>
    %74 = arith.truncf %73 : vector<64x32xf32> to vector<64x32xbf16>
    %c0_39 = arith.constant 0 : index
    %c0_40 = arith.constant 0 : index
    %75 = vector.load %arg11[%c0_39, %c0_40] : memref<32x32xf32, #tpu.memory_space<vmem>>, vector<32x32xf32>
    %cst_41 = arith.constant dense<0.000000e+00> : vector<64x32xf32>
    %76 = tpu.matmul %73, %75, %cst_41 {dimension_numbers = #tpu.dot_dimension_numbers<[1], [0], [0], [1], [0, 0, 1, 1], [], []>} : vector<64x32xf32>, vector<32x32xf32>, vector<64x32xf32> -> vector<64x32xf32>
    %c0_42 = arith.constant 0 : index
    %c0_43 = arith.constant 0 : index
    %77 = vector.load %arg12[%c0_42, %c0_43] : memref<1x32xf32, #tpu.memory_space<vmem>>, vector<1x32xf32>
    %78 = vector.broadcast %77 : vector<1x32xf32> to vector<64x32xf32>
    %79 = arith.addf %76, %78 : vector<64x32xf32>
    %c0_44 = arith.constant 0 : index
    %c0_45 = arith.constant 0 : index
    %80 = vector.load %arg13[%c0_44, %c0_45] : memref<32x32xf32, #tpu.memory_space<vmem>>, vector<32x32xf32>
    %cst_46 = arith.constant dense<0.000000e+00> : vector<64x32xf32>
    %81 = tpu.matmul %73, %80, %cst_46 {dimension_numbers = #tpu.dot_dimension_numbers<[1], [0], [0], [1], [0, 0, 1, 1], [], []>} : vector<64x32xf32>, vector<32x32xf32>, vector<64x32xf32> -> vector<64x32xf32>
    %c0_47 = arith.constant 0 : index
    %c0_48 = arith.constant 0 : index
    %82 = vector.load %arg14[%c0_47, %c0_48] : memref<1x32xf32, #tpu.memory_space<vmem>>, vector<1x32xf32>
    %83 = vector.broadcast %82 : vector<1x32xf32> to vector<64x32xf32>
    %84 = arith.addf %81, %83 : vector<64x32xf32>
    %cst_49 = arith.constant 1.000000e-07 : f32
    %85 = vector.broadcast %cst_49 : f32 to vector<64x32xf32>
    %86 = arith.addf %84, %85 : vector<64x32xf32>
    %cst_50 = arith.constant 5.000000e-01 : f32
    %87 = vector.broadcast %cst_50 : f32 to vector<64x32xf32>
    %88 = arith.mulf %86, %87 : vector<64x32xf32>
    %89 = math.exp %88 : vector<64x32xf32>
    %cst_51 = arith.constant 1.000000e-07 : f32
    %90 = vector.broadcast %cst_51 : f32 to vector<64x32xf32>
    %91 = arith.addf %89, %90 : vector<64x32xf32>
    %c0_52 = arith.constant 0 : index
    %c0_53 = arith.constant 0 : index
    %92 = vector.load %arg2[%c0_52, %c0_53] : memref<64x32xf32, #tpu.memory_space<vmem>>, vector<64x32xf32>
    %93 = arith.mulf %92, %91 : vector<64x32xf32>
    %94 = arith.addf %79, %93 : vector<64x32xf32>
    %c0_54 = arith.constant 0 : index
    %c0_55 = arith.constant 0 : index
    %95 = vector.load %arg15[%c0_54, %c0_55] : memref<32x128xbf16, #tpu.memory_space<vmem>>, vector<32x128xbf16>
    %c0_56 = arith.constant 0 : index
    %c0_57 = arith.constant 0 : index
    %96 = vector.load %arg16[%c0_56, %c0_57] : memref<1x128xf32, #tpu.memory_space<vmem>>, vector<1x128xf32>
    %c0_58 = arith.constant 0 : index
    %c0_59 = arith.constant 0 : index
    %97 = vector.load %arg17[%c0_58, %c0_59] : memref<128x128xbf16, #tpu.memory_space<vmem>>, vector<128x128xbf16>
    %c0_60 = arith.constant 0 : index
    %c0_61 = arith.constant 0 : index
    %98 = vector.load %arg18[%c0_60, %c0_61] : memref<128x128xbf16, #tpu.memory_space<vmem>>, vector<128x128xbf16>
    %c0_62 = arith.constant 0 : index
    %c0_63 = arith.constant 0 : index
    %99 = vector.load %arg19[%c0_62, %c0_63] : memref<128x128xbf16, #tpu.memory_space<vmem>>, vector<128x128xbf16>
    %cst_64 = arith.constant dense<0.000000e+00> : vector<64x128xf32>
    %100 = tpu.matmul %74, %95, %cst_64 {dimension_numbers = #tpu.dot_dimension_numbers<[1], [0], [0], [1], [0, 0, 1, 1], [], []>} : vector<64x32xbf16>, vector<32x128xbf16>, vector<64x128xf32> -> vector<64x128xf32>
    %101 = vector.broadcast %96 : vector<1x128xf32> to vector<64x128xf32>
    %102 = arith.addf %100, %101 : vector<64x128xf32>
    %103 = arith.truncf %102 : vector<64x128xf32> to vector<64x128xbf16>
    %cst_65 = arith.constant dense<0.000000e+00> : vector<64x128xf32>
    %104 = tpu.matmul %103, %97, %cst_65 {dimension_numbers = #tpu.dot_dimension_numbers<[1], [0], [0], [1], [0, 0, 1, 1], [], []>} : vector<64x128xbf16>, vector<128x128xbf16>, vector<64x128xf32> -> vector<64x128xf32>
    %cst_66 = arith.constant dense<0.000000e+00> : vector<64x128xf32>
    %105 = tpu.matmul %103, %98, %cst_66 {dimension_numbers = #tpu.dot_dimension_numbers<[1], [0], [0], [1], [0, 0, 1, 1], [], []>} : vector<64x128xbf16>, vector<128x128xbf16>, vector<64x128xf32> -> vector<64x128xf32>
    %cst_67 = arith.constant dense<0.000000e+00> : vector<64x128xf32>
    %106 = tpu.matmul %103, %99, %cst_67 {dimension_numbers = #tpu.dot_dimension_numbers<[1], [0], [0], [1], [0, 0, 1, 1], [], []>} : vector<64x128xbf16>, vector<128x128xbf16>, vector<64x128xf32> -> vector<64x128xf32>
    %107 = arith.truncf %104 : vector<64x128xf32> to vector<64x128xbf16>
    %108 = arith.truncf %105 : vector<64x128xf32> to vector<64x128xbf16>
    %cst_68 = arith.constant dense<0.000000e+00> : vector<64x64xf32>
    %109 = tpu.matmul %107, %108, %cst_68 {dimension_numbers = #tpu.dot_dimension_numbers<[1], [1], [0], [0], [0, 0, 1, 0], [], []>} : vector<64x128xbf16>, vector<64x128xbf16>, vector<64x64xf32> -> vector<64x64xf32>
    %cst_69 = arith.constant 0.0883883461 : f32
    %110 = vector.broadcast %cst_69 : f32 to vector<64x64xf32>
    %111 = arith.mulf %109, %110 : vector<64x64xf32>
    %cst_70 = arith.constant dense<0xFF800000> : vector<64xf32>
    %112 = vector.multi_reduction <maximumf>, %111, %cst_70 [1] : vector<64x64xf32> to vector<64xf32>
    %113 = vector.shape_cast %112 : vector<64xf32> to vector<64x1xf32>
    %114 = vector.broadcast %113 : vector<64x1xf32> to vector<64x64xf32>
    %115 = arith.subf %111, %114 : vector<64x64xf32>
    %116 = math.exp %115 : vector<64x64xf32>
    %cst_71 = arith.constant dense<0.000000e+00> : vector<64xf32>
    %117 = vector.multi_reduction <add>, %116, %cst_71 [1] : vector<64x64xf32> to vector<64xf32>
    %118 = vector.shape_cast %117 : vector<64xf32> to vector<64x1xf32>
    %119 = tpu.reciprocal %118 {approx = true} : vector<64x1xf32> -> vector<64x1xf32>
    %120 = vector.broadcast %119 : vector<64x1xf32> to vector<64x64xf32>
    %121 = arith.mulf %116, %120 : vector<64x64xf32>
    %122 = arith.truncf %121 : vector<64x64xf32> to vector<64x64xbf16>
    %123 = arith.truncf %106 : vector<64x128xf32> to vector<64x128xbf16>
    %cst_72 = arith.constant dense<0.000000e+00> : vector<64x128xf32>
    %124 = tpu.matmul %122, %123, %cst_72 {dimension_numbers = #tpu.dot_dimension_numbers<[1], [0], [0], [1], [0, 0, 1, 1], [], []>} : vector<64x64xbf16>, vector<64x128xbf16>, vector<64x128xf32> -> vector<64x128xf32>
    %125 = arith.addf %102, %124 : vector<64x128xf32>
    %126 = arith.truncf %125 : vector<64x128xf32> to vector<64x128xbf16>
    %c0_73 = arith.constant 0 : index
    %c0_74 = arith.constant 0 : index
    %127 = vector.load %arg20[%c0_73, %c0_74] : memref<128x128xbf16, #tpu.memory_space<vmem>>, vector<128x128xbf16>
    %c0_75 = arith.constant 0 : index
    %c0_76 = arith.constant 0 : index
    %128 = vector.load %arg21[%c0_75, %c0_76] : memref<1x128xf32, #tpu.memory_space<vmem>>, vector<1x128xf32>
    %c0_77 = arith.constant 0 : index
    %c0_78 = arith.constant 0 : index
    %129 = vector.load %arg22[%c0_77, %c0_78] : memref<1x128xf32, #tpu.memory_space<vmem>>, vector<1x128xf32>
    %cst_79 = arith.constant dense<0.000000e+00> : vector<64x128xf32>
    %130 = tpu.matmul %126, %127, %cst_79 {dimension_numbers = #tpu.dot_dimension_numbers<[1], [0], [0], [1], [0, 0, 1, 1], [], []>} : vector<64x128xbf16>, vector<128x128xbf16>, vector<64x128xf32> -> vector<64x128xf32>
    %131 = arith.truncf %130 : vector<64x128xf32> to vector<64x128xbf16>
    %132 = vector.broadcast %129 : vector<1x128xf32> to vector<64x128xf32>
    %133 = arith.mulf %130, %132 : vector<64x128xf32>
    %cst_80 = arith.constant dense<0.000000e+00> : vector<64xf32>
    %134 = vector.multi_reduction <add>, %133, %cst_80 [1] : vector<64x128xf32> to vector<64xf32>
    %135 = vector.shape_cast %134 : vector<64xf32> to vector<64x1xf32>
    %cst_81 = arith.constant dense<0.000000e+00> : vector<1x64xf32>
    %136 = tpu.matmul %128, %130, %cst_81 {dimension_numbers = #tpu.dot_dimension_numbers<[1], [1], [0], [0], [0, 0, 1, 0], [], []>} : vector<1x128xf32>, vector<64x128xf32>, vector<1x64xf32> -> vector<1x64xf32>
    %137 = vector.broadcast %135 : vector<64x1xf32> to vector<64x64xf32>
    %138 = vector.broadcast %136 : vector<1x64xf32> to vector<64x64xf32>
    %139 = arith.addf %137, %138 : vector<64x64xf32>
    %cst_82 = arith.constant 0.000000e+00 : f32
    %140 = vector.broadcast %cst_82 : f32 to vector<64x64xf32>
    %141 = arith.cmpf ogt, %139, %140 : vector<64x64xf32>
    %cst_83 = arith.constant 2.000000e-01 : f32
    %142 = vector.broadcast %cst_83 : f32 to vector<64x64xf32>
    %143 = arith.mulf %142, %139 : vector<64x64xf32>
    %144 = arith.select %141, %139, %143 : vector<64x64xi1>, vector<64x64xf32>
    %cst_84 = arith.constant -1.000000e+30 : f32
    %145 = vector.broadcast %cst_84 : f32 to vector<64x64xf32>
    %146 = arith.select %3, %144, %145 : vector<64x64xi1>, vector<64x64xf32>
    %cst_85 = arith.constant dense<0xFF800000> : vector<64xf32>
    %147 = vector.multi_reduction <maximumf>, %146, %cst_85 [1] : vector<64x64xf32> to vector<64xf32>
    %148 = vector.shape_cast %147 : vector<64xf32> to vector<64x1xf32>
    %149 = vector.broadcast %148 : vector<64x1xf32> to vector<64x64xf32>
    %150 = arith.subf %146, %149 : vector<64x64xf32>
    %151 = math.exp %150 : vector<64x64xf32>
    %cst_86 = arith.constant 0.000000e+00 : f32
    %152 = vector.broadcast %cst_86 : f32 to vector<64x64xf32>
    %153 = arith.select %3, %151, %152 : vector<64x64xi1>, vector<64x64xf32>
    %cst_87 = arith.constant dense<0.000000e+00> : vector<64xf32>
    %154 = vector.multi_reduction <add>, %153, %cst_87 [1] : vector<64x64xf32> to vector<64xf32>
    %155 = vector.shape_cast %154 : vector<64xf32> to vector<64x1xf32>
    %cst_88 = arith.constant 1.000000e-16 : f32
    %156 = vector.broadcast %cst_88 : f32 to vector<64x1xf32>
    %157 = arith.addf %155, %156 : vector<64x1xf32>
    %158 = tpu.reciprocal %157 {approx = true} : vector<64x1xf32> -> vector<64x1xf32>
    %159 = vector.broadcast %158 : vector<64x1xf32> to vector<64x64xf32>
    %160 = arith.mulf %153, %159 : vector<64x64xf32>
    %161 = arith.truncf %160 : vector<64x64xf32> to vector<64x64xbf16>
    %cst_89 = arith.constant dense<0.000000e+00> : vector<64x128xf32>
    %162 = tpu.matmul %161, %131, %cst_89 {dimension_numbers = #tpu.dot_dimension_numbers<[1], [0], [0], [1], [0, 0, 1, 1], [], []>} : vector<64x64xbf16>, vector<64x128xbf16>, vector<64x128xf32> -> vector<64x128xf32>
    %c0_90 = arith.constant 0 : index
    %c0_91 = arith.constant 0 : index
    %163 = vector.load %arg24[%c0_90, %c0_91] : memref<64x128xf32, #tpu.memory_space<vmem>>, vector<64x128xf32>
    tpu.vector_store %arg24[%c0_90, %c0_91], %162 {strides = array<i32>} : memref<64x128xf32, #tpu.memory_space<vmem>>, vector<64x128xf32>,
    %164 = tpu.concatenate %73, %79, %86, %94 in 1 : vector<64x32xf32>, vector<64x32xf32>, vector<64x32xf32>, vector<64x32xf32> -> vector<64x128xf32>
    %c0_92 = arith.constant 0 : index
    %c0_93 = arith.constant 0 : index
    %165 = vector.load %arg23[%c0_92, %c0_93] : memref<64x128xf32, #tpu.memory_space<vmem>>, vector<64x128xf32>
    tpu.vector_store %arg23[%c0_92, %c0_93], %164 {strides = array<i32>} : memref<64x128xf32, #tpu.memory_space<vmem>>, vector<64x128xf32>,
    return
  }
}

</mosaic_0001>

<bundles_post_ra>
// kernel: spa_vae_forward.1
= control target key start
LH: loop header
LB: loop body
LE: loop exit
PB: predicated region body
PF: predicated region fallthrough
CT: control target
= control target key end

     0   :  { %s5650_s0 = inlined_call_operand.vmem [shape: f32[64,128], index: 0, kind: input, shape index: {}]   ;;  %s5651_s1 = inlined_call_operand.vmem [shape: s8[64,64], index: 1, kind: input, shape index: {}]   ;;  %s5652_s2 = inlined_call_operand.vmem [shape: f32[64,32], index: 2, kind: input, shape index: {}]   ;;  %s5653_s3 = inlined_call_operand.vmem [shape: bf16[128,128], index: 3, kind: input, shape index: {}]   ;;  %s5654_s4 = inlined_call_operand.hbm [shape: f32[1,128], index: 4, kind: input, shape index: {}]   ;;  %s5655_s5 = inlined_call_operand.hbm [shape: f32[1,128], index: 5, kind: input, shape index: {}]   ;;  %s5656_s6 = inlined_call_operand.vmem [shape: bf16[128,32], index: 6, kind: input, shape index: {}]   ;;  %s5657_s7 = inlined_call_operand.hbm [shape: f32[1,32], index: 7, kind: input, shape index: {}]   ;;  %s5658_s8 = inlined_call_operand.hbm [shape: bf16[32,32], index: 8, kind: input, shape index: {}]   ;;  %s5659_s9 = inlined_call_operand.hbm [shape: bf16[32,32], index: 9, kind: input, shape index: {}]   ;;  %s5660_s10 = inlined_call_operand.hbm [shape: bf16[32,32], index: 10, kind: input, shape index: {}]   ;;  %s5661_s11 = inlined_call_operand.hbm [shape: f32[32,32], index: 11, kind: input, shape index: {}]   ;;  %s5662_s12 = inlined_call_operand.hbm [shape: f32[1,32], index: 12, kind: input, shape index: {}]   ;;  %s5663_s13 = inlined_call_operand.hbm [shape: f32[32,32], index: 13, kind: input, shape index: {}]   ;;  %s5664_s14 = inlined_call_operand.hbm [shape: f32[1,32], index: 14, kind: input, shape index: {}]   ;;  %s5665_s15 = inlined_call_operand.hbm [shape: bf16[32,128], index: 15, kind: input, shape index: {}]   ;;  %s5666_s16 = inlined_call_operand.hbm [shape: f32[1,128], index: 16, kind: input, shape index: {}]   ;;  %s5667_s17 = inlined_call_operand.hbm [shape: bf16[128,128], index: 17, kind: input, shape index: {}]   ;;  %s5668_s18 = inlined_call_operand.hbm [shape: bf16[128,128], index: 18, kind: input, shape index: {}]   ;;  %s5669_s19 = inlined_call_operand.hbm [shape: bf16[128,128], index: 19, kind: input, shape index: {}]   ;;  %s5670_s20 = inlined_call_operand.vmem [shape: bf16[128,128], index: 20, kind: input, shape index: {}]   ;;  %s5671_s21 = inlined_call_operand.vmem [shape: f32[1,128], index: 21, kind: input, shape index: {}]   ;;  %s5672_s22 = inlined_call_operand.hbm [shape: f32[1,128], index: 22, kind: input, shape index: {}]   ;;  %s5673_s23 = inlined_call_operand.vmem [shape: f32[64,128], index: 23, kind: output, shape index: {0}]   ;;  %s5674_s24 = inlined_call_operand.hbm [shape: f32[64,128], index: 24, kind: output, shape index: {1}]  }
   0x1   :  { %5698 = sst [smem:[#allocation51_spill]] %s5650_s0 }
   0x2   :  { %5699 = sst [smem:[#allocation52_spill]] %s5651_s1 }
   0x3   :  { %5700 = sst [smem:[#allocation53_spill]] %s5652_s2 }
   0x4   :  { %5701 = sst [smem:[#allocation54_spill]] %s5653_s3 }
   0x5   :  { %5702 = sst [smem:[#allocation55_spill]] %s5654_s4 }
   0x6   :  { %5703 = sst [smem:[#allocation56_spill]] %s5655_s5 }
   0x7   :  { %5704 = sst [smem:[#allocation57_spill]] %s5656_s6 }
   0x8   :  { %5705 = sst [smem:[#allocation58_spill]] %s5657_s7 }
   0x9   :  { %5706 = sst [smem:[#allocation59_spill]] %s5658_s8 }
   0xa   :  { %5707 = sst [smem:[#allocation60_spill]] %s5673_s23 }
   0xb   :  { %5708 = sst [smem:[#allocation61_spill]] %s5674_s24 }
   0xc   :  { %30 = vsyncpa [#allocation3], 0 }
   0xd   :  { %31 = vsyncpa [#allocation6], 0 }
   0xe   :  { %32 = vsyncpa [#allocation9], 0 }
   0xf   :  { %33 = vsyncpa [#allocation12], 0 }
  0x10   :  { %34 = vsyncpa [#allocation15], 0 }
  0x11   :  { %35 = vsyncpa [#allocation18], 0 }
  0x12   :  { %36 = vsyncpa [#allocation21], 0 }
  0x13   :  { %37 = vsyncpa [#allocation24], 0 }
  0x14   :  { %38 = vsyncpa [#allocation27], 0 }
  0x15   :  { %39 = vsyncpa [#allocation4], 0  ;;  %s4519_s5 = smov [#allocation5]   ;;  %s4520_s27 = smov [#allocation8]  }
  0x16   :  { %s64_s26 = sshll.u32 %s4519_s5, 4  ;;  %s85_s28 = sshll.u32 %s4520_s27, 4  ;;  %s65_s26 = int_to_ptr.vmem [resolvable:$true] %s64_s26  ;;  %s4670_s28 = int_to_ptr.vmem [resolvable:$true] %s85_s28 }
  0x17   :  { %s5709_s29 = sld [smem:[#allocation56_spill]] }
  0x1d   :  { %s4125_s0 = scalar_lea.hbm %s5709_s29, 16 }
  0x1e   :  { %p4126_p0 = scmp.ne.s32.totalorder %s5709_s29, %s4125_s0  ;;  %p4129_p1 = scmp.lt.u32.totalorder %s4125_s0, %s5709_s29 }
  0x20   :  { %p4131_p2 = pnand %p4129_p1, %p4126_p0 }
  0x22   :  { %4134 = shalt.err (!%p4131_p2)
}
  0x23   :  { %s4135_s8 = scalar_lea.vmem %s65_s26, 16  ;;  %s4139_s4 = scalar_lea.vmem %s65_s26, 32 }
  0x24   :  { %p4136_p3 = scmp.ne.s32.totalorder %s65_s26, %s4135_s8  ;;  %p4140_p4 = scmp.lt.s32.totalorder %s65_s26, %s65_s26 }
  0x25   :  { %p4141_p5 = scmp.lt.s32.totalorder %s4139_s4, %s4135_s8 }
  0x27   :  { %p4142_p6 = por %p4141_p5, %p4140_p4 }
  0x29   :  { %p4143_p7 = pnand %p4142_p6, %p4136_p3 }
  0x2b   :  { %4146 = shalt.err (!%p4143_p7)
}
  0x2c   :  { %67 = dma.hbm_to_vmem [thread:$0]  %s5709_s29, 16, %s65_s26, [#allocation6]  }
  0x2d   :  { %s5710_s2 = sld [smem:[#allocation59_spill]] }
  0x33   :  { %s4147_s7 = scalar_lea.hbm %s5710_s2, 256 }
  0x34   :  { %p4148_p8 = scmp.ne.s32.totalorder %s5710_s2, %s4147_s7  ;;  %p4151_p9 = scmp.lt.u32.totalorder %s4147_s7, %s5710_s2 }
  0x36   :  { %p4153_p10 = pnand %p4151_p9, %p4148_p8 }
  0x38   :  { %4156 = shalt.err (!%p4153_p10)
}
  0x39   :  { %s4157_s8 = scalar_lea.vmem %s4670_s28, 256  ;;  %p4162_p12 = scmp.lt.s32.totalorder %s4670_s28, %s4670_s28 }
  0x3a   :  { %p4158_p11 = scmp.ne.s32.totalorder %s4670_s28, %s4157_s8  ;;  %p4163_p13 = scmp.lt.s32.totalorder %s4157_s8, %s4157_s8 }
  0x3c   :  { %p4164_p0 = por %p4163_p13, %p4162_p12 }
  0x3e   :  { %p4165_p1 = pnand %p4164_p0, %p4158_p11 }
  0x40   :  { %4168 = shalt.err (!%p4165_p1)
}
  0x41   :  { %s4521_s26 = smov 64   ;;  %s4522_s29 = smov 4  }
  0x42   :  { %91 = dma.hbm_to_vmem [thread:$0]  %s5710_s2, 256, %s4670_s28, [#allocation9], %s4521_s26, %s4521_s26, %s4522_s29  }
  0x43   :  { %s4523_s5 = smov [#allocation11]   ;;  %s4524_s6 = smov [#allocation14]  }
  0x44   :  { %s109_s27 = sshll.u32 %s4523_s5, 4  ;;  %s134_s7 = sshll.u32 %s4524_s6, 4  ;;  %s110_s27 = int_to_ptr.vmem [resolvable:$true] %s109_s27  ;;  %s135_s7 = int_to_ptr.vmem [resolvable:$true] %s134_s7 }
  0x45   :  { %s4169_s3 = scalar_lea.hbm %s5660_s10, 256 }
  0x46   :  { %p4170_p2 = scmp.ne.s32.totalorder %s5660_s10, %s4169_s3  ;;  %p4173_p3 = scmp.lt.u32.totalorder %s4169_s3, %s5660_s10 }
  0x48   :  { %p4175_p4 = pnand %p4173_p3, %p4170_p2 }
  0x4a   :  { %4178 = shalt.err (!%p4175_p4)
}
  0x4b   :  { %s4179_s28 = scalar_lea.vmem %s110_s27, 256  ;;  %p4184_p6 = scmp.lt.s32.totalorder %s110_s27, %s110_s27 }
  0x4c   :  { %p4180_p5 = scmp.ne.s32.totalorder %s110_s27, %s4179_s28  ;;  %p4185_p7 = scmp.lt.s32.totalorder %s4179_s28, %s4179_s28 }
  0x4e   :  { %p4186_p8 = por %p4185_p7, %p4184_p6 }
  0x50   :  { %p4187_p9 = pnand %p4186_p8, %p4180_p5 }
  0x52   :  { %4190 = shalt.err (!%p4187_p9)
}
  0x53   :  { %115 = dma.hbm_to_vmem [thread:$0]  %s5660_s10, 256, %s110_s27, [#allocation12], %s4521_s26, %s4521_s26, %s4522_s29  }
  0x54   :  { %s4191_s23 = scalar_lea.hbm %s5662_s12, 16 }
  0x55   :  { %p4192_p10 = scmp.ne.s32.totalorder %s5662_s12, %s4191_s23  ;;  %p4195_p11 = scmp.lt.u32.totalorder %s4191_s23, %s5662_s12 }
  0x57   :  { %p4197_p12 = pnand %p4195_p11, %p4192_p10 }
  0x59   :  { %4200 = shalt.err (!%p4197_p12)
}
  0x5a   :  { %s4201_s3 = scalar_lea.vmem %s135_s7, 16  ;;  %s4205_s25 = scalar_lea.vmem %s135_s7, 32 }
  0x5b   :  { %p4202_p13 = scmp.ne.s32.totalorder %s135_s7, %s4201_s3  ;;  %p4206_p0 = scmp.lt.s32.totalorder %s135_s7, %s135_s7 }
  0x5c   :  { %p4207_p1 = scmp.lt.s32.totalorder %s4205_s25, %s4201_s3 }
  0x5e   :  { %p4208_p2 = por %p4207_p1, %p4206_p0 }
  0x60   :  { %p4209_p3 = pnand %p4208_p2, %p4202_p13 }
  0x62   :  { %4212 = shalt.err (!%p4209_p3)
}
  0x63   :  { %137 = dma.hbm_to_vmem [thread:$0]  %s5662_s12, 16, %s135_s7, [#allocation15]  }
  0x64   :  { %s4525_s8 = smov [#allocation17]   ;;  %s4526_s2 = smov [#allocation20]  }
  0x65   :  { %s156_s28 = sshll.u32 %s4525_s8, 4  ;;  %s178_s4 = sshll.u32 %s4526_s2, 4  ;;  %s157_s28 = int_to_ptr.vmem [resolvable:$true] %s156_s28  ;;  %s179_s4 = int_to_ptr.vmem [resolvable:$true] %s178_s4 }
  0x66   :  { %s4213_s23 = scalar_lea.hbm %s5664_s14, 16 }
  0x67   :  { %p4214_p4 = scmp.ne.s32.totalorder %s5664_s14, %s4213_s23  ;;  %p4217_p5 = scmp.lt.u32.totalorder %s4213_s23, %s5664_s14 }
  0x69   :  { %p4219_p6 = pnand %p4217_p5, %p4214_p4 }
  0x6b   :  { %4222 = shalt.err (!%p4219_p6)
}
  0x6c   :  { %s4223_s12 = scalar_lea.vmem %s157_s28, 16  ;;  %s4227_s7 = scalar_lea.vmem %s157_s28, 32 }
  0x6d   :  { %p4224_p7 = scmp.ne.s32.totalorder %s157_s28, %s4223_s12  ;;  %p4228_p8 = scmp.lt.s32.totalorder %s157_s28, %s157_s28 }
  0x6e   :  { %p4229_p9 = scmp.lt.s32.totalorder %s4227_s7, %s4223_s12 }
  0x70   :  { %p4230_p10 = por %p4229_p9, %p4228_p8 }
  0x72   :  { %p4231_p11 = pnand %p4230_p10, %p4224_p7 }
  0x74   :  { %4234 = shalt.err (!%p4231_p11)
}
  0x75   :  { %159 = dma.hbm_to_vmem [thread:$0]  %s5664_s14, 16, %s157_s28, [#allocation18]  }
  0x76   :  { %s4235_s8 = scalar_lea.hbm %s5666_s16, 16 }
  0x77   :  { %p4236_p12 = scmp.ne.s32.totalorder %s5666_s16, %s4235_s8  ;;  %p4239_p13 = scmp.lt.u32.totalorder %s4235_s8, %s5666_s16 }
  0x79   :  { %p4241_p0 = pnand %p4239_p13, %p4236_p12 }
  0x7b   :  { %4244 = shalt.err (!%p4241_p0)
}
  0x7c   :  { %s4245_s24 = scalar_lea.vmem %s179_s4, 16  ;;  %s4249_s6 = scalar_lea.vmem %s179_s4, 32 }
  0x7d   :  { %p4246_p1 = scmp.ne.s32.totalorder %s179_s4, %s4245_s24  ;;  %p4250_p2 = scmp.lt.s32.totalorder %s179_s4, %s179_s4 }
  0x7e   :  { %p4251_p3 = scmp.lt.s32.totalorder %s4249_s6, %s4245_s24 }
  0x80   :  { %p4252_p4 = por %p4251_p3, %p4250_p2 }
  0x82   :  { %p4253_p5 = pnand %p4252_p4, %p4246_p1 }
  0x84   :  { %4256 = shalt.err (!%p4253_p5)
}
  0x85   :  { %181 = dma.hbm_to_vmem [thread:$0]  %s5666_s16, 16, %s179_s4, [#allocation21]  }
  0x86   :  { %s4527_s30 = smov [#allocation23]   ;;  %s4528_s12 = smov [#allocation2]  }
  0x87   :  { %s199_s0 = sshll.u32 %s4527_s30, 4  ;;  %s54_s7 = sshll.u32 %s4528_s12, 4  ;;  %s200_s0 = int_to_ptr.vmem [resolvable:$true] %s199_s0  ;;  %s55_s7 = int_to_ptr.vmem [resolvable:$true] %s54_s7 }
  0x88   :  { %s4257_s10 = scalar_lea.hbm %s5668_s18, 1024 }
  0x89   :  { %p4258_p6 = scmp.ne.s32.totalorder %s5668_s18, %s4257_s10  ;;  %p4261_p7 = scmp.lt.u32.totalorder %s4257_s10, %s5668_s18 }
  0x8b   :  { %p4263_p8 = pnand %p4261_p7, %p4258_p6 }
  0x8d   :  { %4266 = shalt.err (!%p4263_p8)
}
  0x8e   :  { %s4267_s16 = scalar_lea.vmem %s200_s0, 1024  ;;  %p4272_p10 = scmp.lt.s32.totalorder %s200_s0, %s200_s0 }
  0x8f   :  { %p4268_p9 = scmp.ne.s32.totalorder %s200_s0, %s4267_s16  ;;  %p4273_p11 = scmp.lt.s32.totalorder %s4267_s16, %s4267_s16 }
  0x91   :  { %p4274_p12 = por %p4273_p11, %p4272_p10 }
  0x93   :  { %p4275_p13 = pnand %p4274_p12, %p4268_p9 }
  0x95   :  { %4278 = shalt.err (!%p4275_p13)
}
  0x96   :  { %205 = dma.hbm_to_vmem [thread:$0]  %s5668_s18, 1024, %s200_s0, [#allocation24], %s4521_s26, %s4521_s26, %s4522_s29  }
  0x97   :  { %s5711_s6 = sld [smem:[#allocation55_spill]] }
  0x9d   :  { %s4279_s14 = scalar_lea.hbm %s5711_s6, 16 }
  0x9e   :  { %p4280_p0 = scmp.ne.s32.totalorder %s5711_s6, %s4279_s14  ;;  %p4283_p1 = scmp.lt.u32.totalorder %s4279_s14, %s5711_s6 }
  0xa0   :  { %p4285_p2 = pnand %p4283_p1, %p4280_p0 }
  0xa2   :  { %4288 = shalt.err (!%p4285_p2)
}
  0xa3   :  { %s4289_s25 = scalar_lea.vmem %s55_s7, 16  ;;  %s4293_s10 = scalar_lea.vmem %s55_s7, 32 }
  0xa4   :  { %p4290_p3 = scmp.ne.s32.totalorder %s55_s7, %s4289_s25  ;;  %p4294_p4 = scmp.lt.s32.totalorder %s55_s7, %s55_s7 }
  0xa5   :  { %p4295_p5 = scmp.lt.s32.totalorder %s4293_s10, %s4289_s25 }
  0xa7   :  { %p4296_p6 = por %p4295_p5, %p4294_p4 }
  0xa9   :  { %p4297_p7 = pnand %p4296_p6, %p4290_p3 }
  0xab   :  { %4300 = shalt.err (!%p4297_p7)
}
  0xac   :  { %57 = dma.hbm_to_vmem [thread:$0]  %s5711_s6, 16, %s55_s7, [#allocation3]  }
  0xad   :  { %s4529_s27 = smov [#allocation7]   ;;  %s4530_s2 = smov [#allocation10]  }
  0xae   :  { %s76_s8 = sshll.u32 %s4529_s27, 4  ;;  %s97_s1 = sshll.u32 %s4530_s2, 4  ;;  %s77_s8 = int_to_ptr.vmem [resolvable:$true] %s76_s8  ;;  %s4782_s1 = int_to_ptr.vmem [resolvable:$true] %s97_s1 }
  0xaf   :  { %s5712_s5 = sld [smem:[#allocation58_spill]] }
  0xb5   :  { %s4301_s23 = scalar_lea.hbm %s5712_s5, 16 }
  0xb6   :  { %p4302_p8 = scmp.ne.s32.totalorder %s5712_s5, %s4301_s23  ;;  %p4305_p9 = scmp.lt.u32.totalorder %s4301_s23, %s5712_s5 }
  0xb8   :  { %p4307_p10 = pnand %p4305_p9, %p4302_p8 }
  0xba   :  { %4310 = shalt.err (!%p4307_p10)
}
  0xbb   :  { %s4311_s7 = scalar_lea.vmem %s77_s8, 16  ;;  %s4315_s6 = scalar_lea.vmem %s77_s8, 32 }
  0xbc   :  { %p4312_p11 = scmp.ne.s32.totalorder %s77_s8, %s4311_s7  ;;  %p4316_p12 = scmp.lt.s32.totalorder %s77_s8, %s77_s8 }
  0xbd   :  { %p4317_p13 = scmp.lt.s32.totalorder %s4315_s6, %s4311_s7 }
  0xbf   :  { %p4318_p0 = por %p4317_p13, %p4316_p12 }
  0xc1   :  { %p4319_p1 = pnand %p4318_p0, %p4312_p11 }
  0xc3   :  { %4322 = shalt.err (!%p4319_p1)
}
  0xc4   :  { %79 = dma.hbm_to_vmem [thread:$0]  %s5712_s5, 16, %s77_s8, [#allocation6]  }
  0xc5   :  { %s4323_s18 = scalar_lea.hbm %s5659_s9, 256 }
  0xc6   :  { %p4324_p2 = scmp.ne.s32.totalorder %s5659_s9, %s4323_s18  ;;  %p4327_p3 = scmp.lt.u32.totalorder %s4323_s18, %s5659_s9 }
  0xc8   :  { %p4329_p4 = pnand %p4327_p3, %p4324_p2 }
  0xca   :  { %4332 = shalt.err (!%p4329_p4)
}
  0xcb   :  { %s4333_s4 = scalar_lea.vmem %s4782_s1, 256  ;;  %p4338_p6 = scmp.lt.s32.totalorder %s4782_s1, %s4782_s1 }
  0xcc   :  { %p4334_p5 = scmp.ne.s32.totalorder %s4782_s1, %s4333_s4  ;;  %p4339_p7 = scmp.lt.s32.totalorder %s4333_s4, %s4333_s4 }
  0xce   :  { %p4340_p8 = por %p4339_p7, %p4338_p6 }
  0xd0   :  { %p4341_p9 = pnand %p4340_p8, %p4334_p5 }
  0xd2   :  { %4344 = shalt.err (!%p4341_p9)
}
  0xd3   :  { %103 = dma.hbm_to_vmem [thread:$0]  %s5659_s9, 256, %s4782_s1, [#allocation9], %s4521_s26, %s4521_s26, %s4522_s29  }
  0xd4   :  { %s4531_s23 = smov [#allocation13]   ;;  %s4345_s30 = scalar_lea.hbm %s5661_s11, 512 }
  0xd5   :  { %s121_s24 = sshll.u32 %s4531_s23, 4  ;;  %p4346_p10 = scmp.ne.s32.totalorder %s5661_s11, %s4345_s30  ;;  %s122_s24 = int_to_ptr.vmem [resolvable:$true] %s121_s24 }
  0xd6   :  { %p4349_p11 = scmp.lt.u32.totalorder %s4345_s30, %s5661_s11 }
  0xd8   :  { %p4351_p12 = pnand %p4349_p11, %p4346_p10 }
  0xda   :  { %4354 = shalt.err (!%p4351_p12)
}
  0xdb   :  { %s4355_s25 = scalar_lea.vmem %s122_s24, 512  ;;  %p4360_p0 = scmp.lt.s32.totalorder %s122_s24, %s122_s24 }
  0xdc   :  { %p4356_p13 = scmp.ne.s32.totalorder %s122_s24, %s4355_s25  ;;  %p4361_p1 = scmp.lt.s32.totalorder %s4355_s25, %s4355_s25 }
  0xde   :  { %p4362_p2 = por %p4361_p1, %p4360_p0 }
  0xe0   :  { %p4363_p3 = pnand %p4362_p2, %p4356_p13 }
  0xe2   :  { %4366 = shalt.err (!%p4363_p3)
}
  0xe3   :  { %s4532_s9 = smov 128   ;;  %s4533_s1 = smov 8  }
  0xe4   :  { %127 = dma.hbm_to_vmem [thread:$0]  %s5661_s11, 512, %s122_s24, [#allocation12], %s4532_s9, %s4532_s9, %s4533_s1  }
  0xe5   :  { %s4534_s0 = smov [#allocation16]   ;;  %s4535_s2 = smov [#allocation19]  }
  0xe6   :  { %s143_s27 = sshll.u32 %s4534_s0, 4  ;;  %s165_s16 = sshll.u32 %s4535_s2, 4  ;;  %s144_s27 = int_to_ptr.vmem [resolvable:$true] %s143_s27  ;;  %s166_s16 = int_to_ptr.vmem [resolvable:$true] %s165_s16 }
  0xe7   :  { %s4367_s5 = scalar_lea.hbm %s5663_s13, 512 }
  0xe8   :  { %p4368_p4 = scmp.ne.s32.totalorder %s5663_s13, %s4367_s5  ;;  %p4371_p5 = scmp.lt.u32.totalorder %s4367_s5, %s5663_s13 }
  0xea   :  { %p4373_p6 = pnand %p4371_p5, %p4368_p4 }
  0xec   :  { %4376 = shalt.err (!%p4373_p6)
}
  0xed   :  { %s4377_s11 = scalar_lea.vmem %s144_s27, 512  ;;  %p4382_p8 = scmp.lt.s32.totalorder %s144_s27, %s144_s27 }
  0xee   :  { %p4378_p7 = scmp.ne.s32.totalorder %s144_s27, %s4377_s11  ;;  %p4383_p9 = scmp.lt.s32.totalorder %s4377_s11, %s4377_s11 }
  0xf0   :  { %p4384_p10 = por %p4383_p9, %p4382_p8 }
  0xf2   :  { %p4385_p11 = pnand %p4384_p10, %p4378_p7 }
  0xf4   :  { %4388 = shalt.err (!%p4385_p11)
}
  0xf5   :  { %149 = dma.hbm_to_vmem [thread:$0]  %s5663_s13, 512, %s144_s27, [#allocation15], %s4532_s9, %s4532_s9, %s4533_s1  }
  0xf6   :  { %s4389_s3 = scalar_lea.hbm %s5665_s15, 256 }
  0xf7   :  { %p4390_p12 = scmp.ne.s32.totalorder %s5665_s15, %s4389_s3  ;;  %p4393_p13 = scmp.lt.u32.totalorder %s4389_s3, %s5665_s15 }
  0xf9   :  { %p4395_p0 = pnand %p4393_p13, %p4390_p12 }
  0xfb   :  { %4398 = shalt.err (!%p4395_p0)
}
  0xfc   :  { %s4399_s2 = scalar_lea.vmem %s166_s16, 256  ;;  %p4404_p2 = scmp.lt.s32.totalorder %s166_s16, %s166_s16 }
  0xfd   :  { %p4400_p1 = scmp.ne.s32.totalorder %s166_s16, %s4399_s2  ;;  %p4405_p3 = scmp.lt.s32.totalorder %s4399_s2, %s4399_s2 }
  0xff   :  { %p4406_p4 = por %p4405_p3, %p4404_p2 }
 0x101   :  { %p4407_p5 = pnand %p4406_p4, %p4400_p1 }
 0x103   :  { %4410 = shalt.err (!%p4407_p5)
}
 0x104   :  { %171 = dma.hbm_to_vmem [thread:$0]  %s5665_s15, 256, %s166_s16, [#allocation18], %s4521_s26, %s4521_s26, %s4522_s29  }
 0x105   :  { %s4536_s4 = smov [#allocation22]   ;;  %s4537_s5 = smov [#allocation25]  }
 0x106   :  { %s187_s8 = sshll.u32 %s4536_s4, 4  ;;  %s211_s23 = sshll.u32 %s4537_s5, 4  ;;  %s188_s8 = int_to_ptr.vmem [resolvable:$true] %s187_s8  ;;  %s212_s23 = int_to_ptr.vmem [resolvable:$true] %s211_s23 }
 0x107   :  { %s4411_s30 = scalar_lea.hbm %s5667_s17, 1024 }
 0x108   :  { %p4412_p6 = scmp.ne.s32.totalorder %s5667_s17, %s4411_s30  ;;  %p4415_p7 = scmp.lt.u32.totalorder %s4411_s30, %s5667_s17 }
 0x10a   :  { %p4417_p8 = pnand %p4415_p7, %p4412_p6 }
 0x10c   :  { %4420 = shalt.err (!%p4417_p8)
}
 0x10d   :  { %s4421_s15 = scalar_lea.vmem %s188_s8, 1024  ;;  %p4426_p10 = scmp.lt.s32.totalorder %s188_s8, %s188_s8 }
 0x10e   :  { %p4422_p9 = scmp.ne.s32.totalorder %s188_s8, %s4421_s15  ;;  %p4427_p11 = scmp.lt.s32.totalorder %s4421_s15, %s4421_s15 }
 0x110   :  { %p4428_p12 = por %p4427_p11, %p4426_p10 }
 0x112   :  { %p4429_p13 = pnand %p4428_p12, %p4422_p9 }
 0x114   :  { %4432 = shalt.err (!%p4429_p13)
}
 0x115   :  { %193 = dma.hbm_to_vmem [thread:$0]  %s5667_s17, 1024, %s188_s8, [#allocation21], %s4521_s26, %s4521_s26, %s4522_s29  }
 0x116   :  { %s4433_s10 = scalar_lea.hbm %s5669_s19, 1024 }
 0x117   :  { %p4434_p0 = scmp.ne.s32.totalorder %s5669_s19, %s4433_s10  ;;  %p4437_p1 = scmp.lt.u32.totalorder %s4433_s10, %s5669_s19 }
 0x119   :  { %p4439_p2 = pnand %p4437_p1, %p4434_p0 }
 0x11b   :  { %4442 = shalt.err (!%p4439_p2)
}
 0x11c   :  { %s4443_s27 = scalar_lea.vmem %s212_s23, 1024  ;;  %p4448_p4 = scmp.lt.s32.totalorder %s212_s23, %s212_s23 }
 0x11d   :  { %p4444_p3 = scmp.ne.s32.totalorder %s212_s23, %s4443_s27  ;;  %p4449_p5 = scmp.lt.s32.totalorder %s4443_s27, %s4443_s27 }
 0x11f   :  { %p4450_p6 = por %p4449_p5, %p4448_p4 }
 0x121   :  { %p4451_p7 = pnand %p4450_p6, %p4444_p3 }
 0x123   :  { %4454 = shalt.err (!%p4451_p7)
}
 0x124   :  { %217 = dma.hbm_to_vmem [thread:$0]  %s5669_s19, 1024, %s212_s23, [#allocation24], %s4521_s26, %s4521_s26, %s4522_s29  }
 0x125   :  { %s4538_s8 = smov [#allocation26]   ;;  %s4455_s30 = scalar_lea.hbm %s5672_s22, 16 }
 0x126   :  { %s228_s5 = sshll.u32 %s4538_s8, 4  ;;  %p4456_p8 = scmp.ne.s32.totalorder %s5672_s22, %s4455_s30  ;;  %s229_s5 = int_to_ptr.vmem [resolvable:$true] %s228_s5 }
 0x127   :  { %p4459_p9 = scmp.lt.u32.totalorder %s4455_s30, %s5672_s22 }
 0x129   :  { %p4461_p10 = pnand %p4459_p9, %p4456_p8 }
 0x12b   :  { %4464 = shalt.err (!%p4461_p10)
}
 0x12c   :  { %s4465_s15 = scalar_lea.vmem %s229_s5, 16  ;;  %s4469_s19 = scalar_lea.vmem %s229_s5, 32 }
 0x12d   :  { %p4466_p11 = scmp.ne.s32.totalorder %s229_s5, %s4465_s15  ;;  %p4470_p12 = scmp.lt.s32.totalorder %s229_s5, %s229_s5 }
 0x12e   :  { %p4471_p13 = scmp.lt.s32.totalorder %s4469_s19, %s4465_s15 }
 0x130   :  { %p4472_p0 = por %p4471_p13, %p4470_p12 }
 0x132   :  { %p4473_p1 = pnand %p4472_p0, %p4466_p11 }
 0x134   :  { %4476 = shalt.err (!%p4473_p1)
}
 0x135   :  { %231 = dma.hbm_to_vmem [thread:$0]  %s5672_s22, 16, %s229_s5, [#allocation27]  }
 0x136   :  { %4499 = dma.done.wait [#allocation3], 16  }
 0x137   :  { %4500 = vsyncadd [#allocation3], 4294967280 }
 0x138   :  { %4501 = dma.done.wait [#allocation6], 32  }
 0x139   :  { %4502 = vsyncadd [#allocation6], 4294967264 }
 0x13a   :  { %4503 = dma.done.wait [#allocation9], 512  }
 0x13b   :  { %4504 = vsyncadd [#allocation9], 4294966784 }
 0x13c   :  { %4505 = dma.done.wait [#allocation12], 768  }
 0x13d   :  { %4506 = vsyncadd [#allocation12], 4294966528 }
 0x13e   :  { %4507 = dma.done.wait [#allocation15], 528  }
 0x13f   :  { %4508 = vsyncadd [#allocation15], 4294966768 }
 0x140   :  { %4509 = dma.done.wait [#allocation18], 272  }
 0x141   :  { %4510 = vsyncadd [#allocation18], 4294967024 }
 0x142   :  { %4511 = dma.done.wait [#allocation21], 1040  }
 0x143   :  { %4512 = vsyncadd [#allocation21], 4294966256 }
 0x144   :  { %4513 = dma.done.wait [#allocation24], 2048  }
 0x145   :  { %4514 = vsyncadd [#allocation24], 4294965248 }
 0x146   :  { %4515 = dma.done.wait [#allocation27], 16  }
 0x147   :  { %4516 = vsyncadd [#allocation27], 4294967280  ;;  %s5713_s12 = sld [smem:[#allocation54_spill]]  ;;  %s5714_s17 = sld [smem:[#allocation51_spill]]  ;;  %v5688_v20 = vmov 0.0|0.0   ;;  %vm4540_vm0 = vmmov 0   ;;  %v554_v46 = vlaneseq }
 0x148   :  { %3847 = vmatprep.subr.bf16.mxu1 %v5688_v20  ;;  %v5687_v21 = vmov 0.0   ;;  %v3189_v22 = vld [vmem:[#allocation5] ss:$0 sm:$0xff]  ;;  %v335_v43 = vld [vmem:[#allocation2] sm:$0x1]  ;;  %s5715_s27 = sld [smem:[#allocation52_spill]] }
 0x149   :  { %3521 = vmatprep.mubr.msk.f32.mxu1 %vm4540_vm0, %v5687_v21  ;;  %v4960_v51 = vshrl.u32 %v554_v46, 7  ;;  %vm598_vm2 = vcmask 523264   ;;  %s5716_s14 = sld [smem:[#allocation57_spill]]  ;;  %s5725_s18 = sld [smem:[#allocation53_spill]] }
 0x14a   :  { %s4543_s4 = smov 96   ;;  %s5738_s5 = sld [smem:[#allocation60_spill]] }
 0x14b   :  { %v5686_v60 = vsub.s32 0, %v4960_v51  ;;  %s4544_s25 = smov [#allocation28]  }
 0x14d   :  { %v3925_v0 = vld [vmem:[%s5713_s12] sm:$0xff]   ;;  %v3926_v1 = vld [vmem:[%s5713_s12 + $0x8] sm:$0xff]   ;;  %v3927_v2 = vld [vmem:[%s5713_s12 + $0x10] sm:$0xff]  }
 0x14e   :  { %3481 = vmatprep.subr.bf16.mxu0 %v3925_v0  ;;  %v3928_v3 = vld [vmem:[%s5713_s12 + $0x18] sm:$0xff]   ;;  %v307_v4 = vld [vmem:[%s5714_s17] sm:$0xff]  ;;  %v308_v5 = vld [vmem:[%s5714_s17 + $0x8] sm:$0xff] }
 0x14f   :  { %3482 = vmatpush3.bf16.msra.mxu0 %v3925_v0  ;;  %v315_v6 = vpack.c.bf16 %v308_v5, %v307_v4  ;;  %v3929_v7 = vld [vmem:[%s5713_s12 + $0x20] sm:$0xff]   ;;  %v3930_v8 = vld [vmem:[%s5713_s12 + $0x28] sm:$0xff]   ;;  %v3931_v9 = vld [vmem:[%s5713_s12 + $0x30] sm:$0xff]  }
 0x150   :  { %3483 = vmatprep.subr.bf16.mxu0 %v3926_v1  ;;  %v3932_v10 = vld [vmem:[%s5713_s12 + $0x38] sm:$0xff]   ;;  %v309_v11 = vld [vmem:[%s5714_s17 + $0x10] sm:$0xff]  ;;  %v311_v13 = vld [vmem:[%s5714_s17 + $0x20] sm:$0xff]  ;;  %s3159_s12 = sshll.u32 %s4544_s25, 4  ;;  %s3160_s12 = int_to_ptr.vmem [resolvable:$true] %s3159_s12 }
 0x151   :  { %3497 = vmatprep.mubr.bf16.mxu0 %v315_v6  ;;  %v310_v12 = vld [vmem:[%s5714_s17 + $0x18] sm:$0xff]  ;;  %v312_v14 = vld [vmem:[%s5714_s17 + $0x28] sm:$0xff]  ;;  %v313_v17 = vld [vmem:[%s5714_s17 + $0x30] sm:$0xff]  ;;  %s4477_s10 = scalar_lea.vmem %s3160_s12, 1024  ;;  %p4482_p3 = scmp.lt.s32.totalorder %s3160_s12, %s3160_s12 }
 0x152   :  { %v316_v15 = vpack.c.bf16 %v310_v12, %v309_v11  ;;  %v317_v16 = vpack.c.bf16 %v312_v14, %v311_v13  ;;  %v314_v18 = vld [vmem:[%s5714_s17 + $0x38] sm:$0xff]  ;;  %v281_v47 = vld [vmem:[%s5715_s27] sm:$0xff]  ;;  %v282_v54 = vld [vmem:[%s5715_s27 + $0x8] sm:$0xff]  ;;  %p4478_p2 = scmp.ne.s32.totalorder %s3160_s12, %s4477_s10  ;;  %p4483_p4 = scmp.lt.s32.totalorder %s4477_s10, %s4477_s10 }
 0x153   :  { %3484 = vmatpush3.bf16.msra.mxu0 %v3926_v1  ;;  %v318_v19 = vpack.c.bf16 %v314_v18, %v313_v17  ;;  %v284_v48 = vunpack.c.1.s8 %v281_v47  ;;  %v283_v52 = vunpack.c.0.s8 %v281_v47  ;;  %v286_v53 = vunpack.c.3.s8 %v281_v47 }
 0x154   :  { %3485 = vmatprep.subr.bf16.mxu0 %v3927_v2  ;;  %v285_v55 = vunpack.c.2.s8 %v281_v47  ;;  %v288_v57 = vunpack.c.1.s8 %v282_v54  ;;  %v287_v0 = vunpack.c.0.s8 %v282_v54  ;;  %v290_v6 = vunpack.c.3.s8 %v282_v54  ;;  %p4484_p5 = por %p4483_p4, %p4482_p3 }
 0x155   :  { %v4965_v56 = vcvt.s32.f32 %v284_v48  ;;  %v4968_v61 = vcvt.s32.f32 %v283_v52  ;;  %v4970_v62 = vcvt.s32.f32 %v286_v53 }
 0x156   :  { %v4972_v63 = vcvt.s32.f32 %v285_v55  ;;  %v4982_v5 = vcvt.s32.f32 %v287_v0  ;;  %p4485_p6 = pnand %p4484_p5, %p4478_p2 }
 0x157   :  { %3486 = vmatpush3.bf16.msra.mxu0 %v3927_v2  ;;  %vm300_vm1 = vcmp.gt.f32.partialorder %v4965_v56, 0.0  ;;  %v4975_v2 = vcvt.s32.f32 %v288_v57  ;;  %vm299_vm3 = vcmp.gt.f32.partialorder %v4968_v61, 0.0  ;;  %vm302_vm4 = vcmp.gt.f32.partialorder %v4970_v62, 0.0 }
 0x158   :  { %3487 = vmatprep.subr.bf16.mxu0 %v3928_v3  ;;  %vm301_vm5 = vcmp.gt.f32.partialorder %v4972_v63, 0.0  ;;  %vm303_vm12 = vcmp.gt.f32.partialorder %v4982_v5, 0.0 }
 0x159   :  { %vm304_vm11 = vcmp.gt.f32.partialorder %v4975_v2, 0.0 }
 0x15b   :  { %3488 = vmatpush3.bf16.msra.mxu0 %v3928_v3 }
 0x15c   :  { %3489 = vmatprep.subr.bf16.mxu0 %v3929_v7 }
 0x15f   :  { %3490 = vmatpush3.bf16.msra.mxu0 %v3929_v7  ;;  %v289_v7 = vunpack.c.2.s8 %v282_v54 }
 0x160   :  { %3491 = vmatprep.subr.bf16.mxu0 %v3930_v8 }
 0x163   :  { %3492 = vmatpush3.bf16.msra.mxu0 %v3930_v8 }
 0x164   :  { %3493 = vmatprep.subr.bf16.mxu0 %v3931_v9 }
 0x167   :  { %3494 = vmatpush3.bf16.msra.mxu0 %v3931_v9 }
 0x168   :  { %3495 = vmatprep.subr.bf16.mxu0 %v3932_v10 }
 0x16b   :  { %3496 = vmatpush3.bf16.msra.mxu0 %v3932_v10 }
 0x16e   :  { %3498 = vmatmul.mubr.bf16.vlgmr.msra.gmra.mrb[0].mxu0 %v316_v15 }
 0x16f   :  { %3501 = vmatprep.mubr.bf16.mxu0 %v317_v16 }
 0x176   :  { %3502 = vmatmul.mubr.bf16.gmra.mrb[4].mxu0 %v318_v19 }
 0x241   :  { %v3499_v23 = vpop.f32.mrb[0].mxu0 }
 0x242   :  { %v419_v24 = vpop.f32.mrb[1].mxu0  ;;  %v462_v25 = vmul.f32 %v3499_v23, %v3189_v22 }
 0x243   :  { %v3500_v26 = vpop.f32.mrb[2].mxu0  ;;  %v460_v27 = vmul.f32 %v3189_v22, %v419_v24 }
 0x244   :  { %v451_v28 = vpack.c.bf16 %v3500_v26, %v3499_v23  ;;  %472 = vadd.xlane.f32.xlu1 %v462_v25  ;;  %v422_v29 = vpop.f32.mrb[3].mxu0  ;;  %v463_v31 = vmul.f32 %v3500_v26, %v3189_v22 }
 0x245   :  { %v450_v30 = vpack.c.bf16 %v422_v29, %v419_v24  ;;  %468 = vadd.xlane.f32.xlu0 %v460_v27  ;;  %v461_v32 = vmul.f32 %v3189_v22, %v422_v29 }
 0x247   :  { %3849 = vmatpush3.bf16.xpose.msra.mxu1 %v450_v30  ;;  %3524 = vmatprep.subr.bf16.mxu0 %v450_v30 }
 0x248   :  { %474 = vadd.xlane.f32.xlu1 %v463_v31  ;;  %3525 = vmatpush3.bf16.msra.mxu0 %v450_v30 }
 0x249   :  { %470 = vadd.xlane.f32.xlu0 %v461_v32  ;;  %v3503_v33 = vpop.f32.mrb[4].mxu0  ;;  %3526 = vmatprep.subr.bf16.mxu0 %v451_v28 }
 0x24a   :  { %v435_v34 = vpop.f32.mrb[5].mxu0  ;;  %3850 = vmatprep.subr.bf16.mxu1 %v5688_v20  ;;  %v466_v41 = vmul.f32 %v3503_v33, %v3189_v22 }
 0x24b   :  { %v3504_v35 = vpop.f32.mrb[6].mxu0  ;;  %v464_v36 = vmul.f32 %v3189_v22, %v435_v34 }
 0x24c   :  { %v453_v37 = vpack.c.bf16 %v3504_v35, %v3503_v33  ;;  %v438_v38 = vpop.f32.mrb[7].mxu0  ;;  %3527 = vmatpush3.bf16.msra.mxu0 %v451_v28  ;;  %v467_v42 = vmul.f32 %v3504_v35, %v3189_v22 }
 0x24d   :  { %v452_v39 = vpack.c.bf16 %v438_v38, %v435_v34  ;;  %476 = vadd.xlane.f32.xlu0 %v464_v36  ;;  %v465_v40 = vmul.f32 %v3189_v22, %v438_v38  ;;  %v4998_v38 = vcvt.s32.f32 %v289_v7 }
 0x24f   :  { %3852 = vmatpush3.bf16.xpose.msra.mxu1 %v451_v28  ;;  %3528 = vmatprep.subr.bf16.mxu0 %v452_v39 }
 0x250   :  { %478 = vadd.xlane.f32.xlu1 %v465_v40  ;;  %3529 = vmatpush3.bf16.msra.mxu0 %v452_v39 }
 0x251   :  { %3530 = vmatprep.subr.bf16.mxu0 %v453_v37  ;;  %480 = vadd.xlane.f32.xlu0 %v466_v41 }
 0x252   :  { %3853 = vmatprep.subr.bf16.mxu1 %v5688_v20 }
 0x254   :  { %482 = vadd.xlane.f32.xlu1 %v467_v42  ;;  %3531 = vmatpush3.bf16.msra.mxu0 %v453_v37 }
 0x257   :  { %3855 = vmatpush3.bf16.xpose.msra.mxu1 %v452_v39 }
 0x258   :  { %3856 = vmatprep.subr.bf16.mxu1 %v5688_v20 }
 0x25f   :  { %3858 = vmatpush3.bf16.xpose.msra.mxu1 %v453_v37  ;;  %v4996_v37 = vcvt.s32.f32 %v290_v6 }
 0x266   :  { %3522 = vmatmul.mubr.f32.vlgmr.msra.gmra.mrb[0].mxu1 %v335_v43 }
 0x2d1   :  { %v473_v44 = vpop.xlane.xlu1 %472 }
 0x2d2   :  { %v469_v45 = vpop.xlane.xlu0 %468 }
 0x2d5   :  { %v475_v49 = vpop.xlane.xlu1 %474 }
 0x2d6   :  { %v471_v50 = vpop.xlane.xlu0 %470 }
 0x2da   :  { %v477_v58 = vpop.xlane.xlu0 %476 }
 0x2dd   :  { %v479_v59 = vpop.xlane.xlu1 %478 }
 0x2de   :  { %v481_v8 = vpop.xlane.xlu0 %480 }
 0x2e1   :  { %v483_v9 = vpop.xlane.xlu1 %482 }
 0x339   :  { %v550_v1 = vpop.f32.mrb[0].mxu1 }
 0x33a   :  { %v557_v3 = vrot.slane %v550_v1, %v5686_v60  ;;  %v3523_v4 = vpop.f32.mrb[1].mxu1 }
 0x33c   :  { %v559_v10 = vadd.f32 %v557_v3, %v471_v50  ;;  %v558_v11 = vadd.f32 %v557_v3, %v469_v45  ;;  %v561_v12 = vadd.f32 %v557_v3, %v475_v49  ;;  %v560_v13 = vadd.f32 %v557_v3, %v473_v44 }
 0x33d   :  { %v563_v14 = vadd.f32 %v557_v3, %v479_v59  ;;  %v562_v15 = vadd.f32 %v557_v3, %v477_v58  ;;  %v565_v16 = vadd.f32 %v557_v3, %v483_v9  ;;  %v564_v17 = vadd.f32 %v557_v3, %v481_v8 }
 0x33e   :  { %vm567_vm6 = vcmp.gt.f32.partialorder %v559_v10, 0.0  ;;  %v575_v18 = vmul.f32 0.2, %v559_v10  ;;  %vm566_vm7 = vcmp.gt.f32.partialorder %v558_v11, 0.0  ;;  %v574_v19 = vmul.f32 0.2, %v558_v11 }
 0x33f   :  { %vm569_vm8 = vcmp.gt.f32.partialorder %v561_v12, 0.0  ;;  %v577_v22 = vmul.f32 0.2, %v561_v12  ;;  %vm568_vm9 = vcmp.gt.f32.partialorder %v560_v13, 0.0  ;;  %v576_v23 = vmul.f32 0.2, %v560_v13 }
 0x340   :  { %v583_v24 = vsel %vm567_vm6, %v559_v10, %v575_v18  ;;  %v582_v25 = vsel %vm566_vm7, %v558_v11, %v574_v19  ;;  %vm571_vm10 = vcmp.gt.f32.partialorder %v563_v14, 0.0  ;;  %v579_v26 = vmul.f32 0.2, %v563_v14 }
 0x341   :  { %v591_v27 = vsel %vm300_vm1, %v583_v24, -1e+30  ;;  %v590_v28 = vsel %vm299_vm3, %v582_v25, -1e+30  ;;  %v585_v29 = vsel %vm569_vm8, %v561_v12, %v577_v22  ;;  %v584_v30 = vsel %vm568_vm9, %v560_v13, %v576_v23 }
 0x342   :  { %v602_v31 = vsel %vm598_vm2, %v591_v27, -inf  ;;  %v599_v32 = vsel %vm598_vm2, %v590_v28, -inf  ;;  %v593_v33 = vsel %vm302_vm4, %v585_v29, -1e+30  ;;  %v592_v34 = vsel %vm301_vm5, %v584_v30, -1e+30 }
 0x343   :  { %603 = vmax.xlane.f32.xlu1 %v602_v31  ;;  %600 = vmax.xlane.f32.xlu0 %v599_v32  ;;  %vm570_vm13 = vcmp.gt.f32.partialorder %v562_v15, 0.0  ;;  %v587_v35 = vsel %vm571_vm10, %v563_v14, %v579_v26  ;;  %v578_v36 = vmul.f32 0.2, %v562_v15  ;;  %vm573_vm14 = vcmp.gt.f32.partialorder %v565_v16, 0.0 }
 0x344   :  { %v581_v39 = vmul.f32 0.2, %v565_v16  ;;  %vm572_vm15 = vcmp.gt.f32.partialorder %v564_v17, 0.0  ;;  %v580_v40 = vmul.f32 0.2, %v564_v17  ;;  %v608_v41 = vsel %vm598_vm2, %v593_v33, -inf }
 0x345   :  { %v605_v42 = vsel %vm598_vm2, %v592_v34, -inf  ;;  %v586_v43 = vsel %vm570_vm13, %v562_v15, %v578_v36  ;;  %v595_v44 = vsel %vm304_vm11, %v587_v35, -1e+30  ;;  %vm306_vm6 = vcmp.gt.f32.partialorder %v4996_v37, 0.0 }
 0x346   :  { %v594_v45 = vsel %vm303_vm12, %v586_v43, -1e+30  ;;  %v589_v46 = vsel %vm573_vm14, %v565_v16, %v581_v39  ;;  %vm305_vm7 = vcmp.gt.f32.partialorder %v4998_v38, 0.0  ;;  %v588_v47 = vsel %vm572_vm15, %v564_v17, %v580_v40 }
 0x347   :  { %609 = vmax.xlane.f32.xlu1 %v608_v41  ;;  %606 = vmax.xlane.f32.xlu0 %v605_v42  ;;  %v614_v48 = vsel %vm598_vm2, %v595_v44, -inf  ;;  %v611_v49 = vsel %vm598_vm2, %v594_v45, -inf  ;;  %v597_v50 = vsel %vm306_vm6, %v589_v46, -1e+30  ;;  %v596_v52 = vsel %vm305_vm7, %v588_v47, -1e+30 }
 0x348   :  { %v620_v53 = vsel %vm598_vm2, %v597_v50, -inf  ;;  %v617_v54 = vsel %vm598_vm2, %v596_v52, -inf  ;;  %vm952_vm8 = vcmask 261120  }
 0x34b   :  { %615 = vmax.xlane.f32.xlu1 %v614_v48  ;;  %612 = vmax.xlane.f32.xlu0 %v611_v49 }
 0x34f   :  { %621 = vmax.xlane.f32.xlu1 %v620_v53  ;;  %618 = vmax.xlane.f32.xlu0 %v617_v54  ;;  %v3935_v53 = vld [vmem:[%s5716_s14 + $0x10] sm:$0xff]   ;;  %v3936_v54 = vld [vmem:[%s5716_s14 + $0x18] sm:$0xff]  }
 0x3d0   :  { %v604_v55 = vpop.xlane.xlu1 %603  ;;  %v601_v57 = vpop.xlane.xlu0 %600 }
 0x3d1   :  { %v624_v58 = vsub.f32 %v591_v27, %v604_v55  ;;  %v623_v59 = vsub.f32 %v590_v28, %v601_v57  ;;  %v3937_v55 = vld [vmem:[%s5716_s14 + $0x20] sm:$0xff]   ;;  %v3938_v57 = vld [vmem:[%s5716_s14 + $0x28] sm:$0xff]  }
 0x3d3   :  { %v633_v0 = vmul.f32 1.442695, %v624_v58  ;;  %v631_v1 = vmul.f32 1.442695, %v623_v59  ;;  %v3939_v58 = vld [vmem:[%s5716_s14 + $0x30] sm:$0xff]  }
 0x3d4   :  { %v610_v3 = vpop.xlane.xlu1 %609  ;;  %v607_v4 = vpop.xlane.xlu0 %606 }
 0x3d5   :  { %3981 = vpow2.f32 %v633_v0  ;;  %v626_v6 = vsub.f32 %v593_v33, %v610_v3  ;;  %v625_v7 = vsub.f32 %v592_v34, %v607_v4 }
 0x3d6   :  { %3983 = vpow2.f32 %v631_v1 }
 0x3d7   :  { %v637_v8 = vmul.f32 1.442695, %v626_v6  ;;  %v635_v9 = vmul.f32 1.442695, %v625_v7 }
 0x3d8   :  { %v616_v10 = vpop.xlane.xlu1 %615  ;;  %v613_v11 = vpop.xlane.xlu0 %612 }
 0x3d9   :  { %3985 = vpow2.f32 %v637_v8  ;;  %v628_v12 = vsub.f32 %v595_v44, %v616_v10  ;;  %v627_v13 = vsub.f32 %v594_v45, %v613_v11 }
 0x3da   :  { %3987 = vpow2.f32 %v635_v9 }
 0x3db   :  { %v641_v14 = vmul.f32 1.442695, %v628_v12  ;;  %v639_v15 = vmul.f32 1.442695, %v627_v13 }
 0x3dc   :  { %v622_v16 = vpop.xlane.xlu1 %621  ;;  %v619_v17 = vpop.xlane.xlu0 %618 }
 0x3dd   :  { %3989 = vpow2.f32 %v641_v14  ;;  %v630_v18 = vsub.f32 %v597_v50, %v622_v16  ;;  %v629_v19 = vsub.f32 %v596_v52, %v619_v17  ;;  %v3933_v50 = vld [vmem:[%s5716_s14] sm:$0xff]   ;;  %v3934_v52 = vld [vmem:[%s5716_s14 + $0x8] sm:$0xff]  }
 0x3de   :  { %3991 = vpow2.f32 %v639_v15  ;;  %3540 = vmatprep.subr.bf16.mxu1 %v3933_v50 }
 0x3df   :  { %v3982_v22 = vpop.eup %3981  ;;  %v645_v23 = vmul.f32 1.442695, %v630_v18  ;;  %v643_v24 = vmul.f32 1.442695, %v629_v19  ;;  %3541 = vmatpush3.bf16.msra.mxu1 %v3933_v50 }
 0x3e0   :  { %v3984_v25 = vpop.eup %3983  ;;  %v5018_v26 = vsel %vm300_vm1, %v3982_v22, 0.0  ;;  %3542 = vmatprep.subr.bf16.mxu1 %v3934_v52 }
 0x3e1   :  { %3993 = vpow2.f32 %v645_v23  ;;  %v658_v27 = vsel %vm598_vm2, %v5018_v26, 0.0  ;;  %v5024_v28 = vsel %vm299_vm3, %v3984_v25, 0.0 }
 0x3e2   :  { %3995 = vpow2.f32 %v643_v24  ;;  %659 = vadd.xlane.f32.xlu1 %v658_v27  ;;  %v655_v29 = vsel %vm598_vm2, %v5024_v28, 0.0 }
 0x3e3   :  { %v3986_v30 = vpop.eup %3985  ;;  %656 = vadd.xlane.f32.xlu0 %v655_v29  ;;  %3543 = vmatpush3.bf16.msra.mxu1 %v3934_v52 }
 0x3e4   :  { %v3988_v31 = vpop.eup %3987  ;;  %v5030_v32 = vsel %vm302_vm4, %v3986_v30, 0.0  ;;  %3544 = vmatprep.subr.bf16.mxu1 %v3935_v53 }
 0x3e5   :  { %v664_v33 = vsel %vm598_vm2, %v5030_v32, 0.0  ;;  %v5036_v34 = vsel %vm301_vm5, %v3988_v31, 0.0 }
 0x3e6   :  { %665 = vadd.xlane.f32.xlu1 %v664_v33  ;;  %v661_v35 = vsel %vm598_vm2, %v5036_v34, 0.0 }
 0x3e7   :  { %v3990_v36 = vpop.eup %3989  ;;  %662 = vadd.xlane.f32.xlu0 %v661_v35  ;;  %3545 = vmatpush3.bf16.msra.mxu1 %v3935_v53 }
 0x3e8   :  { %v3992_v39 = vpop.eup %3991  ;;  %v5042_v40 = vsel %vm304_vm11, %v3990_v36, 0.0  ;;  %3546 = vmatprep.subr.bf16.mxu1 %v3936_v54 }
 0x3e9   :  { %v670_v41 = vsel %vm598_vm2, %v5042_v40, 0.0  ;;  %v5048_v42 = vsel %vm303_vm12, %v3992_v39, 0.0 }
 0x3ea   :  { %671 = vadd.xlane.f32.xlu1 %v670_v41  ;;  %v667_v43 = vsel %vm598_vm2, %v5048_v42, 0.0 }
 0x3eb   :  { %v3994_v44 = vpop.eup %3993  ;;  %668 = vadd.xlane.f32.xlu0 %v667_v43  ;;  %3547 = vmatpush3.bf16.msra.mxu1 %v3936_v54  ;;  %v3941_v43 = vld [vmem:[#allocation8] sm:$0xff]  }
 0x3ec   :  { %v3996_v45 = vpop.eup %3995  ;;  %v5054_v46 = vsel %vm306_vm6, %v3994_v44, 0.0  ;;  %3548 = vmatprep.subr.bf16.mxu1 %v3937_v55  ;;  %3564 = vmatprep.subr.bf16.mxu0 %v3941_v43 }
 0x3ed   :  { %v676_v47 = vsel %vm598_vm2, %v5054_v46, 0.0  ;;  %v5060_v48 = vsel %vm305_vm7, %v3996_v45, 0.0 }
 0x3ee   :  { %677 = vadd.xlane.f32.xlu1 %v676_v47  ;;  %v673_v49 = vsel %vm598_vm2, %v5060_v48, 0.0 }
 0x3ef   :  { %674 = vadd.xlane.f32.xlu0 %v673_v49  ;;  %3549 = vmatpush3.bf16.msra.mxu1 %v3937_v55 }
 0x3f0   :  { %3550 = vmatprep.subr.bf16.mxu1 %v3938_v57 }
 0x3f3   :  { %3551 = vmatpush3.bf16.msra.mxu1 %v3938_v57  ;;  %v3942_v57 = vld [vmem:[#allocation8 + $0x8] sm:$0xff]  }
 0x3f4   :  { %3552 = vmatprep.subr.bf16.mxu1 %v3939_v58 }
 0x3f7   :  { %3553 = vmatpush3.bf16.msra.mxu1 %v3939_v58  ;;  %v3943_v58 = vld [vmem:[#allocation11] sm:$0xff]  }
 0x46f   :  { %v660_v59 = vpop.xlane.xlu1 %659 }
 0x470   :  { %v680_v0 = vadd.f32 1e-16, %v660_v59  ;;  %v657_v1 = vpop.xlane.xlu0 %656  ;;  %v3944_v59 = vld [vmem:[#allocation11 + $0x8] sm:$0xff]  }
 0x471   :  { %v679_v3 = vadd.f32 1e-16, %v657_v1 }
 0x472   :  { %3997 = vrcp.f32 %v680_v0  ;;  %v3945_v0 = vld [vmem:[#allocation10] sm:$0xff]  }
 0x473   :  { %3999 = vrcp.f32 %v679_v3  ;;  %v666_v4 = vpop.xlane.xlu1 %665  ;;  %v3194_v3 = vld [vmem:[#allocation7] ss:$0 sm:$0xff] }
 0x474   :  { %v682_v6 = vadd.f32 1e-16, %v666_v4  ;;  %v663_v7 = vpop.xlane.xlu0 %662 }
 0x475   :  { %v681_v8 = vadd.f32 1e-16, %v663_v7 }
 0x476   :  { %4001 = vrcp.f32 %v682_v6 }
 0x477   :  { %4003 = vrcp.f32 %v681_v8  ;;  %v672_v9 = vpop.xlane.xlu1 %671 }
 0x478   :  { %v684_v10 = vadd.f32 1e-16, %v672_v9  ;;  %v669_v11 = vpop.xlane.xlu0 %668 }
 0x479   :  { %v683_v12 = vadd.f32 1e-16, %v669_v11 }
 0x47a   :  { %4005 = vrcp.f32 %v684_v10 }
 0x47b   :  { %4007 = vrcp.f32 %v683_v12  ;;  %v678_v13 = vpop.xlane.xlu1 %677 }
 0x47c   :  { %v3998_v14 = vpop.eup %3997  ;;  %v686_v15 = vadd.f32 1e-16, %v678_v13  ;;  %v675_v16 = vpop.xlane.xlu0 %674 }
 0x47d   :  { %v4000_v17 = vpop.eup %3999  ;;  %v685_v18 = vadd.f32 1e-16, %v675_v16  ;;  %v696_v19 = vmul.f32 %v3998_v14, %v5018_v26  ;;  %v3946_v14 = vld [vmem:[#allocation10 + $0x8] sm:$0xff]  }
 0x47e   :  { %4009 = vrcp.f32 %v686_v15  ;;  %v695_v22 = vmul.f32 %v4000_v17, %v5024_v28 }
 0x47f   :  { %4011 = vrcp.f32 %v685_v18 }
 0x480   :  { %v4002_v23 = vpop.eup %4001  ;;  %v703_v24 = vpack.c.bf16 %v696_v19, %v695_v22 }
 0x481   :  { %v4004_v25 = vpop.eup %4003  ;;  %v698_v27 = vmul.f32 %v4002_v23, %v5030_v32 }
 0x482   :  { %v697_v29 = vmul.f32 %v4004_v25, %v5036_v34  ;;  %3532 = vmatprep.mubr.msk.bf16.mxu0 %vm598_vm2, %v703_v24 }
 0x484   :  { %v4006_v30 = vpop.eup %4005  ;;  %v704_v31 = vpack.c.bf16 %v698_v27, %v697_v29 }
 0x485   :  { %v4008_v33 = vpop.eup %4007  ;;  %v700_v35 = vmul.f32 %v4006_v30, %v5042_v40  ;;  %v3940_v40 = vld [vmem:[%s5716_s14 + $0x38] sm:$0xff]  }
 0x486   :  { %3533 = vmatmul.mubr.msk.bf16.vlgmr.msra.gmra.mrb[8].mxu0 %vm598_vm2, %v704_v31  ;;  %v699_v26 = vmul.f32 %v4008_v33, %v5048_v42  ;;  %3554 = vmatprep.subr.bf16.mxu1 %v3940_v40 }
 0x487   :  { %3555 = vmatpush3.bf16.msra.mxu1 %v3940_v40  ;;  %3565 = vmatpush3.bf16.msra.mxu0 %v3941_v43 }
 0x488   :  { %v4010_v28 = vpop.eup %4009  ;;  %v705_v36 = vpack.c.bf16 %v700_v35, %v699_v26  ;;  %3566 = vmatprep.subr.bf16.mxu0 %v3942_v57  ;;  %3588 = vmatprep.subr.bf16.mxu1 %v3943_v58 }
 0x489   :  { %v4012_v39 = vpop.eup %4011  ;;  %v702_v41 = vmul.f32 %v4010_v28, %v5054_v46 }
 0x48a   :  { %3536 = vmatprep.mubr.msk.bf16.mxu0 %vm598_vm2, %v705_v36  ;;  %v701_v32 = vmul.f32 %v4012_v39, %v5060_v48 }
 0x48b   :  { %3567 = vmatpush3.bf16.msra.mxu0 %v3942_v57 }
 0x48c   :  { %v706_v34 = vpack.c.bf16 %v702_v41, %v701_v32  ;;  %3576 = vmatprep.subr.bf16.mxu0 %v3945_v0 }
 0x48e   :  { %3537 = vmatmul.mubr.msk.bf16.gmra.mrb[12].mxu0 %vm598_vm2, %v706_v34 }
 0x559   :  { %v3534_v42 = vpop.f32.mrb[8].mxu0 }
 0x55a   :  { %v753_v44 = vpop.f32.mrb[9].mxu0 }
 0x55b   :  { %v3535_v45 = vpop.f32.mrb[10].mxu0 }
 0x55c   :  { %v785_v46 = vpack.c.bf16 %v3535_v45, %v3534_v42  ;;  %v756_v47 = vpop.f32.mrb[11].mxu0 }
 0x55d   :  { %v784_v49 = vpack.c.bf16 %v756_v47, %v753_v44 }
 0x55f   :  { %3556 = vmatprep.mubr.bf16.mxu1 %v784_v49 }
 0x560   :  { %3557 = vmatmul.mubr.bf16.vlgmr.msra.gmra.mrb[4].mxu1 %v785_v46 }
 0x561   :  { %v3538_v48 = vpop.f32.mrb[12].mxu0  ;;  %3589 = vmatpush3.bf16.msra.mxu1 %v3943_v58 }
 0x562   :  { %v769_v50 = vpop.f32.mrb[13].mxu0  ;;  %3590 = vmatprep.subr.bf16.mxu1 %v3944_v59 }
 0x563   :  { %v3539_v52 = vpop.f32.mrb[14].mxu0 }
 0x564   :  { %v787_v53 = vpack.c.bf16 %v3539_v52, %v3538_v48  ;;  %v772_v54 = vpop.f32.mrb[15].mxu0 }
 0x565   :  { %v786_v55 = vpack.c.bf16 %v772_v54, %v769_v50  ;;  %3591 = vmatpush3.bf16.msra.mxu1 %v3944_v59 }
 0x567   :  { %3560 = vmatprep.mubr.bf16.mxu1 %v786_v55 }
 0x568   :  { %3561 = vmatmul.mubr.bf16.gmra.mrb[8].mxu1 %v787_v53 }
 0x633   :  { %v3558_v1 = vpop.f32.mrb[4].mxu1 }
 0x634   :  { %v905_v4 = vpop.f32.mrb[5].mxu1  ;;  %v5106_v11 = vadd.f32 %v3558_v1, %v3194_v3 }
 0x635   :  { %v3559_v6 = vpop.f32.mrb[6].mxu1  ;;  %v5102_v9 = vadd.f32 %v3194_v3, %v905_v4 }
 0x636   :  { %v5100_v7 = vadd.f32 %v3559_v6, %v3194_v3  ;;  %v908_v8 = vpop.f32.mrb[7].mxu1 }
 0x637   :  { %v5104_v10 = vadd.f32 %v3194_v3, %v908_v8 }
 0x638   :  { %v937_v13 = vpack.c.bf16 %v5100_v7, %v5106_v11 }
 0x639   :  { %v936_v12 = vpack.c.bf16 %v5104_v10, %v5102_v9 }
 0x63b   :  { %v3562_v15 = vpop.f32.mrb[8].mxu1  ;;  %3568 = vmatprep.mubr.msk.bf16.mxu0 %vm952_vm8, %v936_v12  ;;  %3592 = vmatprep.mubr.msk.bf16.mxu1 %vm952_vm8, %v936_v12 }
 0x63c   :  { %v921_v16 = vpop.f32.mrb[9].mxu1  ;;  %3569 = vmatmul.mubr.msk.bf16.vlgmr.msra.gmra.mrb[16].mxu0 %vm952_vm8, %v937_v13  ;;  %3593 = vmatmul.mubr.msk.bf16.vlgmr.msra.gmra.mrb[12].mxu1 %vm952_vm8, %v937_v13  ;;  %v5122_v24 = vadd.f32 %v3562_v15, %v3194_v3 }
 0x63d   :  { %3577 = vmatpush3.bf16.msra.mxu0 %v3945_v0  ;;  %v3563_v17 = vpop.f32.mrb[10].mxu1  ;;  %v5118_v22 = vadd.f32 %v3194_v3, %v921_v16 }
 0x63e   :  { %v5116_v18 = vadd.f32 %v3563_v17, %v3194_v3  ;;  %v924_v19 = vpop.f32.mrb[11].mxu1  ;;  %3578 = vmatprep.subr.bf16.mxu0 %v3946_v14 }
 0x63f   :  { %v5120_v23 = vadd.f32 %v3194_v3, %v924_v19 }
 0x640   :  { %v939_v27 = vpack.c.bf16 %v5116_v18, %v5122_v24 }
 0x641   :  { %v938_v25 = vpack.c.bf16 %v5120_v23, %v5118_v22  ;;  %3579 = vmatpush3.bf16.msra.mxu0 %v3946_v14 }
 0x643   :  { %3572 = vmatprep.mubr.msk.bf16.mxu0 %vm952_vm8, %v938_v25  ;;  %3596 = vmatprep.mubr.msk.bf16.mxu1 %vm952_vm8, %v938_v25 }
 0x644   :  { %3573 = vmatmul.mubr.msk.bf16.gmra.mrb[20].mxu0 %vm952_vm8, %v939_v27  ;;  %3597 = vmatmul.mubr.msk.bf16.gmra.mrb[16].mxu1 %vm952_vm8, %v939_v27 }
 0x645   :  { %3580 = vmatprep.mubr.msk.bf16.mxu0 %vm952_vm8, %v936_v12 }
 0x64c   :  { %3581 = vmatmul.mubr.msk.bf16.vlgmr.msra.gmra.mrb[24].mxu0 %vm952_vm8, %v937_v13 }
 0x64d   :  { %3584 = vmatprep.mubr.msk.bf16.mxu0 %vm952_vm8, %v938_v25 }
 0x654   :  { %3585 = vmatmul.mubr.msk.bf16.gmra.mrb[28].mxu0 %vm952_vm8, %v939_v27 }
 0x70f   :  { %v3570_v29 = vpop.f32.mrb[16].mxu0  ;;  %v3594_v30 = vpop.f32.mrb[12].mxu1 }
 0x710   :  { %v999_v31 = vpop.f32.mrb[17].mxu0  ;;  %v1153_v33 = vpop.f32.mrb[13].mxu1 }
 0x711   :  { %v3571_v35 = vpop.f32.mrb[18].mxu0  ;;  %v3595_v26 = vpop.f32.mrb[14].mxu1 }
 0x712   :  { %v1185_v28 = vpack.c.bf16 %v3571_v35, %v3570_v29  ;;  %v1382_v36 = vpack.c.bf16 %v3595_v26, %v3594_v30  ;;  %v1002_v39 = vpop.f32.mrb[19].mxu0  ;;  %v1156_v41 = vpop.f32.mrb[15].mxu1 }
 0x713   :  { %v1184_v32 = vpack.c.bf16 %v1002_v39, %v999_v31  ;;  %v1381_v34 = vpack.c.bf16 %v1156_v41, %v1153_v33 }
 0x715   :  { %3608 = vmatprep.mubr.msk.bf16.mxu0 %vm952_vm8, %v1184_v32  ;;  %3887 = vmatprep.subr.bf16.mxu1 %v1381_v34 }
 0x716   :  { %3891 = vmatpush3.bf16.msra.mxu1 %v1381_v34 }
 0x717   :  { %v3574_v40 = vpop.f32.mrb[20].mxu0  ;;  %v3598_v43 = vpop.f32.mrb[16].mxu1  ;;  %3888 = vmatprep.subr.bf16.mxu1 %v1382_v36 }
 0x718   :  { %v1015_v42 = vpop.f32.mrb[21].mxu0  ;;  %v1169_v44 = vpop.f32.mrb[17].mxu1 }
 0x719   :  { %v3575_v45 = vpop.f32.mrb[22].mxu0  ;;  %v3599_v46 = vpop.f32.mrb[18].mxu1 }
 0x71a   :  { %v1187_v47 = vpack.c.bf16 %v3575_v45, %v3574_v40  ;;  %v1384_v49 = vpack.c.bf16 %v3599_v46, %v3598_v43  ;;  %v1018_v48 = vpop.f32.mrb[23].mxu0  ;;  %v1172_v50 = vpop.f32.mrb[19].mxu1  ;;  %3892 = vmatpush3.bf16.msra.mxu1 %v1382_v36 }
 0x71b   :  { %v1186_v52 = vpack.c.bf16 %v1018_v48, %v1015_v42  ;;  %v1383_v53 = vpack.c.bf16 %v1172_v50, %v1169_v44 }
 0x71d   :  { %3889 = vmatprep.subr.bf16.mxu1 %v1383_v53 }
 0x71e   :  { %3893 = vmatpush3.bf16.msra.mxu1 %v1383_v53 }
 0x71f   :  { %v3582_v54 = vpop.f32.mrb[24].mxu0  ;;  %3890 = vmatprep.subr.bf16.mxu1 %v1384_v49 }
 0x720   :  { %v1076_v55 = vpop.f32.mrb[25].mxu0 }
 0x721   :  { %v3583_v57 = vpop.f32.mrb[26].mxu0 }
 0x722   :  { %v1189_v58 = vpack.c.bf16 %v3583_v57, %v3582_v54  ;;  %v1079_v59 = vpop.f32.mrb[27].mxu0  ;;  %3894 = vmatpush3.bf16.msra.mxu1 %v1384_v49 }
 0x723   :  { %v1188_v0 = vpack.c.bf16 %v1079_v59, %v1076_v55 }
 0x724   :  { %v1208_v14 = vsel %vm952_vm8, %v1189_v58, 0 }
 0x725   :  { %v1205_v1 = vsel %vm952_vm8, %v1188_v0, 0  ;;  %3895 = vmatprep.subr.msk.bf16.mxu0 %vm952_vm8, %v1188_v0 }
 0x726   :  { %3601 = vmatpush3.bf16.xpose.msra.mxu0 %v1205_v1 }
 0x727   :  { %v3586_v3 = vpop.f32.mrb[28].mxu0  ;;  %3896 = vmatprep.subr.msk.bf16.mxu0 %vm952_vm8, %v1189_v58 }
 0x728   :  { %v1092_v4 = vpop.f32.mrb[29].mxu0 }
 0x729   :  { %v3587_v6 = vpop.f32.mrb[30].mxu0 }
 0x72a   :  { %v1191_v8 = vpack.c.bf16 %v3587_v6, %v3586_v3  ;;  %v1095_v12 = vpop.f32.mrb[31].mxu0 }
 0x72b   :  { %v1190_v13 = vpack.c.bf16 %v1095_v12, %v1092_v4 }
 0x72c   :  { %v1214_v16 = vsel %vm952_vm8, %v1191_v8, 0 }
 0x72d   :  { %v1211_v15 = vsel %vm952_vm8, %v1190_v13, 0 }
 0x72e   :  { %3603 = vmatpush3.bf16.xpose.msra.mxu0 %v1208_v14 }
 0x72f   :  { %3897 = vmatprep.subr.msk.bf16.mxu0 %vm952_vm8, %v1190_v13 }
 0x736   :  { %3605 = vmatpush3.bf16.xpose.msra.mxu0 %v1211_v15 }
 0x737   :  { %3898 = vmatprep.subr.msk.bf16.mxu0 %vm952_vm8, %v1191_v8 }
 0x73e   :  { %3607 = vmatpush3.bf16.xpose.msra.mxu0 %v1214_v16 }
 0x73f   :  { %3616 = vmatprep.subr.bf16.mxu0 %v1381_v34 }
 0x745   :  { %3609 = vmatmul.mubr.msk.bf16.vlgmr.msra.gmra.mrb[32].mxu0 %vm952_vm8, %v1185_v28 }
 0x746   :  { %3612 = vmatprep.mubr.msk.bf16.mxu0 %vm952_vm8, %v1186_v52  ;;  %3617 = vmatpush3.bf16.msra.mxu0 %v1381_v34 }
 0x747   :  { %3618 = vmatprep.subr.bf16.mxu0 %v1382_v36 }
 0x74a   :  { %3619 = vmatpush3.bf16.msra.mxu0 %v1382_v36 }
 0x74b   :  { %3620 = vmatprep.subr.bf16.mxu0 %v1383_v53 }
 0x74d   :  { %3613 = vmatmul.mubr.msk.bf16.gmra.mrb[36].mxu0 %vm952_vm8, %v1187_v47 }
 0x74e   :  { %3621 = vmatpush3.bf16.msra.mxu0 %v1383_v53 }
 0x74f   :  { %3622 = vmatprep.subr.bf16.mxu0 %v1384_v49 }
 0x752   :  { %3623 = vmatpush3.bf16.msra.mxu0 %v1384_v49 }
 0x818   :  { %v3610_v17 = vpop.f32.mrb[32].mxu0 }
 0x819   :  { %v1250_v19 = vpop.f32.mrb[33].mxu0  ;;  %v1283_v30 = vmul.f32 0.17677669, %v3610_v17 }
 0x81a   :  { %v1281_v25 = vmul.f32 0.17677669, %v1250_v19  ;;  %v3611_v27 = vpop.f32.mrb[34].mxu0 }
 0x81b   :  { %v1253_v29 = vpop.f32.mrb[35].mxu0  ;;  %v1284_v35 = vmul.f32 0.17677669, %v3611_v27  ;;  %v1295_v36 = vsel %vm598_vm2, %v1283_v30, -inf }
 0x81c   :  { %v1282_v31 = vmul.f32 0.17677669, %v1253_v29  ;;  %v1289_v33 = vsel %vm598_vm2, %v1281_v25, -inf }
 0x81d   :  { %1290 = vmax.xlane.f32.xlu0 %v1289_v33  ;;  %v1298_v34 = vsel %vm598_vm2, %v1284_v35, -inf }
 0x81e   :  { %v1292_v26 = vsel %vm598_vm2, %v1282_v31, -inf }
 0x81f   :  { %1293 = vmax.xlane.f32.xlu1 %v1292_v26 }
 0x820   :  { %v3614_v28 = vpop.f32.mrb[36].mxu0 }
 0x821   :  { %1296 = vmax.xlane.f32.xlu0 %v1295_v36  ;;  %v1266_v39 = vpop.f32.mrb[37].mxu0  ;;  %v1287_v43 = vmul.f32 0.17677669, %v3614_v28 }
 0x822   :  { %v1285_v41 = vmul.f32 0.17677669, %v1266_v39  ;;  %v3615_v32 = vpop.f32.mrb[38].mxu0 }
 0x823   :  { %1299 = vmax.xlane.f32.xlu1 %v1298_v34  ;;  %v1269_v40 = vpop.f32.mrb[39].mxu0  ;;  %v1288_v45 = vmul.f32 0.17677669, %v3615_v32  ;;  %v1307_v47 = vsel %vm598_vm2, %v1287_v43, -inf }
 0x824   :  { %v1286_v42 = vmul.f32 0.17677669, %v1269_v40  ;;  %v1301_v44 = vsel %vm598_vm2, %v1285_v41, -inf }
 0x825   :  { %1302 = vmax.xlane.f32.xlu0 %v1301_v44  ;;  %v1310_v49 = vsel %vm598_vm2, %v1288_v45, -inf }
 0x826   :  { %v1304_v46 = vsel %vm598_vm2, %v1286_v42, -inf }
 0x827   :  { %1305 = vmax.xlane.f32.xlu1 %v1304_v46  ;;  %v1475_v46 = vld [vmem:[#allocation13 + $0x8] sm:$0xff] }
 0x829   :  { %1308 = vmax.xlane.f32.xlu0 %v1307_v47 }
 0x82b   :  { %1311 = vmax.xlane.f32.xlu1 %v1310_v49  ;;  %v1614_v49 = vld [vmem:[#allocation16] sm:$0xff] }
 0x8aa   :  { %v1291_v48 = vpop.xlane.xlu0 %1290 }
 0x8ab   :  { %v1313_v50 = vsub.f32 %v1281_v25, %v1291_v48  ;;  %v1615_v48 = vld [vmem:[#allocation16 + $0x8] sm:$0xff] }
 0x8ac   :  { %v1294_v52 = vpop.xlane.xlu1 %1293 }
 0x8ad   :  { %v1321_v53 = vmul.f32 1.442695, %v1313_v50  ;;  %v1314_v54 = vsub.f32 %v1282_v31, %v1294_v52  ;;  %v3867_v50 = vpack.c.bf16 %v1615_v48, %v1614_v49  ;;  %v3948_v48 = vld [vmem:[#allocation19 + $0x8] sm:$0xff]  }
 0x8ae   :  { %v1297_v55 = vpop.xlane.xlu0 %1296 }
 0x8af   :  { %4013 = vpow2.f32 %v1321_v53  ;;  %v1323_v57 = vmul.f32 1.442695, %v1314_v54  ;;  %v1315_v58 = vsub.f32 %v1283_v30, %v1297_v55  ;;  %3868 = vmatprep.subr.bf16.mxu0 %v3867_v50 }
 0x8b0   :  { %v1300_v59 = vpop.xlane.xlu1 %1299 }
 0x8b1   :  { %4015 = vpow2.f32 %v1323_v57  ;;  %v1325_v0 = vmul.f32 1.442695, %v1315_v58  ;;  %v1316_v1 = vsub.f32 %v1284_v35, %v1300_v59 }
 0x8b2   :  { %v1303_v3 = vpop.xlane.xlu0 %1302 }
 0x8b3   :  { %4017 = vpow2.f32 %v1325_v0  ;;  %v1327_v4 = vmul.f32 1.442695, %v1316_v1  ;;  %v1317_v6 = vsub.f32 %v1285_v41, %v1303_v3 }
 0x8b4   :  { %v1306_v8 = vpop.xlane.xlu1 %1305 }
 0x8b5   :  { %4019 = vpow2.f32 %v1327_v4  ;;  %v1329_v12 = vmul.f32 1.442695, %v1317_v6  ;;  %v1318_v13 = vsub.f32 %v1286_v42, %v1306_v8 }
 0x8b6   :  { %v1309_v14 = vpop.xlane.xlu0 %1308 }
 0x8b7   :  { %4021 = vpow2.f32 %v1329_v12  ;;  %v1331_v15 = vmul.f32 1.442695, %v1318_v13  ;;  %v1319_v16 = vsub.f32 %v1287_v43, %v1309_v14 }
 0x8b8   :  { %v1312_v17 = vpop.xlane.xlu1 %1311 }
 0x8b9   :  { %v4014_v19 = vpop.eup %4013  ;;  %4023 = vpow2.f32 %v1331_v15  ;;  %v1333_v25 = vmul.f32 1.442695, %v1319_v16  ;;  %v1320_v27 = vsub.f32 %v1288_v45, %v1312_v17  ;;  %v1474_v45 = vld [vmem:[#allocation13] sm:$0xff] }
 0x8ba   :  { %v1337_v29 = vsel %vm598_vm2, %v4014_v19, 0.0  ;;  %v3859_v47 = vpack.c.bf16 %v1475_v46, %v1474_v45 }
 0x8bb   :  { %v4016_v30 = vpop.eup %4015  ;;  %4025 = vpow2.f32 %v1333_v25  ;;  %v1335_v31 = vmul.f32 1.442695, %v1320_v27  ;;  %1338 = vadd.xlane.f32.xlu0 %v1337_v29 }
 0x8bc   :  { %v1340_v33 = vsel %vm598_vm2, %v4016_v30, 0.0  ;;  %3860 = vmatprep.subr.bf16.mxu1 %v3859_v47 }
 0x8bd   :  { %v4018_v35 = vpop.eup %4017  ;;  %4027 = vpow2.f32 %v1335_v31  ;;  %1341 = vadd.xlane.f32.xlu1 %v1340_v33 }
 0x8be   :  { %v1343_v26 = vsel %vm598_vm2, %v4018_v35, 0.0 }
 0x8bf   :  { %v4020_v28 = vpop.eup %4019  ;;  %1344 = vadd.xlane.f32.xlu0 %v1343_v26 }
 0x8c0   :  { %v1346_v36 = vsel %vm598_vm2, %v4020_v28, 0.0 }
 0x8c1   :  { %v4022_v39 = vpop.eup %4021  ;;  %1347 = vadd.xlane.f32.xlu1 %v1346_v36 }
 0x8c2   :  { %v1349_v41 = vsel %vm598_vm2, %v4022_v39, 0.0 }
 0x8c3   :  { %v4024_v32 = vpop.eup %4023  ;;  %1350 = vadd.xlane.f32.xlu0 %v1349_v41 }
 0x8c4   :  { %v1352_v34 = vsel %vm598_vm2, %v4024_v32, 0.0 }
 0x8c5   :  { %v4026_v40 = vpop.eup %4025  ;;  %1353 = vadd.xlane.f32.xlu1 %v1352_v34  ;;  %v1616_v34 = vld [vmem:[#allocation16 + $0x10] sm:$0xff] }
 0x8c6   :  { %v1355_v43 = vsel %vm598_vm2, %v4026_v40, 0.0 }
 0x8c7   :  { %v4028_v42 = vpop.eup %4027  ;;  %1356 = vadd.xlane.f32.xlu0 %v1355_v43  ;;  %v1617_v43 = vld [vmem:[#allocation16 + $0x18] sm:$0xff] }
 0x8c8   :  { %v1358_v44 = vsel %vm598_vm2, %v4028_v42, 0.0 }
 0x8c9   :  { %1359 = vadd.xlane.f32.xlu1 %v1358_v44 }
 0x948   :  { %v1339_v52 = vpop.xlane.xlu0 %1338 }
 0x949   :  { %4029 = vrcp.f32 %v1339_v52 }
 0x94a   :  { %v1342_v53 = vpop.xlane.xlu1 %1341 }
 0x94b   :  { %4031 = vrcp.f32 %v1342_v53  ;;  %v3950_v53 = vld [vmem:[#allocation23] sm:$0xff]  }
 0x94c   :  { %v1345_v54 = vpop.xlane.xlu0 %1344 }
 0x94d   :  { %4033 = vrcp.f32 %v1345_v54 }
 0x94e   :  { %v1348_v55 = vpop.xlane.xlu1 %1347 }
 0x94f   :  { %4035 = vrcp.f32 %v1348_v55 }
 0x950   :  { %v1351_v57 = vpop.xlane.xlu0 %1350 }
 0x951   :  { %4037 = vrcp.f32 %v1351_v57 }
 0x952   :  { %v1354_v58 = vpop.xlane.xlu1 %1353 }
 0x953   :  { %v4030_v59 = vpop.eup %4029  ;;  %4039 = vrcp.f32 %v1354_v58 }
 0x954   :  { %v1357_v0 = vpop.xlane.xlu0 %1356  ;;  %v1369_v4 = vmul.f32 %v4030_v59, %v4014_v19  ;;  %v3952_v59 = vld [vmem:[#allocation23 + $0x8] sm:$0xff]  }
 0x955   :  { %v4032_v1 = vpop.eup %4031  ;;  %4041 = vrcp.f32 %v1357_v0 }
 0x956   :  { %v1360_v3 = vpop.xlane.xlu1 %1359  ;;  %v1370_v6 = vmul.f32 %v4032_v1, %v4016_v30  ;;  %v3953_v1 = vld [vmem:[#allocation22 + $0x10] sm:$0xff]  }
 0x957   :  { %v4034_v8 = vpop.eup %4033  ;;  %4043 = vrcp.f32 %v1360_v3  ;;  %v3954_v3 = vld [vmem:[#allocation23 + $0x10] sm:$0xff]  }
 0x958   :  { %v1377_v12 = vpack.c.bf16 %v1370_v6, %v1369_v4  ;;  %v1371_v14 = vmul.f32 %v4034_v8, %v4018_v35  ;;  %v1476_v35 = vld [vmem:[#allocation13 + $0x10] sm:$0xff] }
 0x959   :  { %v4036_v13 = vpop.eup %4035  ;;  %v3955_v4 = vld [vmem:[#allocation22 + $0x18] sm:$0xff]   ;;  %v3957_v8 = vld [vmem:[#allocation22 + $0x20] sm:$0xff]  }
 0x95a   :  { %v1372_v15 = vmul.f32 %v4036_v13, %v4020_v28  ;;  %3624 = vmatprep.mubr.msk.bf16.mxu0 %vm598_vm2, %v1377_v12  ;;  %v1477_v28 = vld [vmem:[#allocation13 + $0x18] sm:$0xff]  ;;  %v3956_v6 = vld [vmem:[#allocation23 + $0x18] sm:$0xff]  }
 0x95b   :  { %v4038_v16 = vpop.eup %4037  ;;  %v3863_v41 = vpack.c.bf16 %v1477_v28, %v1476_v35  ;;  %v3958_v12 = vld [vmem:[#allocation23 + $0x20] sm:$0xff]   ;;  %v3959_v13 = vld [vmem:[#allocation22 + $0x28] sm:$0xff]  }
 0x95c   :  { %v1378_v17 = vpack.c.bf16 %v1372_v15, %v1371_v14  ;;  %v1373_v27 = vmul.f32 %v4038_v16, %v4022_v39  ;;  %v3947_v39 = vld [vmem:[#allocation19] sm:$0xff]  }
 0x95d   :  { %v4040_v25 = vpop.eup %4039  ;;  %v3960_v14 = vld [vmem:[#allocation23 + $0x28] sm:$0xff]   ;;  %v3961_v15 = vld [vmem:[#allocation22 + $0x30] sm:$0xff]  }
 0x95e   :  { %3625 = vmatmul.mubr.msk.bf16.vlgmr.msra.gmra.mrb[40].mxu0 %vm598_vm2, %v1378_v17  ;;  %v1374_v29 = vmul.f32 %v4040_v25, %v4024_v32  ;;  %v3871_v32 = vpack.c.bf16 %v1617_v43, %v1616_v34  ;;  %v3962_v16 = vld [vmem:[#allocation23 + $0x30] sm:$0xff]   ;;  %v3963_v17 = vld [vmem:[#allocation22 + $0x38] sm:$0xff]  }
 0x95f   :  { %v4042_v31 = vpop.eup %4041  ;;  %3870 = vmatpush3.bf16.msra.mxu0 %v3867_v50  ;;  %v3964_v25 = vld [vmem:[#allocation23 + $0x38] sm:$0xff]  }
 0x960   :  { %v1379_v33 = vpack.c.bf16 %v1374_v29, %v1373_v27  ;;  %v1375_v30 = vmul.f32 %v4042_v31, %v4026_v40  ;;  %3872 = vmatprep.subr.bf16.mxu0 %v3871_v32  ;;  %v3949_v40 = vld [vmem:[#allocation22] sm:$0xff]   ;;  %v3238_v29 = vld [vmem:[#allocation17] ss:$0 sm:$0xff] }
 0x961   :  { %v4044_v19 = vpop.eup %4043  ;;  %v5236_v27 = vld [vmem:[#allocation25] sm:$0xff]  }
 0x962   :  { %v1376_v26 = vmul.f32 %v4044_v19, %v4028_v42  ;;  %3628 = vmatprep.mubr.msk.bf16.mxu1 %vm598_vm2, %v1379_v33 }
 0x963   :  { %3874 = vmatpush3.bf16.msra.mxu0 %v3871_v32 }
 0x964   :  { %v1380_v36 = vpack.c.bf16 %v1376_v26, %v1375_v30  ;;  %3684 = vmatprep.subr.bf16.mxu0 %v3949_v40 }
 0x966   :  { %3629 = vmatmul.mubr.msk.bf16.vlgmr.msra.gmra.mrb[20].mxu1 %vm598_vm2, %v1380_v36 }
 0x967   :  { %3862 = vmatpush3.bf16.msra.mxu1 %v3859_v47 }
 0x968   :  { %3864 = vmatprep.subr.bf16.mxu1 %v3863_v41 }
 0x96b   :  { %3866 = vmatpush3.bf16.msra.mxu1 %v3863_v41 }
 0x96c   :  { %3672 = vmatprep.subr.bf16.mxu1 %v3947_v39 }
 0xa31   :  { %v3626_v42 = vpop.f32.mrb[40].mxu0 }
 0xa32   :  { %v1431_v44 = vpop.f32.mrb[41].mxu0  ;;  %v5179_v50 = vadd.f32 %v3626_v42, %v5106_v11 }
 0xa33   :  { %v5169_v45 = vadd.f32 %v1431_v44, %v5102_v9  ;;  %v3627_v46 = vpop.f32.mrb[42].mxu0  ;;  %v3951_v9 = vld [vmem:[#allocation22 + $0x8] sm:$0xff]  }
 0xa34   :  { %v1434_v47 = vpop.f32.mrb[43].mxu0  ;;  %5719 = vst [vmem:[#allocation41_spill] sm:$0xff] %v5179_v50 }
 0xa35   :  { %5717 = vst [vmem:[#allocation39_spill] sm:$0xff] %v5169_v45  ;;  %v5172_v49 = vadd.f32 %v1434_v47, %v5104_v10  ;;  %3640 = vmatprep.mubr.msk.f32.mxu1 %vm952_vm8, %v5169_v45  ;;  %3660 = vmatprep.mubr.msk.f32.mxu0 %vm952_vm8, %v5169_v45  ;;  %v5188_v10 = vadd.f32 %v3627_v46, %v5100_v7 }
 0xa37   :  { %5718 = vst [vmem:[#allocation40_spill] sm:$0xff] %v5172_v49  ;;  %3641 = vmatmul.mubr.msk.f32.vlgmr.msra.gmra.mrb[2].mxu1 %vm952_vm8, %v5172_v49  ;;  %3661 = vmatmul.mubr.msk.f32.vlgmr.msra.gmra.mrb[44].mxu0 %vm952_vm8, %v5172_v49  ;;  %5720 = vst [vmem:[#allocation42_spill] sm:$0xff] %v5188_v10  ;;  %v1471_v58 = vpack.c.bf16 %v5188_v10, %v5179_v50 }
 0xa38   :  { %3673 = vmatpush3.bf16.msra.mxu1 %v3947_v39  ;;  %3643 = vmatprep.mubr.msk.f32.mxu1 %vm952_vm8, %v5179_v50 }
 0xa39   :  { %3663 = vmatprep.mubr.msk.f32.mxu0 %vm952_vm8, %v5179_v50  ;;  %v3630_v52 = vpop.f32.mrb[20].mxu1  ;;  %3674 = vmatprep.subr.bf16.mxu1 %v3948_v48 }
 0xa3a   :  { %v1447_v11 = vpop.f32.mrb[21].mxu1  ;;  %3685 = vmatpush3.bf16.msra.mxu0 %v3949_v40 }
 0xa3b   :  { %v5193_v54 = vadd.f32 %v1447_v11, %v5118_v22  ;;  %v3631_v55 = vpop.f32.mrb[22].mxu1  ;;  %3644 = vmatmul.mubr.msk.f32.gmra.mrb[24].mxu1 %vm952_vm8, %v5188_v10  ;;  %3664 = vmatmul.mubr.msk.f32.gmra.mrb[46].mxu0 %vm952_vm8, %v5188_v10  ;;  %v5207_v22 = vadd.f32 %v3630_v52, %v5122_v24  ;;  %v1470_v24 = vpack.c.bf16 %v5172_v49, %v5169_v45 }
 0xa3c   :  { %v1450_v7 = vpop.f32.mrb[23].mxu1  ;;  %3675 = vmatpush3.bf16.msra.mxu1 %v3948_v48  ;;  %3686 = vmatprep.subr.bf16.mxu0 %v3951_v9 }
 0xa3d   :  { %5721 = vst [vmem:[#allocation43_spill] sm:$0xff] %v5193_v54  ;;  %v5200_v57 = vadd.f32 %v1450_v7, %v5120_v23  ;;  %3646 = vmatprep.mubr.msk.f32.mxu1 %vm952_vm8, %v5193_v54  ;;  %3666 = vmatprep.mubr.msk.f32.mxu0 %vm952_vm8, %v5193_v54  ;;  %5723 = vst [vmem:[#allocation45_spill] sm:$0xff] %v5207_v22  ;;  %v5218_v23 = vadd.f32 %v3631_v55, %v5116_v18 }
 0xa3e   :  { %3708 = vmatprep.subr.bf16.mxu1 %v3950_v53  ;;  %3687 = vmatpush3.bf16.msra.mxu0 %v3951_v9 }
 0xa3f   :  { %5722 = vst [vmem:[#allocation44_spill] sm:$0xff] %v5200_v57  ;;  %3647 = vmatmul.mubr.msk.f32.gmra.mrb[26].mxu1 %vm952_vm8, %v5200_v57  ;;  %3667 = vmatmul.mubr.msk.f32.gmra.mrb[48].mxu0 %vm952_vm8, %v5200_v57  ;;  %5724 = vst [vmem:[#allocation46_spill] sm:$0xff] %v5218_v23  ;;  %v1472_v0 = vpack.c.bf16 %v5200_v57, %v5193_v54  ;;  %v1473_v18 = vpack.c.bf16 %v5218_v23, %v5207_v22 }
 0xa40   :  { %3649 = vmatprep.mubr.msk.f32.mxu1 %vm952_vm8, %v5207_v22  ;;  %3669 = vmatprep.mubr.msk.f32.mxu0 %vm952_vm8, %v5207_v22 }
 0xa41   :  { %3688 = vmatprep.subr.bf16.mxu0 %v3953_v1 }
 0xa42   :  { %3689 = vmatpush3.bf16.msra.mxu0 %v3953_v1 }
 0xa43   :  { %3650 = vmatmul.mubr.msk.f32.gmra.mrb[28].mxu1 %vm952_vm8, %v5218_v23  ;;  %3670 = vmatmul.mubr.msk.f32.gmra.mrb[50].mxu0 %vm952_vm8, %v5218_v23 }
 0xa44   :  { %3676 = vmatprep.mubr.msk.bf16.mxu1 %vm952_vm8, %v1470_v24  ;;  %3690 = vmatprep.subr.bf16.mxu0 %v3955_v4 }
 0xa46   :  { %3691 = vmatpush3.bf16.msra.mxu0 %v3955_v4 }
 0xa47   :  { %3677 = vmatmul.mubr.msk.bf16.vlgmr.msra.gmra.mrb[32].mxu1 %vm952_vm8, %v1471_v58  ;;  %3692 = vmatprep.subr.bf16.mxu0 %v3957_v8 }
 0xa48   :  { %3680 = vmatprep.mubr.msk.bf16.mxu1 %vm952_vm8, %v1472_v0  ;;  %3709 = vmatpush3.bf16.msra.mxu1 %v3950_v53 }
 0xa49   :  { %3710 = vmatprep.subr.bf16.mxu1 %v3952_v59 }
 0xa4a   :  { %3693 = vmatpush3.bf16.msra.mxu0 %v3957_v8 }
 0xa4b   :  { %3694 = vmatprep.subr.bf16.mxu0 %v3959_v13 }
 0xa4c   :  { %3711 = vmatpush3.bf16.msra.mxu1 %v3952_v59 }
 0xa4d   :  { %3712 = vmatprep.subr.bf16.mxu1 %v3954_v3 }
 0xa4e   :  { %3695 = vmatpush3.bf16.msra.mxu0 %v3959_v13 }
 0xa4f   :  { %3681 = vmatmul.mubr.msk.bf16.gmra.mrb[36].mxu1 %vm952_vm8, %v1473_v18  ;;  %3696 = vmatprep.subr.bf16.mxu0 %v3961_v15 }
 0xa50   :  { %3713 = vmatpush3.bf16.msra.mxu1 %v3954_v3 }
 0xa51   :  { %3714 = vmatprep.subr.bf16.mxu1 %v3956_v6 }
 0xa52   :  { %3697 = vmatpush3.bf16.msra.mxu0 %v3961_v15 }
 0xa53   :  { %3698 = vmatprep.subr.bf16.mxu0 %v3963_v17 }
 0xa54   :  { %3715 = vmatpush3.bf16.msra.mxu1 %v3956_v6 }
 0xa55   :  { %3716 = vmatprep.subr.bf16.mxu1 %v3958_v12 }
 0xa56   :  { %3699 = vmatpush3.bf16.msra.mxu0 %v3963_v17 }
 0xa57   :  { %3732 = vmatprep.subr.bf16.mxu0 %v5236_v27 }
 0xa58   :  { %3717 = vmatpush3.bf16.msra.mxu1 %v3958_v12 }
 0xa59   :  { %3718 = vmatprep.subr.bf16.mxu1 %v3960_v14 }
 0xa5c   :  { %3719 = vmatpush3.bf16.msra.mxu1 %v3960_v14 }
 0xa5d   :  { %3720 = vmatprep.subr.bf16.mxu1 %v3962_v16 }
 0xa60   :  { %3721 = vmatpush3.bf16.msra.mxu1 %v3962_v16 }
 0xa61   :  { %3722 = vmatprep.subr.bf16.mxu1 %v3964_v25 }
 0xa64   :  { %3723 = vmatpush3.bf16.msra.mxu1 %v3964_v25 }
 0xb0a   :  { %v5239_v31 = vpop.f32.mrb[2].mxu1  ;;  %v3662_v33 = vpop.f32.mrb[44].mxu0 }
 0xb0b   :  { %v1697_v19 = vadd.f32 %v3662_v33, %v3238_v29  ;;  %v5241_v30 = vpop.f32.mrb[3].mxu1  ;;  %v1691_v26 = vpop.f32.mrb[45].mxu0 }
 0xb0c   :  { %v1692_v36 = vadd.f32 %v3238_v29, %v1691_v26 }
 0xb0d   :  { %v5243_v35 = vadd.f32 1e-07, %v1697_v19 }
 0xb0e   :  { %v5245_v28 = vadd.f32 1e-07, %v1692_v36  ;;  %v5247_v41 = vpop.f32.mrb[24].mxu1  ;;  %v3665_v34 = vpop.f32.mrb[46].mxu0 }
 0xb0f   :  { %v1739_v43 = vmul.f32 0.5, %v5243_v35  ;;  %v1707_v39 = vadd.f32 %v3665_v34, %v3238_v29  ;;  %v5250_v32 = vpop.f32.mrb[25].mxu1  ;;  %v1701_v40 = vpop.f32.mrb[47].mxu0  ;;  %v3247_v34 = vld [vmem:[#allocation20] ss:$0 sm:$0xff] }
 0xb10   :  { %v1738_v42 = vmul.f32 0.5, %v5245_v28  ;;  %v1702_v44 = vadd.f32 %v3238_v29, %v1701_v40 }
 0xb11   :  { %v1748_v46 = vmul.f32 1.442695, %v1739_v43  ;;  %v5253_v47 = vadd.f32 1e-07, %v1707_v39 }
 0xb12   :  { %v1746_v48 = vmul.f32 1.442695, %v1738_v42  ;;  %v5255_v9 = vadd.f32 1e-07, %v1702_v44  ;;  %v5257_v52 = vpop.f32.mrb[26].mxu1  ;;  %v3668_v11 = vpop.f32.mrb[48].mxu0 }
 0xb13   :  { %4045 = vpow2.f32 %v1748_v46  ;;  %v1741_v53 = vmul.f32 0.5, %v5253_v47  ;;  %v1717_v55 = vadd.f32 %v3668_v11, %v3238_v29  ;;  %v5260_v7 = vpop.f32.mrb[27].mxu1  ;;  %v1711_v24 = vpop.f32.mrb[49].mxu0  ;;  %v5279_v44 = vld [vmem:[#allocation14] ss:$0 sm:$0xff] }
 0xb14   :  { %4047 = vpow2.f32 %v1746_v48  ;;  %v1740_v58 = vmul.f32 0.5, %v5255_v9  ;;  %v1712_v59 = vadd.f32 %v3238_v29, %v1711_v24 }
 0xb15   :  { %v1752_v0 = vmul.f32 1.442695, %v1741_v53  ;;  %v5263_v18 = vadd.f32 1e-07, %v1717_v55 }
 0xb16   :  { %v1750_v1 = vmul.f32 1.442695, %v1740_v58  ;;  %v5265_v3 = vadd.f32 1e-07, %v1712_v59  ;;  %v5267_v4 = vpop.f32.mrb[28].mxu1  ;;  %v3671_v6 = vpop.f32.mrb[50].mxu0 }
 0xb17   :  { %4049 = vpow2.f32 %v1752_v0  ;;  %v1743_v8 = vmul.f32 0.5, %v5263_v18  ;;  %v1727_v12 = vadd.f32 %v3671_v6, %v3238_v29  ;;  %v5270_v13 = vpop.f32.mrb[29].mxu1  ;;  %v1721_v14 = vpop.f32.mrb[51].mxu0  ;;  %v1770_v0 = vld [vmem:[%s5725_s18] sm:$0xff] }
 0xb18   :  { %4051 = vpow2.f32 %v1750_v1  ;;  %v1742_v15 = vmul.f32 0.5, %v5265_v3  ;;  %v1722_v16 = vadd.f32 %v3238_v29, %v1721_v14  ;;  %v1771_v29 = vld [vmem:[%s5725_s18 + $0x8] sm:$0xff] }
 0xb19   :  { %v1756_v17 = vmul.f32 1.442695, %v1743_v8  ;;  %v5273_v25 = vadd.f32 1e-07, %v1727_v12  ;;  %v5297_v8 = vadd.f32 %v5239_v31, %v5279_v44  ;;  %v3966_v31 = vld [vmem:[#allocation25 + $0x8] sm:$0xff]  }
 0xb1a   :  { %v1754_v33 = vmul.f32 1.442695, %v1742_v15  ;;  %v5275_v19 = vadd.f32 1e-07, %v1722_v16  ;;  %v3678_v26 = vpop.f32.mrb[32].mxu1  ;;  %v5305_v16 = vadd.f32 %v5279_v44, %v5241_v30 }
 0xb1b   :  { %4053 = vpow2.f32 %v1756_v17  ;;  %v1745_v36 = vmul.f32 0.5, %v5273_v25  ;;  %v1911_v43 = vpop.f32.mrb[33].mxu1  ;;  %v5293_v6 = vadd.f32 %v3678_v26, %v3247_v34  ;;  %v1773_v17 = vld [vmem:[%s5725_s18 + $0x18] sm:$0xff] }
 0xb1c   :  { %4055 = vpow2.f32 %v1754_v33  ;;  %v1744_v39 = vmul.f32 0.5, %v5275_v19  ;;  %v3679_v40 = vpop.f32.mrb[34].mxu1  ;;  %v5286_v58 = vadd.f32 %v3247_v34, %v1911_v43 }
 0xb1d   :  { %v4046_v42 = vpop.eup %4045  ;;  %v1760_v46 = vmul.f32 1.442695, %v1745_v36  ;;  %v5284_v48 = vadd.f32 %v3679_v40, %v3247_v34  ;;  %v1914_v11 = vpop.f32.mrb[35].mxu1  ;;  %v1772_v40 = vld [vmem:[%s5725_s18 + $0x10] sm:$0xff] }
 0xb1e   :  { %v4048_v53 = vpop.eup %4047  ;;  %v1763_v55 = vadd.f32 1e-07, %v4046_v42  ;;  %v1758_v24 = vmul.f32 1.442695, %v1744_v39  ;;  %v5288_v59 = vadd.f32 %v3247_v34, %v1914_v11  ;;  %v5329_v11 = vadd.f32 %v5247_v41, %v5279_v44 }
 0xb1f   :  { %v1762_v1 = vadd.f32 1e-07, %v4048_v53  ;;  %4057 = vpow2.f32 %v1760_v46  ;;  %v5312_v33 = vpack.c.bf16 %v5284_v48, %v5293_v6 }
 0xb20   :  { %v1779_v12 = vmul.f32 %v1771_v29, %v1763_v55  ;;  %4059 = vpow2.f32 %v1758_v24  ;;  %v5301_v14 = vpack.c.bf16 %v5288_v59, %v5286_v58 }
 0xb21   :  { %v4050_v15 = vpop.eup %4049  ;;  %v1778_v26 = vmul.f32 %v1770_v0, %v1762_v1  ;;  %v5334_v0 = vadd.f32 %v5279_v44, %v5250_v32  ;;  %v1775_v1 = vld [vmem:[%s5725_s18 + $0x28] sm:$0xff] }
 0xb22   :  { %v4052_v36 = vpop.eup %4051  ;;  %v1765_v43 = vadd.f32 1e-07, %v4050_v15  ;;  %v3682_v39 = vpop.f32.mrb[36].mxu1  ;;  %3700 = vmatprep.mubr.bf16.mxu0 %v5301_v14  ;;  %3724 = vmatprep.mubr.bf16.mxu1 %v5301_v14  ;;  %v5317_v30 = vadd.f32 %v1779_v12, %v5297_v8 }
 0xb23   :  { %v1764_v42 = vadd.f32 1e-07, %v4052_v36  ;;  %v1927_v29 = vpop.f32.mrb[37].mxu1  ;;  %3701 = vmatmul.mubr.bf16.vlgmr.msra.gmra.mrb[52].mxu0 %v5312_v33  ;;  %3725 = vmatmul.mubr.bf16.vlgmr.msra.gmra.mrb[40].mxu1 %v5312_v33  ;;  %v5325_v46 = vadd.f32 %v1778_v26, %v5305_v16  ;;  %v3967_v26 = vld [vmem:[#allocation25 + $0x10] sm:$0xff]  }
 0xb24   :  { %v1781_v53 = vmul.f32 %v1773_v17, %v1765_v43  ;;  %3733 = vmatpush3.bf16.msra.mxu0 %v5236_v27  ;;  %v3683_v55 = vpop.f32.mrb[38].mxu1  ;;  %v1774_v27 = vld [vmem:[%s5725_s18 + $0x20] sm:$0xff]  ;;  %v5344_v43 = vadd.f32 %v3247_v34, %v1927_v29 }
 0xb25   :  { %v4054_v24 = vpop.eup %4053  ;;  %v5339_v12 = vadd.f32 %v3683_v55, %v3247_v34  ;;  %v1930_v15 = vpop.f32.mrb[39].mxu1  ;;  %3734 = vmatprep.subr.bf16.mxu0 %v3966_v31  ;;  %v1780_v41 = vmul.f32 %v1772_v40, %v1764_v42  ;;  %v5351_v55 = vadd.f32 %v3682_v39, %v3247_v34  ;;  %v5358_v40 = vadd.f32 %v5257_v52, %v5279_v44  ;;  %v3968_v52 = vld [vmem:[#allocation25 + $0x18] sm:$0xff]  }
 0xb26   :  { %v4056_v36 = vpop.eup %4055  ;;  %v1767_v17 = vadd.f32 1e-07, %v4054_v24  ;;  %v5346_v32 = vadd.f32 %v3247_v34, %v1930_v15  ;;  %v5349_v60 = vadd.f32 %v1781_v53, %v5329_v11  ;;  %v5364_v53 = vadd.f32 %v5279_v44, %v5260_v7  ;;  %v1777_v34 = vld [vmem:[%s5725_s18 + $0x38] sm:$0xff] }
 0xb27   :  { %v1766_v21 = vadd.f32 1e-07, %v4056_v36  ;;  %v5354_v20 = vadd.f32 %v1780_v41, %v5334_v0  ;;  %v1945_v39 = vpack.c.bf16 %v5339_v12, %v5351_v55 }
 0xb28   :  { %v1783_v42 = vmul.f32 %v1775_v1, %v1767_v17  ;;  %v1944_v29 = vpack.c.bf16 %v5346_v32, %v5344_v43  ;;  %3735 = vmatpush3.bf16.msra.mxu0 %v3966_v31  ;;  %v1776_v31 = vld [vmem:[%s5725_s18 + $0x30] sm:$0xff]  ;;  %v5382_v17 = vadd.f32 %v5267_v4, %v5279_v44 }
 0xb29   :  { %v4058_v24 = vpop.eup %4057  ;;  %v1782_v15 = vmul.f32 %v1774_v27, %v1766_v21  ;;  %3736 = vmatprep.subr.bf16.mxu0 %v3967_v26  ;;  %v3970_v4 = vld [vmem:[#allocation25 + $0x28] sm:$0xff]  }
 0xb2a   :  { %v4060_v1 = vpop.eup %4059  ;;  %v1769_v41 = vadd.f32 1e-07, %v4058_v24  ;;  %3704 = vmatprep.mubr.bf16.mxu0 %v1944_v29  ;;  %3728 = vmatprep.mubr.bf16.mxu1 %v1944_v29  ;;  %v5375_v7 = vadd.f32 %v1783_v42, %v5358_v40  ;;  %v5387_v24 = vadd.f32 %v5279_v44, %v5270_v13 }
 0xb2b   :  { %v1768_v21 = vadd.f32 1e-07, %v4060_v1  ;;  %3705 = vmatmul.mubr.bf16.gmra.mrb[56].mxu0 %v1945_v39  ;;  %3729 = vmatmul.mubr.bf16.gmra.mrb[44].mxu1 %v1945_v39  ;;  %v5378_v36 = vadd.f32 %v1782_v15, %v5364_v53  ;;  %v3969_v1 = vld [vmem:[#allocation25 + $0x20] sm:$0xff]  }
 0xb2c   :  { %5726 = vst [vmem:[#allocation47_spill] sm:$0xff] %v5375_v7  ;;  %v1785_v27 = vmul.f32 %v1777_v34, %v1769_v41  ;;  %3737 = vmatpush3.bf16.msra.mxu0 %v3967_v26  ;;  %3748 = vmatprep.mubr.bf16.mxu0 %v5301_v14  ;;  %v3971_v26 = vld [vmem:[#allocation25 + $0x30] sm:$0xff]   ;;  %v3972_v14 = vld [vmem:[#allocation25 + $0x38] sm:$0xff]  }
 0xb2d   :  { %5727 = vst [vmem:[#allocation48_spill] sm:$0xff] %v5378_v36  ;;  %v1784_v42 = vmul.f32 %v1776_v31, %v1768_v21  ;;  %3738 = vmatprep.subr.bf16.mxu0 %v3968_v52 }
 0xb2e   :  { %v5390_v23 = vadd.f32 %v1785_v27, %v5382_v17 }
 0xb2f   :  { %v5393_v15 = vadd.f32 %v1784_v42, %v5387_v24 }
 0xb30   :  { %5728 = vst [vmem:[#allocation49_spill] sm:$0xff] %v5390_v23  ;;  %3739 = vmatpush3.bf16.msra.mxu0 %v3968_v52 }
 0xb31   :  { %5729 = vst [vmem:[#allocation50_spill] sm:$0xff] %v5393_v15  ;;  %3740 = vmatprep.subr.bf16.mxu0 %v3969_v1 }
 0xb33   :  { %v5734_v38 = vld [vmem:[#allocation47_spill] sm:$0xff] }
 0xb34   :  { %3741 = vmatpush3.bf16.msra.mxu0 %v3969_v1  ;;  %v5733_v37 = vld [vmem:[#allocation48_spill] sm:$0xff] }
 0xb35   :  { %3742 = vmatprep.subr.bf16.mxu0 %v3970_v4 }
 0xb38   :  { %3743 = vmatpush3.bf16.msra.mxu0 %v3970_v4 }
 0xb39   :  { %3744 = vmatprep.subr.bf16.mxu0 %v3971_v26 }
 0xb3c   :  { %3745 = vmatpush3.bf16.msra.mxu0 %v3971_v26 }
 0xb3d   :  { %3746 = vmatprep.subr.bf16.mxu0 %v3972_v14 }
 0xb40   :  { %3747 = vmatpush3.bf16.msra.mxu0 %v3972_v14 }
 0xb43   :  { %3749 = vmatmul.mubr.bf16.vlgmr.msra.gmra.mrb[60].mxu0 %v5312_v33 }
 0xb44   :  { %3752 = vmatprep.mubr.bf16.mxu0 %v1944_v29 }
 0xb4b   :  { %3753 = vmatmul.mubr.bf16.gmra.mrb[64].mxu0 %v1945_v39 }
 0xbf6   :  { %v3702_v13 = vpop.f32.mrb[52].mxu0  ;;  %v3726_v44 = vpop.f32.mrb[40].mxu1 }
 0xbf7   :  { %v2028_v34 = vpop.f32.mrb[53].mxu0  ;;  %v2141_v41 = vpop.f32.mrb[41].mxu1 }
 0xbf8   :  { %v3703_v52 = vpop.f32.mrb[54].mxu0  ;;  %v3727_v31 = vpop.f32.mrb[42].mxu1 }
 0xbf9   :  { %v2286_v21 = vpack.c.bf16 %v3703_v52, %v3702_v13  ;;  %v2290_v27 = vpack.c.bf16 %v3727_v31, %v3726_v44  ;;  %v2031_v42 = vpop.f32.mrb[55].mxu0  ;;  %v2144_v1 = vpop.f32.mrb[43].mxu1 }
 0xbfa   :  { %v2285_v4 = vpack.c.bf16 %v2031_v42, %v2028_v34  ;;  %v2289_v57 = vpack.c.bf16 %v2144_v1, %v2141_v41 }
 0xbfc   :  { %3756 = vmatprep.subr.bf16.mxu1 %v2289_v57  ;;  %3764 = vmatprep.mubr.bf16.mxu1 %v2285_v4 }
 0xbfd   :  { %3757 = vmatpush3.bf16.xpose.msra.mxu1 %v2289_v57 }
 0xbfe   :  { %v3706_v26 = vpop.f32.mrb[56].mxu0  ;;  %v3730_v14 = vpop.f32.mrb[44].mxu1  ;;  %3758 = vmatprep.subr.bf16.mxu1 %v2290_v27 }
 0xbff   :  { %v2044_v33 = vpop.f32.mrb[57].mxu0  ;;  %v2157_v29 = vpop.f32.mrb[45].mxu1 }
 0xc00   :  { %v3707_v39 = vpop.f32.mrb[58].mxu0  ;;  %v3731_v22 = vpop.f32.mrb[46].mxu1 }
 0xc01   :  { %v2288_v10 = vpack.c.bf16 %v3707_v39, %v3706_v26  ;;  %v2292_v54 = vpack.c.bf16 %v3731_v22, %v3730_v14  ;;  %v2047_v49 = vpop.f32.mrb[59].mxu0  ;;  %v2160_v50 = vpop.f32.mrb[47].mxu1 }
 0xc02   :  { %v2287_v13 = vpack.c.bf16 %v2047_v49, %v2044_v33  ;;  %v2291_v44 = vpack.c.bf16 %v2160_v50, %v2157_v29 }
 0xc05   :  { %3759 = vmatpush3.bf16.xpose.msra.mxu1 %v2290_v27 }
 0xc06   :  { %3760 = vmatprep.subr.bf16.mxu1 %v2291_v44 }
 0xc0d   :  { %3761 = vmatpush3.bf16.xpose.msra.mxu1 %v2291_v44 }
 0xc0e   :  { %3762 = vmatprep.subr.bf16.mxu1 %v2292_v54 }
 0xc15   :  { %3763 = vmatpush3.bf16.xpose.msra.mxu1 %v2292_v54  ;;  %v5730_v54 = vmov 0.0|0.0  }
 0xc16   :  { %v3750_v34 = vpop.f32.mrb[60].mxu0 }
 0xc17   :  { %v2254_v57 = vpop.f32.mrb[61].mxu0 }
 0xc18   :  { %v3751_v41 = vpop.f32.mrb[62].mxu0 }
 0xc19   :  { %v2459_v52 = vpack.c.bf16 %v3751_v41, %v3750_v34  ;;  %v2257_v31 = vpop.f32.mrb[63].mxu0 }
 0xc1a   :  { %v2458_v42 = vpack.c.bf16 %v2257_v31, %v2254_v57 }
 0xc1c   :  { %3772 = vmatprep.subr.bf16.mxu0 %v2458_v42  ;;  %3765 = vmatmul.mubr.bf16.vlgmr.msra.gmra.mrb[48].mxu1 %v2286_v21 }
 0xc1d   :  { %3773 = vmatpush3.bf16.msra.mxu0 %v2458_v42  ;;  %3768 = vmatprep.mubr.bf16.mxu1 %v2287_v13 }
 0xc1e   :  { %v3754_v22 = vpop.f32.mrb[64].mxu0  ;;  %3774 = vmatprep.subr.bf16.mxu0 %v2459_v52 }
 0xc1f   :  { %v2270_v1 = vpop.f32.mrb[65].mxu0 }
 0xc20   :  { %v3755_v49 = vpop.f32.mrb[66].mxu0 }
 0xc21   :  { %v2461_v50 = vpack.c.bf16 %v3755_v49, %v3754_v22  ;;  %v2273_v27 = vpop.f32.mrb[67].mxu0  ;;  %3775 = vmatpush3.bf16.msra.mxu0 %v2459_v52 }
 0xc22   :  { %v2460_v4 = vpack.c.bf16 %v2273_v27, %v2270_v1 }
 0xc24   :  { %3776 = vmatprep.subr.bf16.mxu0 %v2460_v4  ;;  %3769 = vmatmul.mubr.bf16.gmra.mrb[52].mxu1 %v2288_v10 }
 0xc25   :  { %3777 = vmatpush3.bf16.msra.mxu0 %v2460_v4 }
 0xc26   :  { %3778 = vmatprep.subr.bf16.mxu0 %v2461_v50 }
 0xc29   :  { %3779 = vmatpush3.bf16.msra.mxu0 %v2461_v50 }
 0xc2a   :  { %3875 = vmatprep.subr.bf16.mxu0 %v5730_v54 }
 0xcef   :  { %v3766_v26 = vpop.f32.mrb[48].mxu1 }
 0xcf0   :  { %v2327_v14 = vpop.f32.mrb[49].mxu1  ;;  %v2360_v39 = vmul.f32 0.088388346, %v3766_v26 }
 0xcf1   :  { %v2358_v21 = vmul.f32 0.088388346, %v2327_v14  ;;  %v3767_v33 = vpop.f32.mrb[50].mxu1 }
 0xcf2   :  { %v2330_v29 = vpop.f32.mrb[51].mxu1  ;;  %v2361_v34 = vmul.f32 0.088388346, %v3767_v33  ;;  %v2372_v41 = vsel %vm598_vm2, %v2360_v39, -inf }
 0xcf3   :  { %v2359_v13 = vmul.f32 0.088388346, %v2330_v29  ;;  %v2366_v44 = vsel %vm598_vm2, %v2358_v21, -inf }
 0xcf4   :  { %2367 = vmax.xlane.f32.xlu0 %v2366_v44  ;;  %v2375_v22 = vsel %vm598_vm2, %v2361_v34, -inf }
 0xcf5   :  { %v2369_v57 = vsel %vm598_vm2, %v2359_v13, -inf }
 0xcf6   :  { %2370 = vmax.xlane.f32.xlu1 %v2369_v57 }
 0xcf7   :  { %v3770_v10 = vpop.f32.mrb[52].mxu1 }
 0xcf8   :  { %2373 = vmax.xlane.f32.xlu0 %v2372_v41  ;;  %v2343_v52 = vpop.f32.mrb[53].mxu1  ;;  %v2364_v49 = vmul.f32 0.088388346, %v3770_v10 }
 0xcf9   :  { %v2362_v31 = vmul.f32 0.088388346, %v2343_v52  ;;  %v3771_v42 = vpop.f32.mrb[54].mxu1 }
 0xcfa   :  { %2376 = vmax.xlane.f32.xlu1 %v2375_v22  ;;  %v2346_v1 = vpop.f32.mrb[55].mxu1  ;;  %v2365_v4 = vmul.f32 0.088388346, %v3771_v42  ;;  %v2384_v14 = vsel %vm598_vm2, %v2364_v49, -inf }
 0xcfb   :  { %v2363_v50 = vmul.f32 0.088388346, %v2346_v1  ;;  %v2378_v27 = vsel %vm598_vm2, %v2362_v31, -inf }
 0xcfc   :  { %2379 = vmax.xlane.f32.xlu0 %v2378_v27  ;;  %v2387_v33 = vsel %vm598_vm2, %v2365_v4, -inf }
 0xcfd   :  { %v2381_v26 = vsel %vm598_vm2, %v2363_v50, -inf }
 0xcfe   :  { %2382 = vmax.xlane.f32.xlu1 %v2381_v26 }
 0xd00   :  { %2385 = vmax.xlane.f32.xlu0 %v2384_v14 }
 0xd02   :  { %2388 = vmax.xlane.f32.xlu1 %v2387_v33 }
 0xd81   :  { %v2368_v29 = vpop.xlane.xlu0 %2367 }
 0xd82   :  { %v2390_v44 = vsub.f32 %v2358_v21, %v2368_v29 }
 0xd83   :  { %v2371_v57 = vpop.xlane.xlu1 %2370 }
 0xd84   :  { %v2398_v41 = vmul.f32 1.442695, %v2390_v44  ;;  %v2391_v52 = vsub.f32 %v2359_v13, %v2371_v57 }
 0xd85   :  { %v2374_v10 = vpop.xlane.xlu0 %2373 }
 0xd86   :  { %4061 = vpow2.f32 %v2398_v41  ;;  %v2400_v22 = vmul.f32 1.442695, %v2391_v52  ;;  %v2392_v1 = vsub.f32 %v2360_v39, %v2374_v10 }
 0xd87   :  { %v2377_v27 = vpop.xlane.xlu1 %2376 }
 0xd88   :  { %4063 = vpow2.f32 %v2400_v22  ;;  %v2402_v42 = vmul.f32 1.442695, %v2392_v1  ;;  %v2393_v45 = vsub.f32 %v2361_v34, %v2377_v27 }
 0xd89   :  { %v2380_v26 = vpop.xlane.xlu0 %2379 }
 0xd8a   :  { %4065 = vpow2.f32 %v2402_v42  ;;  %v2404_v23 = vmul.f32 1.442695, %v2393_v45  ;;  %v2394_v14 = vsub.f32 %v2362_v31, %v2380_v26 }
 0xd8b   :  { %v2383_v15 = vpop.xlane.xlu1 %2382 }
 0xd8c   :  { %4067 = vpow2.f32 %v2404_v23  ;;  %v2406_v33 = vmul.f32 1.442695, %v2394_v14  ;;  %v2395_v7 = vsub.f32 %v2363_v50, %v2383_v15  ;;  %v3973_v14 = vld [vmem:[%s5670_s20] sm:$0xff]  }
 0xd8d   :  { %v2386_v21 = vpop.xlane.xlu0 %2385  ;;  %3788 = vmatprep.subr.bf16.mxu1 %v3973_v14 }
 0xd8e   :  { %4069 = vpow2.f32 %v2406_v33  ;;  %v2408_v29 = vmul.f32 1.442695, %v2395_v7  ;;  %v2396_v13 = vsub.f32 %v2364_v49, %v2386_v21  ;;  %v3974_v33 = vld [vmem:[%s5670_s20 + $0x8] sm:$0xff]   ;;  %3789 = vmatpush3.bf16.msra.mxu1 %v3973_v14  ;;  %v3975_v21 = vld [vmem:[%s5670_s20 + $0x10] sm:$0xff]  }
 0xd8f   :  { %v2389_v44 = vpop.xlane.xlu1 %2388  ;;  %3790 = vmatprep.subr.bf16.mxu1 %v3974_v33 }
 0xd90   :  { %v5405_v57 = vpop.eup %4061  ;;  %4071 = vpow2.f32 %v2408_v29  ;;  %v2410_v39 = vmul.f32 1.442695, %v2396_v13  ;;  %v2397_v41 = vsub.f32 %v2365_v4, %v2389_v44  ;;  %v3976_v29 = vld [vmem:[%s5670_s20 + $0x18] sm:$0xff]   ;;  %v3977_v13 = vld [vmem:[%s5670_s20 + $0x20] sm:$0xff]   ;;  %v3978_v44 = vld [vmem:[%s5670_s20 + $0x28] sm:$0xff]  }
 0xd91   :  { %v2414_v34 = vsel %vm598_vm2, %v5405_v57, 0.0 }
 0xd92   :  { %v4064_v52 = vpop.eup %4063  ;;  %4073 = vpow2.f32 %v2410_v39  ;;  %v2412_v45 = vmul.f32 1.442695, %v2397_v41  ;;  %2415 = vadd.xlane.f32.xlu0 %v2414_v34  ;;  %3791 = vmatpush3.bf16.msra.mxu1 %v3974_v33 }
 0xd93   :  { %v2417_v23 = vsel %vm598_vm2, %v4064_v52, 0.0  ;;  %3792 = vmatprep.subr.bf16.mxu1 %v3975_v21 }
 0xd94   :  { %v4066_v15 = vpop.eup %4065  ;;  %4075 = vpow2.f32 %v2412_v45  ;;  %2418 = vadd.xlane.f32.xlu1 %v2417_v23 }
 0xd95   :  { %v2420_v7 = vsel %vm598_vm2, %v4066_v15, 0.0 }
 0xd96   :  { %v4068_v31 = vpop.eup %4067  ;;  %2421 = vadd.xlane.f32.xlu0 %v2420_v7  ;;  %3793 = vmatpush3.bf16.msra.mxu1 %v3975_v21 }
 0xd97   :  { %v2423_v49 = vsel %vm598_vm2, %v4068_v31, 0.0  ;;  %3794 = vmatprep.subr.bf16.mxu1 %v3976_v29 }
 0xd98   :  { %v4070_v50 = vpop.eup %4069  ;;  %2424 = vadd.xlane.f32.xlu1 %v2423_v49 }
 0xd99   :  { %v2426_v4 = vsel %vm598_vm2, %v4070_v50, 0.0 }
 0xd9a   :  { %v4072_v10 = vpop.eup %4071  ;;  %2427 = vadd.xlane.f32.xlu0 %v2426_v4  ;;  %3795 = vmatpush3.bf16.msra.mxu1 %v3976_v29 }
 0xd9b   :  { %v2429_v22 = vsel %vm598_vm2, %v4072_v10, 0.0  ;;  %3796 = vmatprep.subr.bf16.mxu1 %v3977_v13 }
 0xd9c   :  { %v4074_v1 = vpop.eup %4073  ;;  %2430 = vadd.xlane.f32.xlu1 %v2429_v22 }
 0xd9d   :  { %v2432_v27 = vsel %vm598_vm2, %v4074_v1, 0.0 }
 0xd9e   :  { %v4076_v42 = vpop.eup %4075  ;;  %2433 = vadd.xlane.f32.xlu0 %v2432_v27  ;;  %3797 = vmatpush3.bf16.msra.mxu1 %v3977_v13 }
 0xd9f   :  { %v2435_v26 = vsel %vm598_vm2, %v4076_v42, 0.0  ;;  %3798 = vmatprep.subr.bf16.mxu1 %v3978_v44 }
 0xda0   :  { %2436 = vadd.xlane.f32.xlu1 %v2435_v26 }
 0xda2   :  { %3799 = vmatpush3.bf16.msra.mxu1 %v3978_v44 }
 0xe1f   :  { %v2416_v39 = vpop.xlane.xlu0 %2415 }
 0xe20   :  { %4077 = vrcp.f32 %v2416_v39 }
 0xe21   :  { %v2419_v41 = vpop.xlane.xlu1 %2418 }
 0xe22   :  { %4079 = vrcp.f32 %v2419_v41 }
 0xe23   :  { %v2422_v34 = vpop.xlane.xlu0 %2421 }
 0xe24   :  { %4081 = vrcp.f32 %v2422_v34 }
 0xe25   :  { %v2425_v45 = vpop.xlane.xlu1 %2424 }
 0xe26   :  { %4083 = vrcp.f32 %v2425_v45 }
 0xe27   :  { %v2428_v23 = vpop.xlane.xlu0 %2427 }
 0xe28   :  { %4085 = vrcp.f32 %v2428_v23 }
 0xe29   :  { %v2431_v7 = vpop.xlane.xlu1 %2430 }
 0xe2a   :  { %v4078_v49 = vpop.eup %4077  ;;  %4087 = vrcp.f32 %v2431_v7 }
 0xe2b   :  { %v2434_v4 = vpop.xlane.xlu0 %2433  ;;  %v2446_v26 = vmul.f32 %v4078_v49, %v5405_v57 }
 0xe2c   :  { %v4080_v22 = vpop.eup %4079  ;;  %4089 = vrcp.f32 %v2434_v4 }
 0xe2d   :  { %v2437_v27 = vpop.xlane.xlu1 %2436  ;;  %v2447_v14 = vmul.f32 %v4080_v22, %v4064_v52 }
 0xe2e   :  { %v4082_v33 = vpop.eup %4081  ;;  %4091 = vrcp.f32 %v2437_v27 }
 0xe2f   :  { %v2454_v21 = vpack.c.bf16 %v2447_v14, %v2446_v26  ;;  %v2448_v13 = vmul.f32 %v4082_v33, %v4066_v15  ;;  %v5731_v15 = vmov 0.0  }
 0xe30   :  { %v4084_v29 = vpop.eup %4083 }
 0xe31   :  { %v2449_v44 = vmul.f32 %v4084_v29, %v4068_v31  ;;  %3780 = vmatprep.mubr.msk.bf16.mxu0 %vm598_vm2, %v2454_v21  ;;  %v3979_v31 = vld [vmem:[%s5670_s20 + $0x30] sm:$0xff]  }
 0xe32   :  { %v4086_v39 = vpop.eup %4085  ;;  %3800 = vmatprep.subr.bf16.mxu1 %v3979_v31 }
 0xe33   :  { %v2455_v41 = vpack.c.bf16 %v2449_v44, %v2448_v13  ;;  %v2450_v45 = vmul.f32 %v4086_v39, %v4070_v50  ;;  %3801 = vmatpush3.bf16.msra.mxu1 %v3979_v31  ;;  %v3980_v50 = vld [vmem:[%s5670_s20 + $0x38] sm:$0xff]  }
 0xe34   :  { %v4088_v34 = vpop.eup %4087  ;;  %3802 = vmatprep.subr.bf16.mxu1 %v3980_v50 }
 0xe35   :  { %3781 = vmatmul.mubr.msk.bf16.vlgmr.msra.gmra.mrb[68].mxu0 %vm598_vm2, %v2455_v41  ;;  %v2451_v23 = vmul.f32 %v4088_v34, %v4072_v10 }
 0xe36   :  { %v4090_v7 = vpop.eup %4089 }
 0xe37   :  { %v2456_v4 = vpack.c.bf16 %v2451_v23, %v2450_v45  ;;  %v2452_v57 = vmul.f32 %v4090_v7, %v4074_v1  ;;  %3803 = vmatpush3.bf16.msra.mxu1 %v3980_v50 }
 0xe38   :  { %v4092_v36 = vpop.eup %4091 }
 0xe39   :  { %3784 = vmatprep.mubr.msk.bf16.mxu0 %vm598_vm2, %v2456_v4  ;;  %v2453_v52 = vmul.f32 %v4092_v36, %v4076_v42 }
 0xe3b   :  { %v2457_v49 = vpack.c.bf16 %v2453_v52, %v2452_v57 }
 0xe3d   :  { %3785 = vmatmul.mubr.msk.bf16.gmra.mrb[72].mxu0 %vm598_vm2, %v2457_v49 }
 0xe3e   :  { %3828 = vmatprep.mubr.msk.f32.mxu0 %vm4540_vm0, %v5731_v15 }
 0xf08   :  { %v3782_v10 = vpop.f32.mrb[68].mxu0 }
 0xf09   :  { %v2508_v36 = vpop.f32.mrb[69].mxu0  ;;  %v2541_v42 = vadd.f32 %v3782_v10, %v5293_v6 }
 0xf0a   :  { %v3783_v1 = vpop.f32.mrb[70].mxu0  ;;  %v2539_v26 = vadd.f32 %v2508_v36, %v5286_v58 }
 0xf0b   :  { %v2542_v22 = vadd.f32 %v3783_v1, %v5284_v48  ;;  %v2511_v27 = vpop.f32.mrb[71].mxu0 }
 0xf0c   :  { %v2540_v14 = vadd.f32 %v2511_v27, %v5288_v59  ;;  %v3290_v59 = vld [vmem:[#allocation26] ss:$0 sm:$0xff] }
 0xf0d   :  { %v2548_v33 = vpack.c.bf16 %v2542_v22, %v2541_v42 }
 0xf0e   :  { %v2547_v21 = vpack.c.bf16 %v2540_v14, %v2539_v26  ;;  %v2567_v14 = vld [vmem:[%s5671_s21] sm:$0x1]  ;;  %s4542_s21 = smov 32  }
 0xf10   :  { %v3786_v29 = vpop.f32.mrb[72].mxu0  ;;  %3804 = vmatprep.mubr.bf16.mxu1 %v2547_v21 }
 0xf11   :  { %v2524_v13 = vpop.f32.mrb[73].mxu0  ;;  %3805 = vmatmul.mubr.bf16.vlgmr.msra.gmra.mrb[56].mxu1 %v2548_v33  ;;  %v2545_v39 = vadd.f32 %v3786_v29, %v5351_v55 }
 0xf12   :  { %v3787_v44 = vpop.f32.mrb[74].mxu0  ;;  %v2543_v6 = vadd.f32 %v2524_v13, %v5344_v43 }
 0xf13   :  { %v2546_v41 = vadd.f32 %v3787_v44, %v5339_v12  ;;  %v2527_v34 = vpop.f32.mrb[75].mxu0 }
 0xf14   :  { %v2544_v48 = vadd.f32 %v2527_v34, %v5346_v32  ;;  %v5732_v34 = vsub.s32 0, %v4960_v51 }
 0xf15   :  { %v2550_v45 = vpack.c.bf16 %v2546_v41, %v2545_v39 }
 0xf16   :  { %v2549_v58 = vpack.c.bf16 %v2544_v48, %v2543_v6 }
 0xf18   :  { %3808 = vmatprep.mubr.bf16.mxu1 %v2549_v58 }
 0xf19   :  { %3809 = vmatmul.mubr.bf16.gmra.mrb[60].mxu1 %v2550_v45 }
 0xfe4   :  { %v3806_v23 = vpop.f32.mrb[56].mxu1 }
 0xfe5   :  { %v2651_v7 = vpop.f32.mrb[57].mxu1  ;;  %v2694_v12 = vmul.f32 %v3806_v23, %v3290_v59 }
 0xfe6   :  { %v3807_v4 = vpop.f32.mrb[58].mxu1  ;;  %v2692_v57 = vmul.f32 %v3290_v59, %v2651_v7 }
 0xfe7   :  { %v2683_v52 = vpack.c.bf16 %v3807_v4, %v3806_v23  ;;  %v2654_v49 = vpop.f32.mrb[59].mxu1  ;;  %v2695_v32 = vmul.f32 %v3807_v4, %v3290_v59 }
 0xfe8   :  { %v2682_v15 = vpack.c.bf16 %v2654_v49, %v2651_v7  ;;  %2700 = vadd.xlane.f32.xlu0 %v2692_v57  ;;  %v2693_v55 = vmul.f32 %v3290_v59, %v2654_v49 }
 0xfea   :  { %2702 = vadd.xlane.f32.xlu1 %v2693_v55  ;;  %3877 = vmatpush3.bf16.xpose.msra.mxu0 %v2682_v15 }
 0xfeb   :  { %3831 = vmatprep.subr.bf16.mxu1 %v2682_v15  ;;  %3878 = vmatprep.subr.bf16.mxu0 %v5730_v54 }
 0xfec   :  { %3832 = vmatpush3.bf16.msra.mxu1 %v2682_v15  ;;  %2704 = vadd.xlane.f32.xlu0 %v2694_v12  ;;  %v3810_v43 = vpop.f32.mrb[60].mxu1 }
 0xfed   :  { %3833 = vmatprep.subr.bf16.mxu1 %v2683_v52  ;;  %v2667_v31 = vpop.f32.mrb[61].mxu1  ;;  %v2698_v27 = vmul.f32 %v3810_v43, %v3290_v59 }
 0xfee   :  { %2706 = vadd.xlane.f32.xlu1 %v2695_v32  ;;  %v3811_v50 = vpop.f32.mrb[62].mxu1  ;;  %v2696_v10 = vmul.f32 %v3290_v59, %v2667_v31 }
 0xfef   :  { %v2685_v36 = vpack.c.bf16 %v3811_v50, %v3810_v43  ;;  %v2670_v1 = vpop.f32.mrb[63].mxu1  ;;  %v2699_v26 = vmul.f32 %v3811_v50, %v3290_v59 }
 0xff0   :  { %v2684_v42 = vpack.c.bf16 %v2670_v1, %v2667_v31  ;;  %3834 = vmatpush3.bf16.msra.mxu1 %v2683_v52  ;;  %2708 = vadd.xlane.f32.xlu0 %v2696_v10  ;;  %v2697_v22 = vmul.f32 %v3290_v59, %v2670_v1 }
 0xff2   :  { %3880 = vmatpush3.bf16.xpose.msra.mxu0 %v2683_v52  ;;  %2710 = vadd.xlane.f32.xlu1 %v2697_v22 }
 0xff3   :  { %3835 = vmatprep.subr.bf16.mxu1 %v2684_v42  ;;  %3881 = vmatprep.subr.bf16.mxu0 %v5730_v54 }
 0xff4   :  { %3836 = vmatpush3.bf16.msra.mxu1 %v2684_v42  ;;  %2712 = vadd.xlane.f32.xlu0 %v2698_v27 }
 0xff5   :  { %3837 = vmatprep.subr.bf16.mxu1 %v2685_v36 }
 0xff6   :  { %2714 = vadd.xlane.f32.xlu1 %v2699_v26 }
 0xff8   :  { %3838 = vmatpush3.bf16.msra.mxu1 %v2685_v36 }
 0xffa   :  { %3883 = vmatpush3.bf16.xpose.msra.mxu0 %v2684_v42 }
 0xffb   :  { %3884 = vmatprep.subr.bf16.mxu0 %v5730_v54 }
0x1002   :  { %3886 = vmatpush3.bf16.xpose.msra.mxu0 %v2685_v36 }
0x1009   :  { %3829 = vmatmul.mubr.f32.vlgmr.msra.gmra.mrb[76].mxu0 %v2567_v14 }
0x1075   :  { %v2701_v33 = vpop.xlane.xlu0 %2700 }
0x1077   :  { %v2703_v21 = vpop.xlane.xlu1 %2702 }
0x1079   :  { %v2705_v29 = vpop.xlane.xlu0 %2704 }
0x107b   :  { %v2707_v13 = vpop.xlane.xlu1 %2706 }
0x107d   :  { %v2709_v44 = vpop.xlane.xlu0 %2708 }
0x107f   :  { %v2711_v39 = vpop.xlane.xlu1 %2710 }
0x1081   :  { %v2713_v45 = vpop.xlane.xlu0 %2712 }
0x1083   :  { %v2715_v58 = vpop.xlane.xlu1 %2714 }
0x10dc   :  { %v2782_v41 = vpop.f32.mrb[76].mxu0 }
0x10dd   :  { %v2789_v6 = vrot.slane %v2782_v41, %v5732_v34  ;;  %v3830_v48 = vpop.f32.mrb[77].mxu0 }
0x10df   :  { %v2791_v54 = vadd.f32 %v2789_v6, %v2703_v21  ;;  %v2790_v59 = vadd.f32 %v2789_v6, %v2701_v33  ;;  %v2793_v23 = vadd.f32 %v2789_v6, %v2707_v13  ;;  %v2792_v7 = vadd.f32 %v2789_v6, %v2705_v29 }
0x10e0   :  { %v2795_v4 = vadd.f32 %v2789_v6, %v2711_v39  ;;  %v2794_v57 = vadd.f32 %v2789_v6, %v2709_v44  ;;  %v2797_v52 = vadd.f32 %v2789_v6, %v2715_v58  ;;  %v2796_v49 = vadd.f32 %v2789_v6, %v2713_v45 }
0x10e1   :  { %vm2799_vm0 = vcmp.gt.f32.partialorder %v2791_v54, 0.0  ;;  %v2807_v15 = vmul.f32 0.2, %v2791_v54  ;;  %vm2798_vm9 = vcmp.gt.f32.partialorder %v2790_v59, 0.0  ;;  %v2806_v55 = vmul.f32 0.2, %v2790_v59 }
0x10e2   :  { %vm2801_vm10 = vcmp.gt.f32.partialorder %v2793_v23, 0.0  ;;  %v2809_v12 = vmul.f32 0.2, %v2793_v23  ;;  %vm2800_vm13 = vcmp.gt.f32.partialorder %v2792_v7, 0.0  ;;  %v2808_v51 = vmul.f32 0.2, %v2792_v7 }
0x10e3   :  { %v2815_v43 = vsel %vm2799_vm0, %v2791_v54, %v2807_v15  ;;  %v2814_v32 = vsel %vm2798_vm9, %v2790_v59, %v2806_v55  ;;  %vm2803_vm14 = vcmp.gt.f32.partialorder %v2795_v4, 0.0  ;;  %v2811_v31 = vmul.f32 0.2, %v2795_v4 }
0x10e4   :  { %v2823_v50 = vsel %vm300_vm1, %v2815_v43, -1e+30  ;;  %v2822_v10 = vsel %vm299_vm3, %v2814_v32, -1e+30  ;;  %v2817_v36 = vsel %vm2801_vm10, %v2793_v23, %v2809_v12  ;;  %v2816_v1 = vsel %vm2800_vm13, %v2792_v7, %v2808_v51 }
0x10e5   :  { %v2833_v42 = vsel %vm598_vm2, %v2823_v50, -inf  ;;  %v2830_v22 = vsel %vm598_vm2, %v2822_v10, -inf  ;;  %v2825_v27 = vsel %vm302_vm4, %v2817_v36, -1e+30  ;;  %v2824_v26 = vsel %vm301_vm5, %v2816_v1, -1e+30 }
0x10e6   :  { %2834 = vmax.xlane.f32.xlu1 %v2833_v42  ;;  %2831 = vmax.xlane.f32.xlu0 %v2830_v22  ;;  %vm2802_vm15 = vcmp.gt.f32.partialorder %v2794_v57, 0.0  ;;  %v2819_v14 = vsel %vm2803_vm14, %v2795_v4, %v2811_v31  ;;  %v2810_v33 = vmul.f32 0.2, %v2794_v57  ;;  %vm2805_vm0 = vcmp.gt.f32.partialorder %v2797_v52, 0.0 }
0x10e7   :  { %v2813_v21 = vmul.f32 0.2, %v2797_v52  ;;  %vm2804_vm9 = vcmp.gt.f32.partialorder %v2796_v49, 0.0  ;;  %v2812_v29 = vmul.f32 0.2, %v2796_v49  ;;  %v2839_v13 = vsel %vm598_vm2, %v2825_v27, -inf }
0x10e8   :  { %v2836_v44 = vsel %vm598_vm2, %v2824_v26, -inf  ;;  %v2818_v39 = vsel %vm2802_vm15, %v2794_v57, %v2810_v33  ;;  %v2827_v41 = vsel %vm304_vm11, %v2819_v14, -1e+30 }
0x10e9   :  { %v2826_v34 = vsel %vm303_vm12, %v2818_v39, -1e+30  ;;  %v2821_v6 = vsel %vm2805_vm0, %v2797_v52, %v2813_v21  ;;  %v2820_v48 = vsel %vm2804_vm9, %v2796_v49, %v2812_v29  ;;  %v2845_v45 = vsel %vm598_vm2, %v2827_v41, -inf }
0x10ea   :  { %2840 = vmax.xlane.f32.xlu1 %v2839_v13  ;;  %2837 = vmax.xlane.f32.xlu0 %v2836_v44  ;;  %v2842_v58 = vsel %vm598_vm2, %v2826_v34, -inf  ;;  %v2829_v54 = vsel %vm306_vm6, %v2821_v6, -1e+30  ;;  %v2828_v59 = vsel %vm305_vm7, %v2820_v48, -1e+30 }
0x10eb   :  { %v2851_v23 = vsel %vm598_vm2, %v2829_v54, -inf  ;;  %v2848_v7 = vsel %vm598_vm2, %v2828_v59, -inf }
0x10ee   :  { %2846 = vmax.xlane.f32.xlu1 %v2845_v45  ;;  %2843 = vmax.xlane.f32.xlu0 %v2842_v58 }
0x10f2   :  { %2852 = vmax.xlane.f32.xlu1 %v2851_v23  ;;  %2849 = vmax.xlane.f32.xlu0 %v2848_v7 }
0x1173   :  { %v2835_v4 = vpop.xlane.xlu1 %2834  ;;  %v2832_v57 = vpop.xlane.xlu0 %2831 }
0x1174   :  { %v2855_v52 = vsub.f32 %v2823_v50, %v2835_v4  ;;  %v2854_v49 = vsub.f32 %v2822_v10, %v2832_v57 }
0x1176   :  { %v2864_v15 = vmul.f32 1.442695, %v2855_v52  ;;  %v2862_v55 = vmul.f32 1.442695, %v2854_v49 }
0x1177   :  { %v2841_v12 = vpop.xlane.xlu1 %2840  ;;  %v2838_v51 = vpop.xlane.xlu0 %2837 }
0x1178   :  { %4093 = vpow2.f32 %v2864_v15  ;;  %v2857_v43 = vsub.f32 %v2825_v27, %v2841_v12  ;;  %v2856_v32 = vsub.f32 %v2824_v26, %v2838_v51 }
0x1179   :  { %4095 = vpow2.f32 %v2862_v55 }
0x117a   :  { %v2868_v31 = vmul.f32 1.442695, %v2857_v43  ;;  %v2866_v36 = vmul.f32 1.442695, %v2856_v32 }
0x117b   :  { %v2847_v1 = vpop.xlane.xlu1 %2846  ;;  %v2844_v42 = vpop.xlane.xlu0 %2843 }
0x117c   :  { %4097 = vpow2.f32 %v2868_v31  ;;  %v2859_v22 = vsub.f32 %v2827_v41, %v2847_v1  ;;  %v2858_v14 = vsub.f32 %v2826_v34, %v2844_v42 }
0x117d   :  { %4099 = vpow2.f32 %v2866_v36 }
0x117e   :  { %v2872_v33 = vmul.f32 1.442695, %v2859_v22  ;;  %v2870_v21 = vmul.f32 1.442695, %v2858_v14 }
0x117f   :  { %v2853_v50 = vpop.xlane.xlu1 %2852  ;;  %v2850_v10 = vpop.xlane.xlu0 %2849 }
0x1180   :  { %4101 = vpow2.f32 %v2872_v33  ;;  %v2861_v29 = vsub.f32 %v2829_v54, %v2853_v50  ;;  %v2860_v13 = vsub.f32 %v2828_v59, %v2850_v10 }
0x1181   :  { %4103 = vpow2.f32 %v2870_v21 }
0x1182   :  { %v4094_v44 = vpop.eup %4093  ;;  %v2876_v27 = vmul.f32 1.442695, %v2861_v29  ;;  %v2874_v26 = vmul.f32 1.442695, %v2860_v13 }
0x1183   :  { %v4096_v39 = vpop.eup %4095  ;;  %v5489_v6 = vsel %vm300_vm1, %v4094_v44, 0.0  ;;  %vm3135_vm1 = vcmask 785408  }
0x1184   :  { %4105 = vpow2.f32 %v2876_v27  ;;  %v2889_v41 = vsel %vm598_vm2, %v5489_v6, 0.0  ;;  %v5495_v34 = vsel %vm299_vm3, %v4096_v39, 0.0 }
0x1185   :  { %4107 = vpow2.f32 %v2874_v26  ;;  %2890 = vadd.xlane.f32.xlu1 %v2889_v41  ;;  %v2886_v48 = vsel %vm598_vm2, %v5495_v34, 0.0 }
0x1186   :  { %v4098_v45 = vpop.eup %4097  ;;  %2887 = vadd.xlane.f32.xlu0 %v2886_v48 }
0x1187   :  { %v4100_v58 = vpop.eup %4099  ;;  %v5501_v56 = vsel %vm302_vm4, %v4098_v45, 0.0 }
0x1188   :  { %v2895_v54 = vsel %vm598_vm2, %v5501_v56, 0.0  ;;  %v5507_v61 = vsel %vm301_vm5, %v4100_v58, 0.0 }
0x1189   :  { %2896 = vadd.xlane.f32.xlu1 %v2895_v54  ;;  %v2892_v59 = vsel %vm598_vm2, %v5507_v61, 0.0 }
0x118a   :  { %v4102_v23 = vpop.eup %4101  ;;  %2893 = vadd.xlane.f32.xlu0 %v2892_v59 }
0x118b   :  { %v4104_v7 = vpop.eup %4103  ;;  %v5513_v4 = vsel %vm304_vm11, %v4102_v23, 0.0 }
0x118c   :  { %v2901_v62 = vsel %vm598_vm2, %v5513_v4, 0.0  ;;  %v5519_v57 = vsel %vm303_vm12, %v4104_v7, 0.0 }
0x118d   :  { %2902 = vadd.xlane.f32.xlu1 %v2901_v62  ;;  %v2898_v63 = vsel %vm598_vm2, %v5519_v57, 0.0 }
0x118e   :  { %v4106_v52 = vpop.eup %4105  ;;  %2899 = vadd.xlane.f32.xlu0 %v2898_v63 }
0x118f   :  { %v4108_v49 = vpop.eup %4107  ;;  %v5525_v15 = vsel %vm306_vm6, %v4106_v52, 0.0 }
0x1190   :  { %v2907_v2 = vsel %vm598_vm2, %v5525_v15, 0.0  ;;  %v5531_v55 = vsel %vm305_vm7, %v4108_v49, 0.0 }
0x1191   :  { %2908 = vadd.xlane.f32.xlu1 %v2907_v2  ;;  %v2904_v5 = vsel %vm598_vm2, %v5531_v55, 0.0 }
0x1192   :  { %2905 = vadd.xlane.f32.xlu0 %v2904_v5 }
0x11a2   :  { %3033 = vrot.lane.b32.xlu1 %v5297_v8, %s4542_s21 }
0x11a6   :  { %3035 = vrot.lane.b32.xlu1 %v5334_v0, %s4542_s21 }
0x11a8   :  { %3031 = vrot.lane.b32.xlu0 %v5305_v16, %s4542_s21 }
0x11aa   :  { %3037 = vrot.lane.b32.xlu1 %v5329_v11, %s4542_s21 }
0x11ac   :  { %3039 = vrot.lane.b32.xlu0 %v5364_v53, %s4542_s21 }
0x11ae   :  { %3041 = vrot.lane.b32.xlu1 %v5358_v40, %s4542_s21 }
0x11b0   :  { %3043 = vrot.lane.b32.xlu0 %v5387_v24, %s4542_s21 }
0x11b2   :  { %3045 = vrot.lane.b32.xlu1 %v5382_v17, %s4542_s21 }
0x11b4   :  { %3063 = vrot.lane.b32.xlu0 %v5245_v28, %s4521_s26  ;;  %v5736_v28 = vld [vmem:[#allocation49_spill] sm:$0xff] }
0x11b6   :  { %3065 = vrot.lane.b32.xlu1 %v5243_v35, %s4521_s26  ;;  %v5735_v35 = vld [vmem:[#allocation50_spill] sm:$0xff] }
0x11b8   :  { %3067 = vrot.lane.b32.xlu0 %v5255_v9, %s4521_s26 }
0x11ba   :  { %3069 = vrot.lane.b32.xlu1 %v5253_v47, %s4521_s26 }
0x11bc   :  { %3071 = vrot.lane.b32.xlu0 %v5265_v3, %s4521_s26 }
0x11be   :  { %3073 = vrot.lane.b32.xlu1 %v5263_v18, %s4521_s26 }
0x11c0   :  { %3075 = vrot.lane.b32.xlu0 %v5275_v19, %s4521_s26 }
0x11c2   :  { %3077 = vrot.lane.b32.xlu1 %v5273_v25, %s4521_s26 }
0x11c4   :  { %3095 = vrot.lane.b32.xlu0 %v5325_v46, %s4543_s4 }
0x11c6   :  { %3097 = vrot.lane.b32.xlu1 %v5317_v30, %s4543_s4 }
0x11c8   :  { %3099 = vrot.lane.b32.xlu0 %v5354_v20, %s4543_s4 }
0x11ca   :  { %3101 = vrot.lane.b32.xlu1 %v5349_v60, %s4543_s4 }
0x11cc   :  { %3103 = vrot.lane.b32.xlu0 %v5733_v37, %s4543_s4 }
0x11ce   :  { %3105 = vrot.lane.b32.xlu1 %v5734_v38, %s4543_s4 }
0x11d0   :  { %3107 = vrot.lane.b32.xlu0 %v5735_v35, %s4543_s4  ;;  %v5740_v35 = vld [vmem:[#allocation40_spill] sm:$0xff] }
0x11d2   :  { %3109 = vrot.lane.b32.xlu1 %v5736_v28, %s4543_s4 }
0x1212   :  { %v2891_v47 = vpop.xlane.xlu1 %2890 }
0x1213   :  { %v2911_v9 = vadd.f32 1e-16, %v2891_v47  ;;  %v2888_v18 = vpop.xlane.xlu0 %2887  ;;  %v5741_v47 = vld [vmem:[#allocation43_spill] sm:$0xff] }
0x1214   :  { %v2910_v3 = vadd.f32 1e-16, %v2888_v18 }
0x1215   :  { %4109 = vrcp.f32 %v2911_v9 }
0x1216   :  { %4111 = vrcp.f32 %v2910_v3  ;;  %v2897_v25 = vpop.xlane.xlu1 %2896 }
0x1217   :  { %v2913_v19 = vadd.f32 1e-16, %v2897_v25  ;;  %v2894_v8 = vpop.xlane.xlu0 %2893 }
0x1218   :  { %v2912_v20 = vadd.f32 1e-16, %v2894_v8 }
0x1219   :  { %4113 = vrcp.f32 %v2913_v19 }
0x121a   :  { %4115 = vrcp.f32 %v2912_v20  ;;  %v2903_v60 = vpop.xlane.xlu1 %2902 }
0x121b   :  { %v2915_v16 = vadd.f32 1e-16, %v2903_v60  ;;  %v2900_v30 = vpop.xlane.xlu0 %2899  ;;  %v5742_v60 = vld [vmem:[#allocation42_spill] sm:$0xff] }
0x121c   :  { %v2914_v46 = vadd.f32 1e-16, %v2900_v30  ;;  %v5743_v30 = vld [vmem:[#allocation45_spill] sm:$0xff] }
0x121d   :  { %4117 = vrcp.f32 %v2915_v16 }
0x121e   :  { %4119 = vrcp.f32 %v2914_v46  ;;  %v2909_v11 = vpop.xlane.xlu1 %2908 }
0x121f   :  { %v4110_v0 = vpop.eup %4109  ;;  %v2917_v40 = vadd.f32 1e-16, %v2909_v11  ;;  %v2906_v53 = vpop.xlane.xlu0 %2905 }
0x1220   :  { %v4112_v17 = vpop.eup %4111  ;;  %v2916_v24 = vadd.f32 1e-16, %v2906_v53  ;;  %v2927_v12 = vmul.f32 %v4110_v0, %v5489_v6 }
0x1221   :  { %4121 = vrcp.f32 %v2917_v40  ;;  %v2926_v51 = vmul.f32 %v4112_v17, %v5495_v34 }
0x1222   :  { %4123 = vrcp.f32 %v2916_v24  ;;  %v3034_v43 = vpop.permute.xlu1 %3033 }
0x1223   :  { %v4114_v32 = vpop.eup %4113  ;;  %v3032_v31 = vpop.permute.xlu0 %3031  ;;  %v2934_v36 = vpack.c.bf16 %v2927_v12, %v2926_v51  ;;  %v3120_v28 = vsel %vm952_vm8, %v5740_v35, %v3034_v43  ;;  %v5744_v12 = vld [vmem:[#allocation44_spill] sm:$0xff] }
0x1224   :  { %v4116_v1 = vpop.eup %4115  ;;  %v2929_v42 = vmul.f32 %v4114_v32, %v5501_v56 }
0x1225   :  { %v2928_v22 = vmul.f32 %v4116_v1, %v5507_v61  ;;  %3839 = vmatprep.mubr.msk.bf16.mxu1 %vm598_vm2, %v2934_v36  ;;  %v5745_v36 = vld [vmem:[#allocation46_spill] sm:$0xff] }
0x1226   :  { %v3036_v14 = vpop.permute.xlu1 %3035 }
0x1227   :  { %v4118_v33 = vpop.eup %4117  ;;  %v2935_v21 = vpack.c.bf16 %v2929_v42, %v2928_v22  ;;  %v3040_v50 = vpop.permute.xlu0 %3039 }
0x1228   :  { %v4120_v10 = vpop.eup %4119  ;;  %v2931_v29 = vmul.f32 %v4118_v33, %v5513_v4  ;;  %v5737_v4 = vld [vmem:[#allocation39_spill] sm:$0xff]  ;;  %v3123_v9 = vsel %vm952_vm8, %v5741_v47, %v3040_v50 }
0x1229   :  { %3840 = vmatmul.mubr.msk.bf16.vlgmr.msra.gmra.mrb[64].mxu1 %vm598_vm2, %v2935_v21  ;;  %v2930_v13 = vmul.f32 %v4120_v10, %v5519_v57  ;;  %v3119_v62 = vsel %vm952_vm8, %v5737_v4, %v3032_v31 }
0x122a   :  { %v3038_v44 = vpop.permute.xlu1 %3037 }
0x122b   :  { %v4122_v27 = vpop.eup %4121  ;;  %v3044_v26 = vpop.permute.xlu0 %3043  ;;  %v2936_v39 = vpack.c.bf16 %v2931_v29, %v2930_v13  ;;  %v3122_v16 = vsel %vm952_vm8, %v5742_v60, %v3038_v44 }
0x122c   :  { %v4124_v6 = vpop.eup %4123  ;;  %v2933_v41 = vmul.f32 %v4122_v27, %v5525_v15  ;;  %v5739_v15 = vld [vmem:[#allocation41_spill] sm:$0xff]  ;;  %v3125_v46 = vsel %vm952_vm8, %v5743_v30, %v3044_v26 }
0x122d   :  { %3843 = vmatprep.mubr.msk.bf16.mxu1 %vm598_vm2, %v2936_v39  ;;  %v2932_v34 = vmul.f32 %v4124_v6, %v5531_v55  ;;  %v3121_v2 = vsel %vm952_vm8, %v5739_v15, %v3036_v14 }
0x122e   :  { %v3042_v48 = vpop.permute.xlu1 %3041 }
0x122f   :  { %v3064_v45 = vpop.permute.xlu0 %3063  ;;  %v2937_v58 = vpack.c.bf16 %v2933_v41, %v2932_v34  ;;  %v3124_v51 = vsel %vm952_vm8, %v5744_v12, %v3042_v48 }
0x1230   :  { %v3127_v63 = vsel %vm598_vm2, %v3119_v62, %v3064_v45 }
0x1231   :  { %3844 = vmatmul.mubr.msk.bf16.gmra.mrb[68].mxu1 %vm598_vm2, %v2937_v58 }
0x1232   :  { %v3046_v56 = vpop.permute.xlu1 %3045 }
0x1233   :  { %v3068_v54 = vpop.permute.xlu0 %3067  ;;  %v3126_v1 = vsel %vm952_vm8, %v5745_v36, %v3046_v56 }
0x1234   :  { %v3129_v5 = vsel %vm598_vm2, %v3121_v2, %v3068_v54 }
0x1236   :  { %v3066_v61 = vpop.permute.xlu1 %3065 }
0x1237   :  { %v3072_v59 = vpop.permute.xlu0 %3071  ;;  %v3128_v18 = vsel %vm598_vm2, %v3120_v28, %v3066_v61 }
0x1238   :  { %v3131_v25 = vsel %vm598_vm2, %v3123_v9, %v3072_v59 }
0x123a   :  { %v3070_v23 = vpop.permute.xlu1 %3069 }
0x123b   :  { %v3076_v7 = vpop.permute.xlu0 %3075  ;;  %v3130_v11 = vsel %vm598_vm2, %v3122_v16, %v3070_v23 }
0x123c   :  { %v3133_v40 = vsel %vm598_vm2, %v3125_v46, %v3076_v7 }
0x123e   :  { %v3074_v57 = vpop.permute.xlu1 %3073 }
0x123f   :  { %v3096_v52 = vpop.permute.xlu0 %3095  ;;  %v3132_v43 = vsel %vm598_vm2, %v3124_v51, %v3074_v57 }
0x1240   :  { %v3136_v49 = vsel %vm3135_vm1, %v3127_v63, %v3096_v52 }
0x1241   :  { %3144 = vst [vmem:[%s5738_s5] sm:$0xff] %v3136_v49 }
0x1242   :  { %v3078_v55 = vpop.permute.xlu1 %3077 }
0x1243   :  { %v3100_v37 = vpop.permute.xlu0 %3099  ;;  %v3134_v42 = vsel %vm598_vm2, %v3126_v1, %v3078_v55 }
0x1244   :  { %v3138_v38 = vsel %vm3135_vm1, %v3129_v5, %v3100_v37 }
0x1245   :  { %3146 = vst [vmem:[%s5738_s5 + $0x10] sm:$0xff] %v3138_v38 }
0x1246   :  { %v3098_v3 = vpop.permute.xlu1 %3097 }
0x1247   :  { %v3137_v19 = vsel %vm3135_vm1, %v3128_v18, %v3098_v3  ;;  %v3104_v8 = vpop.permute.xlu0 %3103 }
0x1248   :  { %3145 = vst [vmem:[%s5738_s5 + $0x8] sm:$0xff] %v3137_v19  ;;  %v3140_v20 = vsel %vm3135_vm1, %v3131_v25, %v3104_v8 }
0x1249   :  { %3148 = vst [vmem:[%s5738_s5 + $0x20] sm:$0xff] %v3140_v20 }
0x124a   :  { %v3102_v0 = vpop.permute.xlu1 %3101 }
0x124b   :  { %v3139_v53 = vsel %vm3135_vm1, %v3130_v11, %v3102_v0  ;;  %v3108_v17 = vpop.permute.xlu0 %3107 }
0x124c   :  { %3147 = vst [vmem:[%s5738_s5 + $0x18] sm:$0xff] %v3139_v53  ;;  %v3142_v24 = vsel %vm3135_vm1, %v3133_v40, %v3108_v17 }
0x124d   :  { %3150 = vst [vmem:[%s5738_s5 + $0x30] sm:$0xff] %v3142_v24 }
0x124e   :  { %v3106_v32 = vpop.permute.xlu1 %3105 }
0x124f   :  { %v3141_v31 = vsel %vm3135_vm1, %v3132_v43, %v3106_v32 }
0x1250   :  { %3149 = vst [vmem:[%s5738_s5 + $0x28] sm:$0xff] %v3141_v31 }
0x1252   :  { %v3110_v22 = vpop.permute.xlu1 %3109 }
0x1253   :  { %v3143_v14 = vsel %vm3135_vm1, %v3134_v42, %v3110_v22 }
0x1254   :  { %3151 = vst [vmem:[%s5738_s5 + $0x38] sm:$0xff] %v3143_v14 }
0x12fc   :  { %v3841_v33 = vpop.f32.mrb[64].mxu1 }
0x12fd   :  { %3017 = vst [vmem:[#allocation28 + $0x10] sm:$0xff] %v3841_v33  ;;  %v2984_v21 = vpop.f32.mrb[65].mxu1 }
0x12fe   :  { %3015 = vst [vmem:[#allocation28] sm:$0xff] %v2984_v21  ;;  %v3842_v50 = vpop.f32.mrb[66].mxu1 }
0x12ff   :  { %3018 = vst [vmem:[#allocation28 + $0x18] sm:$0xff] %v3842_v50  ;;  %v2987_v10 = vpop.f32.mrb[67].mxu1 }
0x1300   :  { %3016 = vst [vmem:[#allocation28 + $0x8] sm:$0xff] %v2987_v10 }
0x1304   :  { %v3845_v29 = vpop.f32.mrb[68].mxu1 }
0x1305   :  { %3021 = vst [vmem:[#allocation28 + $0x30] sm:$0xff] %v3845_v29  ;;  %v3000_v13 = vpop.f32.mrb[69].mxu1 }
0x1306   :  { %3019 = vst [vmem:[#allocation28 + $0x20] sm:$0xff] %v3000_v13  ;;  %v3846_v44 = vpop.f32.mrb[70].mxu1 }
0x1307   :  { %3022 = vst [vmem:[#allocation28 + $0x38] sm:$0xff] %v3846_v44  ;;  %v3003_v27 = vpop.f32.mrb[71].mxu1 }
0x1308   :  { %3020 = vst [vmem:[#allocation28 + $0x28] sm:$0xff] %v3003_v27 }
0x1309   :  { %4488 = shalt.err (!%p4485_p6)
}
0x130a   :  { %s5746_s2 = sld [smem:[#allocation61_spill]] }
0x1310   :  { %s4489_s13 = scalar_lea.hbm %s5746_s2, 1024 }
0x1311   :  { %p4490_p7 = scmp.ne.s32.totalorder %s5746_s2, %s4489_s13  ;;  %p4493_p8 = scmp.lt.u32.totalorder %s4489_s13, %s5746_s2 }
0x1313   :  { %p4495_p9 = pnand %p4493_p8, %p4490_p7 }
0x1315   :  { %4498 = shalt.err (!%p4495_p9)
}
0x1316   :  { %3165 = dma.vmem_to_hbm [thread:$0]  %s3160_s12, 1024, %s5746_s2, [#allocation4], %s4532_s9, %s4532_s9, %s4533_s1  }
0x1317   :  { %4517 = dma.done.wait [#allocation4], 1024  }
0x1318   :  { %4518 = vsyncadd [#allocation4], 4294966272 }
0x1319   :  { %3171 = vsyncpa [#allocation3], 1 }
0x131a   :  { %3172 = vsyncpa [#allocation6], 1 }
0x131b   :  { %3173 = vsyncpa [#allocation9], 1 }
0x131c   :  { %3174 = vsyncpa [#allocation12], 1 }
0x131d   :  { %3175 = vsyncpa [#allocation15], 1 }
0x131e   :  { %3176 = vsyncpa [#allocation18], 1 }
0x131f   :  { %3177 = vsyncpa [#allocation21], 1 }
0x1320   :  { %3178 = vsyncpa [#allocation24], 1 }
0x1321   :  { %3179 = vsyncpa [#allocation27], 1 }
0x1322   :  { %3180 = vsyncpa [#allocation4], 1 }

</bundles_post_ra>
